<compile_context>
chip_gen: v7x
topology: tpu7x:2x2x1
jax: 0.10.0
libtpu: 0.0.40
codegen_flags: <defaults>
</compile_context>

<pallas_src>
import functools

import jax
import jax.numpy as jnp
from jax.experimental import pallas as pl
from jax.experimental.pallas import tpu as pltpu

EPS = 1e-5
LANE = 128
LPAD = 8  # left/top halo width in W so the big interior store is sublane-aligned


# ---------------------------------------------------------------------------
# Small helpers (host-side)
# ---------------------------------------------------------------------------
def _round_up(n, m):
    return ((n + m - 1) // m) * m


def _pad_to(a, shape):
    return jnp.pad(a, [(0, s - d) for d, s in zip(a.shape, shape)])


def _fold_bn(gamma, beta, mean, var):
    scale = gamma / jnp.sqrt(var + EPS)
    bias = beta - mean * scale
    return scale, bias


# ---------------------------------------------------------------------------
# Fused Bottleneck kernel
# ---------------------------------------------------------------------------
def _make_bottleneck_kernel(*, H, W, Ho, Wo, Cp, Pp, Op, Wp2, stride, has_sc):
    def kernel(*refs):
        if has_sc:
            (x_ref, w1_ref, b1_ref, w2_ref, b2_ref, w3_ref, b3_ref,
             wsc_ref, bsc_ref, o_ref, h1p_ref, acc_ref) = refs
        else:
            (x_ref, w1_ref, b1_ref, w2_ref, b2_ref, w3_ref, b3_ref,
             o_ref, h1p_ref, acc_ref) = refs
            wsc_ref = bsc_ref = None

        bf16 = jnp.bfloat16

        # --- zero only the 1-pixel halo border conv2 actually reads.  The interior
        #     [1:H+1, LPAD:LPAD+W, :] is fully overwritten every grid step, so this is
        #     correct regardless of how the grid is sharded across cores.
        #     (NOTE: if the h1 store ever becomes M-tiled, revisit this invariant.)
        zero_col = jnp.zeros((H + 2, 1, Pp), bf16)
        h1p_ref[:, LPAD - 1:LPAD, :] = zero_col                       # left pad column
        h1p_ref[:, LPAD + W:LPAD + W + 1, :] = zero_col               # right pad column
        zero_row = jnp.zeros((1, W + 2, Pp), bf16)
        h1p_ref[0:1, LPAD - 1:LPAD + W + 1, :] = zero_row             # top pad row
        h1p_ref[H + 1:H + 2, LPAD - 1:LPAD + W + 1, :] = zero_row     # bottom pad row

        # ---- conv1 (1x1) + bn1 (folded into w1/b1) + relu --------------------
        x2d = x_ref[0].reshape(H * W, Cp)                             # bf16
        h1 = jnp.dot(x2d, w1_ref[...], preferred_element_type=jnp.float32)
        h1 = jnp.maximum(h1 + b1_ref[...], 0.0).astype(bf16)
        # Interior store starts at W offset LPAD (= 8): sublane-aligned bulk store.
        h1p_ref[1:H + 1, LPAD:LPAD + W, :] = h1.reshape(H, W, Pp)

        # ---- conv2 (3x3, pad=1, stride) + bn2 (folded) + relu ----------------
        # im2col-free: nine shifted reads of the VMEM-resident bf16 padded h1, each
        # feeding an MXU matmul, accumulated into a VMEM f32 scratch (no zeros-init,
        # no multi-MB live f32 value).
        first = True
        for dy in range(3):
            for dx in range(3):
                if stride == 1:
                    tap = h1p_ref[dy:dy + Ho,
                                  LPAD - 1 + dx:LPAD - 1 + dx + Wo, :]
                else:
                    tap = h1p_ref[pl.ds(dy, Ho, stride=stride),
                                  pl.ds(LPAD - 1 + dx, Wo, stride=stride), :]
                d = jnp.dot(tap.reshape(Ho * Wo, Pp), w2_ref[dy * 3 + dx],
                            preferred_element_type=jnp.float32)
                if first:
                    acc_ref[...] = d
                    first = False
                else:
                    acc_ref[...] += d
        h2 = jnp.maximum(acc_ref[...] + b2_ref[...], 0.0).astype(bf16)

        # ---- conv3 (1x1) + bn3 (folded) + shortcut + relu --------------------
        out = jnp.dot(h2, w3_ref[...], preferred_element_type=jnp.float32)
        out = out + b3_ref[...]
        if has_sc:
            if stride == 1:
                xs = x2d
            else:
                xs = x_ref[0, pl.ds(0, Ho, stride=stride),
                           pl.ds(0, Wo, stride=stride), :].reshape(Ho * Wo, Cp)
            out = out + jnp.dot(xs, wsc_ref[...],
                                preferred_element_type=jnp.float32) + bsc_ref[...]
        else:
            # NOTE: residual is added from the bf16-cast input (matches the reference;
            # slightly lower precision than torch's f32 residual add).
            out = out + x2d.astype(jnp.float32)
        out = jnp.maximum(out, 0.0)
        o_ref[...] = out.reshape(1, Ho, Wo, Op).astype(o_ref.dtype)   # bf16 writeback

    return kernel


# ---------------------------------------------------------------------------
# NHWC / channel-padded / bf16 core (chain blocks through this to avoid layout plumbing)
# ---------------------------------------------------------------------------
def _bottleneck_nhwc(xp, params, *, stride):
    """xp: (N, H, W, Cp) bf16 with channels pre-padded to a multiple of 128.
    Returns (N, Ho, Wo, Op) bf16 with padded output channels."""
    N, H, W, Cp = xp.shape
    Cp_w, Pp = params["w1"].shape
    assert Cp == Cp_w, "input channel padding must match the folded weights"
    Op = params["w3"].shape[1]
    Ho = (H + 2 - 3) // stride + 1
    Wo = (W + 2 - 3) // stride + 1
    has_sc = "wsc" in params
    Wp2 = _round_up(LPAD + W + 1, 8)    # scratch W extent (left halo 8, right halo >=1)

    def _c2(b):
        return (0, 0)

    def _c3(b):
        return (0, 0, 0)

    # Grid-invariant weights/biases: single-buffer them (double-buffering only wastes VMEM).
    sbuf = pl.Buffered(1)
    inputs = [xp, params["w1"], params["b1"], params["w2"], params["b2"],
              params["w3"], params["b3"]]
    in_specs = [
        pl.BlockSpec((1, H, W, Cp), lambda b: (b, 0, 0, 0)),
        pl.BlockSpec((Cp, Pp), _c2, pipeline_mode=sbuf),
        pl.BlockSpec((1, Pp), _c2, pipeline_mode=sbuf),
        pl.BlockSpec((9, Pp, Pp), _c3, pipeline_mode=sbuf),
        pl.BlockSpec((1, Pp), _c2, pipeline_mode=sbuf),
        pl.BlockSpec((Pp, Op), _c2, pipeline_mode=sbuf),
        pl.BlockSpec((1, Op), _c2, pipeline_mode=sbuf),
    ]
    if has_sc:
        inputs += [params["wsc"], params["bsc"]]
        in_specs += [pl.BlockSpec((Cp, Op), _c2, pipeline_mode=sbuf),
                     pl.BlockSpec((1, Op), _c2, pipeline_mode=sbuf)]

    # Advisory cost estimate for the XLA scheduler.
    flops = 2 * N * H * W * Cp * Pp + 2 * N * Ho * Wo * Pp * (9 * Pp + Op)
    if has_sc:
        flops += 2 * N * Ho * Wo * Cp * Op
    weight_bytes = sum(int(w.size) * w.dtype.itemsize for w in inputs[1:])
    bytes_accessed = int(xp.size) * 2 + weight_bytes + N * Ho * Wo * Op * 2

    # Explicit VMEM budget: scratch + double-buffered input/output + weights, with headroom.
    in_block_bytes = H * W * Cp * 2
    out_block_bytes = Ho * Wo * Op * 2
    scratch_bytes = (H + 2) * Wp2 * Pp * 2 + Ho * Wo * Pp * 4
    need = 2 * in_block_bytes + 2 * out_block_bytes + 2 * weight_bytes + scratch_bytes
    vmem_limit = int(min(max(2 * need + (8 << 20), 32 << 20), 64 << 20))

    kernel = _make_bottleneck_kernel(H=H, W=W, Ho=Ho, Wo=Wo, Cp=Cp, Pp=Pp, Op=Op,
                                     Wp2=Wp2, stride=stride, has_sc=has_sc)

    return pl.pallas_call(
        kernel,
        out_shape=jax.ShapeDtypeStruct((N, Ho, Wo, Op), jnp.bfloat16),
        grid=(N,),
        in_specs=in_specs,
        out_specs=pl.BlockSpec((1, Ho, Wo, Op), lambda b: (b, 0, 0, 0)),
        scratch_shapes=[pltpu.VMEM((H + 2, Wp2, Pp), jnp.bfloat16),   # h1 + zero halo (bf16)
                        pltpu.VMEM((Ho * Wo, Pp), jnp.float32)],      # conv2 accumulator
        compiler_params=pltpu.CompilerParams(
            dimension_semantics=("parallel",),
            vmem_limit_bytes=vmem_limit),
        cost_estimate=pl.CostEstimate(flops=flops, transcendentals=0,
                                      bytes_accessed=bytes_accessed),
    )(*inputs)


# ---------------------------------------------------------------------------
# Torch-style NCHW wrapper (layout plumbing only; use _bottleneck_nhwc when chaining blocks)
# ---------------------------------------------------------------------------
@functools.partial(jax.jit, static_argnames=("stride", "out_channels"))
def bottleneck_forward(x_nchw, params, *, stride, out_channels):
    x = jnp.transpose(x_nchw, (0, 2, 3, 1))                             # NHWC
    N, H, W, Cin = x.shape
    Cp = params["w1"].shape[0]
    xp = _pad_to(x, (N, H, W, Cp)).astype(jnp.bfloat16)
    out = _bottleneck_nhwc(xp, params, stride=stride)
    out = out[..., :out_channels].astype(jnp.float32)
    return jnp.transpose(out, (0, 3, 1, 2))                             # back to NCHW


# ---------------------------------------------------------------------------
# Parameter construction: torch-shaped synthetic weights, BN folded + padded
# ---------------------------------------------------------------------------
def init_bottleneck_params(key, in_planes, planes, stride):
    expansion = 4
    out_planes = expansion * planes
    Cp = _round_up(in_planes, LANE)
    Pp = _round_up(planes, LANE)
    Op = _round_up(out_planes, LANE)
    ks = jax.random.split(key, 8)

    def bn(k, c):
        k1, k2, k3, k4 = jax.random.split(k, 4)
        gamma = jax.random.uniform(k1, (c,), minval=0.5, maxval=1.5)
        beta = 0.1 * jax.random.normal(k2, (c,))
        mean = 0.1 * jax.random.normal(k3, (c,))
        var = jax.random.uniform(k4, (c,), minval=0.5, maxval=1.5)
        return _fold_bn(gamma, beta, mean, var)

    p = {}
    # conv1: torch (planes, in_planes, 1, 1)  ->  (in_planes, planes), BN scale folded
    w1 = 0.1 * jax.random.normal(ks[0], (planes, in_planes))
    s1, b1 = bn(ks[1], planes)
    w1 = jnp.transpose(w1, (1, 0)) * s1[None, :]
    p["w1"] = _pad_to(w1, (Cp, Pp)).astype(jnp.bfloat16)
    p["b1"] = _pad_to(b1[None, :], (1, Pp)).astype(jnp.float32)

    # conv2: torch (planes, planes, 3, 3) -> (kh, kw, cin, cout) -> (9, Pp, Pp)
    w2 = 0.1 * jax.random.normal(ks[2], (planes, planes, 3, 3))
    s2, b2 = bn(ks[3], planes)
    w2 = jnp.transpose(w2, (2, 3, 1, 0)) * s2[None, None, None, :]
    p["w2"] = _pad_to(w2, (3, 3, Pp, Pp)).reshape(9, Pp, Pp).astype(jnp.bfloat16)
    p["b2"] = _pad_to(b2[None, :], (1, Pp)).astype(jnp.float32)

    # conv3: torch (4*planes, planes, 1, 1) -> (planes, 4*planes)
    w3 = 0.1 * jax.random.normal(ks[4], (out_planes, planes))
    s3, b3 = bn(ks[5], out_planes)
    w3 = jnp.transpose(w3, (1, 0)) * s3[None, :]
    p["w3"] = _pad_to(w3, (Pp, Op)).astype(jnp.bfloat16)
    p["b3"] = _pad_to(b3[None, :], (1, Op)).astype(jnp.float32)

    # projection shortcut (only when stride != 1 or in_planes != 4*planes)
    if stride != 1 or in_planes != out_planes:
        wsc = 0.1 * jax.random.normal(ks[6], (out_planes, in_planes))
        ssc, bsc = bn(ks[7], out_planes)
        wsc = jnp.transpose(wsc, (1, 0)) * ssc[None, :]
        p["wsc"] = _pad_to(wsc, (Cp, Op)).astype(jnp.bfloat16)
        p["bsc"] = _pad_to(bsc[None, :], (1, Op)).astype(jnp.float32)
    return p


# ---------------------------------------------------------------------------
# Pure-JAX reference (mirrors the kernel's bf16-operand / f32-accumulate math)
# ---------------------------------------------------------------------------
def bottleneck_ref(x_nchw, params, *, stride, out_channels):
    f32 = jnp.float32
    x = jnp.transpose(x_nchw, (0, 2, 3, 1))
    N, H, W, Cin = x.shape
    Cp, Pp = params["w1"].shape
    Op = params["w3"].shape[1]
    xp = _pad_to(x, (N, H, W, Cp)).astype(jnp.bfloat16)

    def dot32(a, b):
        return jnp.dot(a.astype(f32), b.astype(f32))

    h1 = dot32(xp.reshape(-1, Cp), params["w1"]) + params["b1"]
    h1 = jnp.maximum(h1, 0.0).astype(jnp.bfloat16).reshape(N, H, W, Pp)

    w2 = params["w2"].reshape(3, 3, Pp, Pp)
    h2 = jax.lax.conv_general_dilated(
        h1.astype(f32), w2.astype(f32), window_strides=(stride, stride),
        padding=((1, 1), (1, 1)), dimension_numbers=("NHWC", "HWIO", "NHWC"))
    h2 = jnp.maximum(h2 + params["b2"], 0.0).astype(jnp.bfloat16)
    _, Ho, Wo, _ = h2.shape

    out = dot32(h2.reshape(-1, Pp), params["w3"]) + params["b3"]
    if "wsc" in params:
        xs = xp[:, ::stride, ::stride, :].reshape(-1, Cp)
        out = out + dot32(xs, params["wsc"]) + params["bsc"]
    else:
        out = out + xp.reshape(-1, Cp).astype(f32)
    out = jnp.maximum(out, 0.0)
    out = out.reshape(N, Ho, Wo, Op)[..., :out_channels]
    return jnp.transpose(out, (0, 3, 1, 2))


if __name__ == "__main__":
    key = jax.random.PRNGKey(0)
    # (batch, in_planes, planes, spatial, stride): projection and identity shortcuts.
    configs = [
        (2, 16, 8, 16, 1),   # projection shortcut (in_planes != 4*planes)
        (2, 32, 8, 16, 1),   # identity shortcut   (in_planes == 4*planes)
    ]
    for (batch, in_planes, planes, spatial, stride) in configs:
        key, k_x, k_p = jax.random.split(key, 3)
        x = jax.random.normal(k_x, (batch, in_planes, spatial, spatial),
                              dtype=jnp.float32)
        params = init_bottleneck_params(k_p, in_planes, planes, stride)
        cout = 4 * planes

        out = bottleneck_forward(x, params, stride=stride, out_channels=cout)
        out = jax.block_until_ready(out)

        ref = jax.block_until_ready(
            bottleneck_ref(x, params, stride=stride, out_channels=cout))
        assert out.shape == (batch, cout, spatial // stride, spatial // stride)
        # tolerance includes the bf16 output quantization of the kernel writeback
        assert jnp.allclose(out, ref, atol=2e-2, rtol=2e-2), \
            f"mismatch vs reference for config {(batch, in_planes, planes, spatial, stride)}"
    print("KERNEL_OK")
</pallas_src>

<mosaic_0001>
module attributes {stable_mosaic.version = 11 : i64} {
  func.func @kernel(%arg0: i32, %arg1: memref<1x16x16x128xbf16, #tpu.memory_space<vmem>>, %arg2: memref<128x128xbf16, #tpu.memory_space<vmem>>, %arg3: memref<1x128xf32, #tpu.memory_space<vmem>>, %arg4: memref<9x128x128xbf16, #tpu.memory_space<vmem>>, %arg5: memref<1x128xf32, #tpu.memory_space<vmem>>, %arg6: memref<128x128xbf16, #tpu.memory_space<vmem>>, %arg7: memref<1x128xf32, #tpu.memory_space<vmem>>, %arg8: memref<128x128xbf16, #tpu.memory_space<vmem>>, %arg9: memref<1x128xf32, #tpu.memory_space<vmem>>, %arg10: memref<1x16x16x128xbf16, #tpu.memory_space<vmem>>, %arg11: memref<18x32x128xbf16, #tpu.memory_space<vmem>>, %arg12: memref<256x128xf32, #tpu.memory_space<vmem>>) attributes {dimension_semantics = [#tpu.dimension_semantics<parallel>], iteration_bounds = array<i64: 2>, scalar_prefetch = 0 : i64, scratch_operands = 2 : i64, tpu.core_type = #tpu.core_type<tc>, window_params = [{transform_indices = @transform_0, window_bounds = array<i64: 1, 16, 16, 128>}, {pipeline_mode = #tpu.pipeline_mode<synchronous>, transform_indices = @transform_1, window_bounds = array<i64: 128, 128>}, {pipeline_mode = #tpu.pipeline_mode<synchronous>, transform_indices = @transform_2, window_bounds = array<i64: 1, 128>}, {pipeline_mode = #tpu.pipeline_mode<synchronous>, transform_indices = @transform_3, window_bounds = array<i64: 9, 128, 128>}, {pipeline_mode = #tpu.pipeline_mode<synchronous>, transform_indices = @transform_4, window_bounds = array<i64: 1, 128>}, {pipeline_mode = #tpu.pipeline_mode<synchronous>, transform_indices = @transform_5, window_bounds = array<i64: 128, 128>}, {pipeline_mode = #tpu.pipeline_mode<synchronous>, transform_indices = @transform_6, window_bounds = array<i64: 1, 128>}, {pipeline_mode = #tpu.pipeline_mode<synchronous>, transform_indices = @transform_7, window_bounds = array<i64: 128, 128>}, {pipeline_mode = #tpu.pipeline_mode<synchronous>, transform_indices = @transform_8, window_bounds = array<i64: 1, 128>}, {transform_indices = @transform_9, window_bounds = array<i64: 1, 16, 16, 128>}]} {
    %cst = arith.constant 0.000000e+00 : bf16
    %0 = vector.broadcast %cst : bf16 to vector<18x1x128xbf16>
    %c0 = arith.constant 0 : index
    %c7 = arith.constant 7 : index
    %c0_0 = arith.constant 0 : index
    %1 = vector.load %arg11[%c0, %c7, %c0_0] : memref<18x32x128xbf16, #tpu.memory_space<vmem>>, vector<18x1x128xbf16>
    tpu.vector_store %arg11[%c0, %c7, %c0_0], %0 {strides = array<i32>} : memref<18x32x128xbf16, #tpu.memory_space<vmem>>, vector<18x1x128xbf16>,
    %c0_1 = arith.constant 0 : index
    %c24 = arith.constant 24 : index
    %c0_2 = arith.constant 0 : index
    %2 = vector.load %arg11[%c0_1, %c24, %c0_2] : memref<18x32x128xbf16, #tpu.memory_space<vmem>>, vector<18x1x128xbf16>
    tpu.vector_store %arg11[%c0_1, %c24, %c0_2], %0 {strides = array<i32>} : memref<18x32x128xbf16, #tpu.memory_space<vmem>>, vector<18x1x128xbf16>,
    %cst_3 = arith.constant 0.000000e+00 : bf16
    %3 = vector.broadcast %cst_3 : bf16 to vector<1x18x128xbf16>
    %c0_4 = arith.constant 0 : index
    %c7_5 = arith.constant 7 : index
    %c0_6 = arith.constant 0 : index
    %4 = vector.load %arg11[%c0_4, %c7_5, %c0_6] : memref<18x32x128xbf16, #tpu.memory_space<vmem>>, vector<1x18x128xbf16>
    tpu.vector_store %arg11[%c0_4, %c7_5, %c0_6], %3 {strides = array<i32>} : memref<18x32x128xbf16, #tpu.memory_space<vmem>>, vector<1x18x128xbf16>,
    %c17 = arith.constant 17 : index
    %c7_7 = arith.constant 7 : index
    %c0_8 = arith.constant 0 : index
    %5 = vector.load %arg11[%c17, %c7_7, %c0_8] : memref<18x32x128xbf16, #tpu.memory_space<vmem>>, vector<1x18x128xbf16>
    tpu.vector_store %arg11[%c17, %c7_7, %c0_8], %3 {strides = array<i32>} : memref<18x32x128xbf16, #tpu.memory_space<vmem>>, vector<1x18x128xbf16>,
    %c0_9 = arith.constant 0 : index
    %c0_10 = arith.constant 0 : index
    %c0_11 = arith.constant 0 : index
    %c0_12 = arith.constant 0 : index
    %6 = vector.load %arg1[%c0_9, %c0_10, %c0_11, %c0_12] : memref<1x16x16x128xbf16, #tpu.memory_space<vmem>>, vector<1x16x16x128xbf16>
    %7 = vector.shape_cast %6 : vector<1x16x16x128xbf16> to vector<16x16x128xbf16>
    %8 = vector.shape_cast %7 : vector<16x16x128xbf16> to vector<256x128xbf16>
    %c0_13 = arith.constant 0 : index
    %c0_14 = arith.constant 0 : index
    %9 = vector.load %arg2[%c0_13, %c0_14] : memref<128x128xbf16, #tpu.memory_space<vmem>>, vector<128x128xbf16>
    %cst_15 = arith.constant dense<0.000000e+00> : vector<256x128xf32>
    %10 = tpu.matmul %8, %9, %cst_15 {dimension_numbers = #tpu.dot_dimension_numbers<[1], [0], [0], [1], [0, 0, 1, 1], [], []>} : vector<256x128xbf16>, vector<128x128xbf16>, vector<256x128xf32> -> vector<256x128xf32>
    %c0_16 = arith.constant 0 : index
    %c0_17 = arith.constant 0 : index
    %11 = vector.load %arg3[%c0_16, %c0_17] : memref<1x128xf32, #tpu.memory_space<vmem>>, vector<1x128xf32>
    %12 = vector.broadcast %11 : vector<1x128xf32> to vector<256x128xf32>
    %13 = arith.addf %10, %12 : vector<256x128xf32>
    %cst_18 = arith.constant 0.000000e+00 : f32
    %14 = vector.broadcast %cst_18 : f32 to vector<256x128xf32>
    %15 = arith.maximumf %13, %14 : vector<256x128xf32>
    %16 = arith.truncf %15 : vector<256x128xf32> to vector<256x128xbf16>
    %17 = vector.shape_cast %16 : vector<256x128xbf16> to vector<16x16x128xbf16>
    %c1 = arith.constant 1 : index
    %c8 = arith.constant 8 : index
    %c0_19 = arith.constant 0 : index
    %18 = vector.load %arg11[%c1, %c8, %c0_19] : memref<18x32x128xbf16, #tpu.memory_space<vmem>>, vector<16x16x128xbf16>
    tpu.vector_store %arg11[%c1, %c8, %c0_19], %17 {strides = array<i32>} : memref<18x32x128xbf16, #tpu.memory_space<vmem>>, vector<16x16x128xbf16>,
    %c0_20 = arith.constant 0 : index
    %c7_21 = arith.constant 7 : index
    %c0_22 = arith.constant 0 : index
    %19 = vector.load %arg11[%c0_20, %c7_21, %c0_22] : memref<18x32x128xbf16, #tpu.memory_space<vmem>>, vector<16x16x128xbf16>
    %20 = vector.shape_cast %19 : vector<16x16x128xbf16> to vector<256x128xbf16>
    %c0_23 = arith.constant 0 : index
    %c0_24 = arith.constant 0 : index
    %c0_25 = arith.constant 0 : index
    %21 = vector.load %arg4[%c0_23, %c0_24, %c0_25] : memref<9x128x128xbf16, #tpu.memory_space<vmem>>, vector<1x128x128xbf16>
    %22 = vector.shape_cast %21 : vector<1x128x128xbf16> to vector<128x128xbf16>
    %cst_26 = arith.constant dense<0.000000e+00> : vector<256x128xf32>
    %23 = tpu.matmul %20, %22, %cst_26 {dimension_numbers = #tpu.dot_dimension_numbers<[1], [0], [0], [1], [0, 0, 1, 1], [], []>} : vector<256x128xbf16>, vector<128x128xbf16>, vector<256x128xf32> -> vector<256x128xf32>
    %c0_27 = arith.constant 0 : index
    %c0_28 = arith.constant 0 : index
    %24 = vector.load %arg12[%c0_27, %c0_28] : memref<256x128xf32, #tpu.memory_space<vmem>>, vector<256x128xf32>
    tpu.vector_store %arg12[%c0_27, %c0_28], %23 {strides = array<i32>} : memref<256x128xf32, #tpu.memory_space<vmem>>, vector<256x128xf32>,
    %c0_29 = arith.constant 0 : index
    %c8_30 = arith.constant 8 : index
    %c0_31 = arith.constant 0 : index
    %25 = vector.load %arg11[%c0_29, %c8_30, %c0_31] : memref<18x32x128xbf16, #tpu.memory_space<vmem>>, vector<16x16x128xbf16>
    %26 = vector.shape_cast %25 : vector<16x16x128xbf16> to vector<256x128xbf16>
    %c1_32 = arith.constant 1 : index
    %c0_33 = arith.constant 0 : index
    %c0_34 = arith.constant 0 : index
    %27 = vector.load %arg4[%c1_32, %c0_33, %c0_34] : memref<9x128x128xbf16, #tpu.memory_space<vmem>>, vector<1x128x128xbf16>
    %28 = vector.shape_cast %27 : vector<1x128x128xbf16> to vector<128x128xbf16>
    %cst_35 = arith.constant dense<0.000000e+00> : vector<256x128xf32>
    %29 = tpu.matmul %26, %28, %cst_35 {dimension_numbers = #tpu.dot_dimension_numbers<[1], [0], [0], [1], [0, 0, 1, 1], [], []>} : vector<256x128xbf16>, vector<128x128xbf16>, vector<256x128xf32> -> vector<256x128xf32>
    %c0_36 = arith.constant 0 : index
    %c0_37 = arith.constant 0 : index
    %30 = vector.load %arg12[%c0_36, %c0_37] : memref<256x128xf32, #tpu.memory_space<vmem>>, vector<256x128xf32>
    %31 = arith.addf %30, %29 : vector<256x128xf32>
    %c0_38 = arith.constant 0 : index
    %c0_39 = arith.constant 0 : index
    %32 = vector.load %arg12[%c0_38, %c0_39] : memref<256x128xf32, #tpu.memory_space<vmem>>, vector<256x128xf32>
    tpu.vector_store %arg12[%c0_38, %c0_39], %31 {strides = array<i32>} : memref<256x128xf32, #tpu.memory_space<vmem>>, vector<256x128xf32>,
    %c0_40 = arith.constant 0 : index
    %c9 = arith.constant 9 : index
    %c0_41 = arith.constant 0 : index
    %33 = vector.load %arg11[%c0_40, %c9, %c0_41] : memref<18x32x128xbf16, #tpu.memory_space<vmem>>, vector<16x16x128xbf16>
    %34 = vector.shape_cast %33 : vector<16x16x128xbf16> to vector<256x128xbf16>
    %c2 = arith.constant 2 : index
    %c0_42 = arith.constant 0 : index
    %c0_43 = arith.constant 0 : index
    %35 = vector.load %arg4[%c2, %c0_42, %c0_43] : memref<9x128x128xbf16, #tpu.memory_space<vmem>>, vector<1x128x128xbf16>
    %36 = vector.shape_cast %35 : vector<1x128x128xbf16> to vector<128x128xbf16>
    %cst_44 = arith.constant dense<0.000000e+00> : vector<256x128xf32>
    %37 = tpu.matmul %34, %36, %cst_44 {dimension_numbers = #tpu.dot_dimension_numbers<[1], [0], [0], [1], [0, 0, 1, 1], [], []>} : vector<256x128xbf16>, vector<128x128xbf16>, vector<256x128xf32> -> vector<256x128xf32>
    %c0_45 = arith.constant 0 : index
    %c0_46 = arith.constant 0 : index
    %38 = vector.load %arg12[%c0_45, %c0_46] : memref<256x128xf32, #tpu.memory_space<vmem>>, vector<256x128xf32>
    %39 = arith.addf %38, %37 : vector<256x128xf32>
    %c0_47 = arith.constant 0 : index
    %c0_48 = arith.constant 0 : index
    %40 = vector.load %arg12[%c0_47, %c0_48] : memref<256x128xf32, #tpu.memory_space<vmem>>, vector<256x128xf32>
    tpu.vector_store %arg12[%c0_47, %c0_48], %39 {strides = array<i32>} : memref<256x128xf32, #tpu.memory_space<vmem>>, vector<256x128xf32>,
    %c1_49 = arith.constant 1 : index
    %c7_50 = arith.constant 7 : index
    %c0_51 = arith.constant 0 : index
    %41 = vector.load %arg11[%c1_49, %c7_50, %c0_51] : memref<18x32x128xbf16, #tpu.memory_space<vmem>>, vector<16x16x128xbf16>
    %42 = vector.shape_cast %41 : vector<16x16x128xbf16> to vector<256x128xbf16>
    %c3 = arith.constant 3 : index
    %c0_52 = arith.constant 0 : index
    %c0_53 = arith.constant 0 : index
    %43 = vector.load %arg4[%c3, %c0_52, %c0_53] : memref<9x128x128xbf16, #tpu.memory_space<vmem>>, vector<1x128x128xbf16>
    %44 = vector.shape_cast %43 : vector<1x128x128xbf16> to vector<128x128xbf16>
    %cst_54 = arith.constant dense<0.000000e+00> : vector<256x128xf32>
    %45 = tpu.matmul %42, %44, %cst_54 {dimension_numbers = #tpu.dot_dimension_numbers<[1], [0], [0], [1], [0, 0, 1, 1], [], []>} : vector<256x128xbf16>, vector<128x128xbf16>, vector<256x128xf32> -> vector<256x128xf32>
    %c0_55 = arith.constant 0 : index
    %c0_56 = arith.constant 0 : index
    %46 = vector.load %arg12[%c0_55, %c0_56] : memref<256x128xf32, #tpu.memory_space<vmem>>, vector<256x128xf32>
    %47 = arith.addf %46, %45 : vector<256x128xf32>
    %c0_57 = arith.constant 0 : index
    %c0_58 = arith.constant 0 : index
    %48 = vector.load %arg12[%c0_57, %c0_58] : memref<256x128xf32, #tpu.memory_space<vmem>>, vector<256x128xf32>
    tpu.vector_store %arg12[%c0_57, %c0_58], %47 {strides = array<i32>} : memref<256x128xf32, #tpu.memory_space<vmem>>, vector<256x128xf32>,
    %c1_59 = arith.constant 1 : index
    %c8_60 = arith.constant 8 : index
    %c0_61 = arith.constant 0 : index
    %49 = vector.load %arg11[%c1_59, %c8_60, %c0_61] : memref<18x32x128xbf16, #tpu.memory_space<vmem>>, vector<16x16x128xbf16>
    %50 = vector.shape_cast %49 : vector<16x16x128xbf16> to vector<256x128xbf16>
    %c4 = arith.constant 4 : index
    %c0_62 = arith.constant 0 : index
    %c0_63 = arith.constant 0 : index
    %51 = vector.load %arg4[%c4, %c0_62, %c0_63] : memref<9x128x128xbf16, #tpu.memory_space<vmem>>, vector<1x128x128xbf16>
    %52 = vector.shape_cast %51 : vector<1x128x128xbf16> to vector<128x128xbf16>
    %cst_64 = arith.constant dense<0.000000e+00> : vector<256x128xf32>
    %53 = tpu.matmul %50, %52, %cst_64 {dimension_numbers = #tpu.dot_dimension_numbers<[1], [0], [0], [1], [0, 0, 1, 1], [], []>} : vector<256x128xbf16>, vector<128x128xbf16>, vector<256x128xf32> -> vector<256x128xf32>
    %c0_65 = arith.constant 0 : index
    %c0_66 = arith.constant 0 : index
    %54 = vector.load %arg12[%c0_65, %c0_66] : memref<256x128xf32, #tpu.memory_space<vmem>>, vector<256x128xf32>
    %55 = arith.addf %54, %53 : vector<256x128xf32>
    %c0_67 = arith.constant 0 : index
    %c0_68 = arith.constant 0 : index
    %56 = vector.load %arg12[%c0_67, %c0_68] : memref<256x128xf32, #tpu.memory_space<vmem>>, vector<256x128xf32>
    tpu.vector_store %arg12[%c0_67, %c0_68], %55 {strides = array<i32>} : memref<256x128xf32, #tpu.memory_space<vmem>>, vector<256x128xf32>,
    %c1_69 = arith.constant 1 : index
    %c9_70 = arith.constant 9 : index
    %c0_71 = arith.constant 0 : index
    %57 = vector.load %arg11[%c1_69, %c9_70, %c0_71] : memref<18x32x128xbf16, #tpu.memory_space<vmem>>, vector<16x16x128xbf16>
    %58 = vector.shape_cast %57 : vector<16x16x128xbf16> to vector<256x128xbf16>
    %c5 = arith.constant 5 : index
    %c0_72 = arith.constant 0 : index
    %c0_73 = arith.constant 0 : index
    %59 = vector.load %arg4[%c5, %c0_72, %c0_73] : memref<9x128x128xbf16, #tpu.memory_space<vmem>>, vector<1x128x128xbf16>
    %60 = vector.shape_cast %59 : vector<1x128x128xbf16> to vector<128x128xbf16>
    %cst_74 = arith.constant dense<0.000000e+00> : vector<256x128xf32>
    %61 = tpu.matmul %58, %60, %cst_74 {dimension_numbers = #tpu.dot_dimension_numbers<[1], [0], [0], [1], [0, 0, 1, 1], [], []>} : vector<256x128xbf16>, vector<128x128xbf16>, vector<256x128xf32> -> vector<256x128xf32>
    %c0_75 = arith.constant 0 : index
    %c0_76 = arith.constant 0 : index
    %62 = vector.load %arg12[%c0_75, %c0_76] : memref<256x128xf32, #tpu.memory_space<vmem>>, vector<256x128xf32>
    %63 = arith.addf %62, %61 : vector<256x128xf32>
    %c0_77 = arith.constant 0 : index
    %c0_78 = arith.constant 0 : index
    %64 = vector.load %arg12[%c0_77, %c0_78] : memref<256x128xf32, #tpu.memory_space<vmem>>, vector<256x128xf32>
    tpu.vector_store %arg12[%c0_77, %c0_78], %63 {strides = array<i32>} : memref<256x128xf32, #tpu.memory_space<vmem>>, vector<256x128xf32>,
    %c2_79 = arith.constant 2 : index
    %c7_80 = arith.constant 7 : index
    %c0_81 = arith.constant 0 : index
    %65 = vector.load %arg11[%c2_79, %c7_80, %c0_81] : memref<18x32x128xbf16, #tpu.memory_space<vmem>>, vector<16x16x128xbf16>
    %66 = vector.shape_cast %65 : vector<16x16x128xbf16> to vector<256x128xbf16>
    %c6 = arith.constant 6 : index
    %c0_82 = arith.constant 0 : index
    %c0_83 = arith.constant 0 : index
    %67 = vector.load %arg4[%c6, %c0_82, %c0_83] : memref<9x128x128xbf16, #tpu.memory_space<vmem>>, vector<1x128x128xbf16>
    %68 = vector.shape_cast %67 : vector<1x128x128xbf16> to vector<128x128xbf16>
    %cst_84 = arith.constant dense<0.000000e+00> : vector<256x128xf32>
    %69 = tpu.matmul %66, %68, %cst_84 {dimension_numbers = #tpu.dot_dimension_numbers<[1], [0], [0], [1], [0, 0, 1, 1], [], []>} : vector<256x128xbf16>, vector<128x128xbf16>, vector<256x128xf32> -> vector<256x128xf32>
    %c0_85 = arith.constant 0 : index
    %c0_86 = arith.constant 0 : index
    %70 = vector.load %arg12[%c0_85, %c0_86] : memref<256x128xf32, #tpu.memory_space<vmem>>, vector<256x128xf32>
    %71 = arith.addf %70, %69 : vector<256x128xf32>
    %c0_87 = arith.constant 0 : index
    %c0_88 = arith.constant 0 : index
    %72 = vector.load %arg12[%c0_87, %c0_88] : memref<256x128xf32, #tpu.memory_space<vmem>>, vector<256x128xf32>
    tpu.vector_store %arg12[%c0_87, %c0_88], %71 {strides = array<i32>} : memref<256x128xf32, #tpu.memory_space<vmem>>, vector<256x128xf32>,
    %c2_89 = arith.constant 2 : index
    %c8_90 = arith.constant 8 : index
    %c0_91 = arith.constant 0 : index
    %73 = vector.load %arg11[%c2_89, %c8_90, %c0_91] : memref<18x32x128xbf16, #tpu.memory_space<vmem>>, vector<16x16x128xbf16>
    %74 = vector.shape_cast %73 : vector<16x16x128xbf16> to vector<256x128xbf16>
    %c7_92 = arith.constant 7 : index
    %c0_93 = arith.constant 0 : index
    %c0_94 = arith.constant 0 : index
    %75 = vector.load %arg4[%c7_92, %c0_93, %c0_94] : memref<9x128x128xbf16, #tpu.memory_space<vmem>>, vector<1x128x128xbf16>
    %76 = vector.shape_cast %75 : vector<1x128x128xbf16> to vector<128x128xbf16>
    %cst_95 = arith.constant dense<0.000000e+00> : vector<256x128xf32>
    %77 = tpu.matmul %74, %76, %cst_95 {dimension_numbers = #tpu.dot_dimension_numbers<[1], [0], [0], [1], [0, 0, 1, 1], [], []>} : vector<256x128xbf16>, vector<128x128xbf16>, vector<256x128xf32> -> vector<256x128xf32>
    %c0_96 = arith.constant 0 : index
    %c0_97 = arith.constant 0 : index
    %78 = vector.load %arg12[%c0_96, %c0_97] : memref<256x128xf32, #tpu.memory_space<vmem>>, vector<256x128xf32>
    %79 = arith.addf %78, %77 : vector<256x128xf32>
    %c0_98 = arith.constant 0 : index
    %c0_99 = arith.constant 0 : index
    %80 = vector.load %arg12[%c0_98, %c0_99] : memref<256x128xf32, #tpu.memory_space<vmem>>, vector<256x128xf32>
    tpu.vector_store %arg12[%c0_98, %c0_99], %79 {strides = array<i32>} : memref<256x128xf32, #tpu.memory_space<vmem>>, vector<256x128xf32>,
    %c2_100 = arith.constant 2 : index
    %c9_101 = arith.constant 9 : index
    %c0_102 = arith.constant 0 : index
    %81 = vector.load %arg11[%c2_100, %c9_101, %c0_102] : memref<18x32x128xbf16, #tpu.memory_space<vmem>>, vector<16x16x128xbf16>
    %82 = vector.shape_cast %81 : vector<16x16x128xbf16> to vector<256x128xbf16>
    %c8_103 = arith.constant 8 : index
    %c0_104 = arith.constant 0 : index
    %c0_105 = arith.constant 0 : index
    %83 = vector.load %arg4[%c8_103, %c0_104, %c0_105] : memref<9x128x128xbf16, #tpu.memory_space<vmem>>, vector<1x128x128xbf16>
    %84 = vector.shape_cast %83 : vector<1x128x128xbf16> to vector<128x128xbf16>
    %cst_106 = arith.constant dense<0.000000e+00> : vector<256x128xf32>
    %85 = tpu.matmul %82, %84, %cst_106 {dimension_numbers = #tpu.dot_dimension_numbers<[1], [0], [0], [1], [0, 0, 1, 1], [], []>} : vector<256x128xbf16>, vector<128x128xbf16>, vector<256x128xf32> -> vector<256x128xf32>
    %c0_107 = arith.constant 0 : index
    %c0_108 = arith.constant 0 : index
    %86 = vector.load %arg12[%c0_107, %c0_108] : memref<256x128xf32, #tpu.memory_space<vmem>>, vector<256x128xf32>
    %87 = arith.addf %86, %85 : vector<256x128xf32>
    %c0_109 = arith.constant 0 : index
    %c0_110 = arith.constant 0 : index
    %88 = vector.load %arg12[%c0_109, %c0_110] : memref<256x128xf32, #tpu.memory_space<vmem>>, vector<256x128xf32>
    tpu.vector_store %arg12[%c0_109, %c0_110], %87 {strides = array<i32>} : memref<256x128xf32, #tpu.memory_space<vmem>>, vector<256x128xf32>,
    %c0_111 = arith.constant 0 : index
    %c0_112 = arith.constant 0 : index
    %89 = vector.load %arg12[%c0_111, %c0_112] : memref<256x128xf32, #tpu.memory_space<vmem>>, vector<256x128xf32>
    %c0_113 = arith.constant 0 : index
    %c0_114 = arith.constant 0 : index
    %90 = vector.load %arg5[%c0_113, %c0_114] : memref<1x128xf32, #tpu.memory_space<vmem>>, vector<1x128xf32>
    %91 = vector.broadcast %90 : vector<1x128xf32> to vector<256x128xf32>
    %92 = arith.addf %89, %91 : vector<256x128xf32>
    %cst_115 = arith.constant 0.000000e+00 : f32
    %93 = vector.broadcast %cst_115 : f32 to vector<256x128xf32>
    %94 = arith.maximumf %92, %93 : vector<256x128xf32>
    %95 = arith.truncf %94 : vector<256x128xf32> to vector<256x128xbf16>
    %c0_116 = arith.constant 0 : index
    %c0_117 = arith.constant 0 : index
    %96 = vector.load %arg6[%c0_116, %c0_117] : memref<128x128xbf16, #tpu.memory_space<vmem>>, vector<128x128xbf16>
    %cst_118 = arith.constant dense<0.000000e+00> : vector<256x128xf32>
    %97 = tpu.matmul %95, %96, %cst_118 {dimension_numbers = #tpu.dot_dimension_numbers<[1], [0], [0], [1], [0, 0, 1, 1], [], []>} : vector<256x128xbf16>, vector<128x128xbf16>, vector<256x128xf32> -> vector<256x128xf32>
    %c0_119 = arith.constant 0 : index
    %c0_120 = arith.constant 0 : index
    %98 = vector.load %arg7[%c0_119, %c0_120] : memref<1x128xf32, #tpu.memory_space<vmem>>, vector<1x128xf32>
    %99 = vector.broadcast %98 : vector<1x128xf32> to vector<256x128xf32>
    %100 = arith.addf %97, %99 : vector<256x128xf32>
    %c0_121 = arith.constant 0 : index
    %c0_122 = arith.constant 0 : index
    %101 = vector.load %arg8[%c0_121, %c0_122] : memref<128x128xbf16, #tpu.memory_space<vmem>>, vector<128x128xbf16>
    %cst_123 = arith.constant dense<0.000000e+00> : vector<256x128xf32>
    %102 = tpu.matmul %8, %101, %cst_123 {dimension_numbers = #tpu.dot_dimension_numbers<[1], [0], [0], [1], [0, 0, 1, 1], [], []>} : vector<256x128xbf16>, vector<128x128xbf16>, vector<256x128xf32> -> vector<256x128xf32>
    %103 = arith.addf %100, %102 : vector<256x128xf32>
    %c0_124 = arith.constant 0 : index
    %c0_125 = arith.constant 0 : index
    %104 = vector.load %arg9[%c0_124, %c0_125] : memref<1x128xf32, #tpu.memory_space<vmem>>, vector<1x128xf32>
    %105 = vector.broadcast %104 : vector<1x128xf32> to vector<256x128xf32>
    %106 = arith.addf %103, %105 : vector<256x128xf32>
    %cst_126 = arith.constant 0.000000e+00 : f32
    %107 = vector.broadcast %cst_126 : f32 to vector<256x128xf32>
    %108 = arith.maximumf %106, %107 : vector<256x128xf32>
    %109 = vector.shape_cast %108 : vector<256x128xf32> to vector<1x16x16x128xf32>
    %110 = arith.truncf %109 : vector<1x16x16x128xf32> to vector<1x16x16x128xbf16>
    %c0_127 = arith.constant 0 : index
    %c0_128 = arith.constant 0 : index
    %c0_129 = arith.constant 0 : index
    %c0_130 = arith.constant 0 : index
    %111 = vector.load %arg10[%c0_127, %c0_128, %c0_129, %c0_130] : memref<1x16x16x128xbf16, #tpu.memory_space<vmem>>, vector<1x16x16x128xbf16>
    tpu.vector_store %arg10[%c0_127, %c0_128, %c0_129, %c0_130], %110 {strides = array<i32>} : memref<1x16x16x128xbf16, #tpu.memory_space<vmem>>, vector<1x16x16x128xbf16>,
    return
  }
  func.func @transform_0(%arg0: i32) -> (i32, i32, i32, i32) {
    %c0_i32 = arith.constant 0 : i32
    %c0_i32_0 = arith.constant 0 : i32
    %c0_i32_1 = arith.constant 0 : i32
    %c0_i32_2 = arith.constant 0 : i32
    return %arg0, %c0_i32, %c0_i32_0, %c0_i32_1 : i32, i32, i32, i32
  }
  func.func @transform_1(%arg0: i32) -> (i32, i32) {
    %c0_i32 = arith.constant 0 : i32
    %c0_i32_0 = arith.constant 0 : i32
    %c0_i32_1 = arith.constant 0 : i32
    return %c0_i32, %c0_i32_0 : i32, i32
  }
  func.func @transform_2(%arg0: i32) -> (i32, i32) {
    %c0_i32 = arith.constant 0 : i32
    %c0_i32_0 = arith.constant 0 : i32
    %c0_i32_1 = arith.constant 0 : i32
    return %c0_i32, %c0_i32_0 : i32, i32
  }
  func.func @transform_3(%arg0: i32) -> (i32, i32, i32) {
    %c0_i32 = arith.constant 0 : i32
    %c0_i32_0 = arith.constant 0 : i32
    %c0_i32_1 = arith.constant 0 : i32
    %c0_i32_2 = arith.constant 0 : i32
    return %c0_i32, %c0_i32_0, %c0_i32_1 : i32, i32, i32
  }
  func.func @transform_4(%arg0: i32) -> (i32, i32) {
    %c0_i32 = arith.constant 0 : i32
    %c0_i32_0 = arith.constant 0 : i32
    %c0_i32_1 = arith.constant 0 : i32
    return %c0_i32, %c0_i32_0 : i32, i32
  }
  func.func @transform_5(%arg0: i32) -> (i32, i32) {
    %c0_i32 = arith.constant 0 : i32
    %c0_i32_0 = arith.constant 0 : i32
    %c0_i32_1 = arith.constant 0 : i32
    return %c0_i32, %c0_i32_0 : i32, i32
  }
  func.func @transform_6(%arg0: i32) -> (i32, i32) {
    %c0_i32 = arith.constant 0 : i32
    %c0_i32_0 = arith.constant 0 : i32
    %c0_i32_1 = arith.constant 0 : i32
    return %c0_i32, %c0_i32_0 : i32, i32
  }
  func.func @transform_7(%arg0: i32) -> (i32, i32) {
    %c0_i32 = arith.constant 0 : i32
    %c0_i32_0 = arith.constant 0 : i32
    %c0_i32_1 = arith.constant 0 : i32
    return %c0_i32, %c0_i32_0 : i32, i32
  }
  func.func @transform_8(%arg0: i32) -> (i32, i32) {
    %c0_i32 = arith.constant 0 : i32
    %c0_i32_0 = arith.constant 0 : i32
    %c0_i32_1 = arith.constant 0 : i32
    return %c0_i32, %c0_i32_0 : i32, i32
  }
  func.func @transform_9(%arg0: i32) -> (i32, i32, i32, i32) {
    %c0_i32 = arith.constant 0 : i32
    %c0_i32_0 = arith.constant 0 : i32
    %c0_i32_1 = arith.constant 0 : i32
    %c0_i32_2 = arith.constant 0 : i32
    return %arg0, %c0_i32, %c0_i32_0, %c0_i32_1 : i32, i32, i32, i32
  }
}

</mosaic_0001>

<bundles_post_ra>
// kernel: bottleneck_forward.1
= control target key start
LH: loop header
LB: loop body
LE: loop exit
PB: predicated region body
PF: predicated region fallthrough
CT: control target
= control target key end

     0   :  { %s8782_s30 = smov 0   ;;  %s10137_s0 = inlined_call_operand.vmem [shape: bf16[2,16,16,128], index: 0, kind: input, shape index: {}]   ;;  %s10138_s1 = inlined_call_operand.vmem [shape: bf16[128,128], index: 1, kind: input, shape index: {}]   ;;  %s10139_s2 = inlined_call_operand.vmem [shape: f32[1,128], index: 2, kind: input, shape index: {}]   ;;  %s10140_s3 = inlined_call_operand.vmem [shape: bf16[9,128,128], index: 3, kind: input, shape index: {}]   ;;  %s10141_s4 = inlined_call_operand.vmem [shape: f32[1,128], index: 4, kind: input, shape index: {}]   ;;  %s10142_s5 = inlined_call_operand.vmem [shape: bf16[128,128], index: 5, kind: input, shape index: {}]   ;;  %s10143_s6 = inlined_call_operand.vmem [shape: f32[1,128], index: 6, kind: input, shape index: {}]   ;;  %s10144_s7 = inlined_call_operand.vmem [shape: bf16[128,128], index: 7, kind: input, shape index: {}]   ;;  %s10145_s8 = inlined_call_operand.vmem [shape: f32[1,128], index: 8, kind: input, shape index: {}]   ;;  %s10146_s9 = inlined_call_operand.vmem [shape: bf16[2,16,16,128], index: 9, kind: output, shape index: {}]  }
   0x1 LB: > { %s6988_s10 = sadd.s32 4294967295, %s8730_s30   ;;  %p6992_p0 = scmp.ge.s32.totalorder %s8730_s30, 1  ;;  %s8730_s30 = sphi %s8782_s30, %s19_s30  }
   0x2   : > { %p287_p1 = scmp.lt.s32.totalorder %s8730_s30, 3 }
   0x4   : > { %p288_p2 = pnand %p6992_p0, %p287_p1 }
   0x5   : > { %v8596_v0 = vld [vmem:[%s10138_s1] sm:$0xff] (!%p288_p2)   ;;  %p323_p3 = scmp.lt.s32.totalorder (!%p288_p2), %s6988_s10, 1  ;;  %v8597_v1 = vld [vmem:[%s10138_s1 + $0x8] sm:$0xff] (!%p288_p2)   ;;  %v8598_v2 = vld [vmem:[%s10138_s1 + $0x10] sm:$0xff] (!%p288_p2)   ;;  %vm334_vm0 = vcmask (!%p288_p2), 1043459   ;;  %vm391_vm2 = vcmask (!%p288_p2), 1044484  }
   0x6   : > { %291 = sbr.rel (%p288_p2) target bundleno = 1207 (0x4b7), region = 56  ;;  %7692 = vmatprep.subr.bf16.mxu0 (!%p288_p2), %v8596_v0  ;;  %v8599_v3 = vld [vmem:[%s10138_s1 + $0x18] sm:$0xff] (!%p288_p2)   ;;  %v8600_v5 = vld [vmem:[%s10138_s1 + $0x20] sm:$0xff] (!%p288_p2)   ;;  %v8601_v6 = vld [vmem:[%s10138_s1 + $0x28] sm:$0xff] (!%p288_p2)   ;;  %vm335_vm1 = vsmask.f32 (!%p288_p2), 7950 }
   0x7   : > { %7693 = vmatpush3.bf16.msra.mxu0 (!%p288_p2), %v8596_v0  ;;  %v8602_v7 = vld [vmem:[%s10138_s1 + $0x30] sm:$0xff] (!%p288_p2)   ;;  %v8603_v8 = vld [vmem:[%s10138_s1 + $0x38] sm:$0xff] (!%p288_p2)   ;;  %v8621_v9 = vld [vmem:[%s10140_s3 + $0xc0] sm:$0xff] (!%p288_p2)   ;;  %vm392_vm3 = vsmask.f32 (!%p288_p2), 4352  ;;  %vm448_vm6 = vcmask (!%p288_p2), 1047555  }
   0x8   : > { %7694 = vmatprep.subr.bf16.mxu0 (!%p288_p2), %v8597_v1  ;;  %v8620_v10 = vld [vmem:[%s10140_s3] sm:$0xff] (!%p288_p2)   ;;  %7884 = vmatprep.subr.bf16.mxu1 (!%p288_p2), %v8621_v9  ;;  %v8623_v11 = vld [vmem:[%s10140_s3 + $0xc8] sm:$0xff] (!%p288_p2)   ;;  %vm8853_vm4 = vmand (!%p288_p2), %vm334_vm0, %vm335_vm1  ;;  %vm453_vm7 = vcmask (!%p288_p2), 1044480   ;;  %vm1595_vm10 = vcmask (!%p288_p2), 1043456   ;;  %vm2014_vm11 = vsmask.f32 (!%p288_p2), 3328 }
   0x9   : > { %7885 = vmatpush3.bf16.msra.mxu1 (!%p288_p2), %v8621_v9  ;;  %v8622_v14 = vld [vmem:[%s10140_s3 + $0x8] sm:$0xff] (!%p288_p2)   ;;  %v337_v29 = vld [vmem:[#allocation2] sm:$0x8] (!%p288_p2)  ;;  %v8624_v30 = vld [vmem:[%s10140_s3 + $0x10] sm:$0xff] (!%p288_p2)  }
   0xa   : > { %7886 = vmatprep.subr.bf16.mxu1 (!%p288_p2), %v8623_v11  ;;  %v338_v31 = vsel (!%p288_p2), %vm8853_vm4, 0, %v337_v29  ;;  %vm8863_vm5 = vmand (!%p288_p2), %vm391_vm2, %vm392_vm3  ;;  %v394_v33 = vld [vmem:[#allocation2 + $0x8] sm:$0x10] (!%p288_p2)  ;;  %v8625_v34 = vld [vmem:[%s10140_s3 + $0xd0] sm:$0xff] (!%p288_p2)  }
   0xb   : > { %7695 = vmatpush3.bf16.msra.mxu0 (!%p288_p2), %v8597_v1  ;;  %339 = vst [vmem:[#allocation2] sm:$0x8] (!%p288_p2), %v338_v31  ;;  %v395_v35 = vsel (!%p288_p2), %vm8863_vm5, 0, %v394_v33  ;;  %v8626_v36 = vld [vmem:[%s10140_s3 + $0x18] sm:$0xff] (!%p288_p2)   ;;  %v8628_v38 = vld [vmem:[%s10140_s3 + $0x20] sm:$0xff] (!%p288_p2)   ;;  %vm8882_vm8 = vmand (!%p288_p2), %vm448_vm6, %vm335_vm1 }
   0xc   : > { %7696 = vmatprep.subr.bf16.mxu0 (!%p288_p2), %v8598_v2  ;;  %396 = vst [vmem:[#allocation2 + $0x8] sm:$0x10] (!%p288_p2), %v395_v35  ;;  %v8627_v37 = vld [vmem:[%s10140_s3 + $0xd8] sm:$0xff] (!%p288_p2)   ;;  %v8629_v41 = vld [vmem:[%s10140_s3 + $0xe0] sm:$0xff] (!%p288_p2)   ;;  %vm8892_vm9 = vmand (!%p288_p2), %vm453_vm7, %vm392_vm3 }
   0xd   : > { %s10156_s10 = smov (!%p323_p3, %s6988_s10), 1  ;;  %7887 = vmatpush3.bf16.msra.mxu1 %v8623_v11  ;;  %v340_v46 = vld [vmem:[#allocation2 + $0x10] sm:$0x8]  ;;  %v8630_v48 = vld [vmem:[%s10140_s3 + $0x28] sm:$0xff]   ;;  %v343_v50 = vld [vmem:[#allocation2 + $0x20] sm:$0x8] }
   0xe   : > { %s7275_s17 = sshll.u32 %s10156_s10, 7  ;;  %7888 = vmatprep.subr.bf16.mxu1 %v8625_v34  ;;  %v341_v47 = vsel %vm8853_vm4, 0, %v340_v46  ;;  %v8631_v49 = vld [vmem:[%s10140_s3 + $0xe8] sm:$0xff]   ;;  %v344_v51 = vsel %vm8853_vm4, 0, %v343_v50  ;;  %v8632_v52 = vld [vmem:[%s10140_s3 + $0x30] sm:$0xff]   ;;  %v8634_v60 = vld [vmem:[%s10140_s3 + $0x38] sm:$0xff]  }
   0xf   : > { %s8807_s20 = scalar_lea.vmem %s10137_s0, %s7275_s17  ;;  %7697 = vmatpush3.bf16.msra.mxu0 %v8598_v2  ;;  %342 = vst [vmem:[#allocation2 + $0x10] sm:$0x8] %v341_v47  ;;  %345 = vst [vmem:[#allocation2 + $0x20] sm:$0x8] %v344_v51  ;;  %v8633_v53 = vld [vmem:[%s10140_s3 + $0xf0] sm:$0xff]   ;;  %v8635_v63 = vld [vmem:[%s10140_s3 + $0xf8] sm:$0xff]   ;;  %s10060_s29 = scalar_lea.vmem %s10146_s9, %s7275_s17 }
  0x10   : > { %v8604_v4 = vld [vmem:[%s8807_s20] sm:$0xff]   ;;  %7698 = vmatprep.subr.bf16.mxu0 %v8599_v3  ;;  %v8605_v12 = vld [vmem:[%s8807_s20 + $0x8] sm:$0xff]   ;;  %v8606_v13 = vld [vmem:[%s8807_s20 + $0x10] sm:$0xff]  }
  0x11   : > { %7708 = vmatprep.mubr.bf16.mxu0 %v8604_v4  ;;  %v8607_v15 = vld [vmem:[%s8807_s20 + $0x18] sm:$0xff]   ;;  %v8608_v16 = vld [vmem:[%s8807_s20 + $0x20] sm:$0xff]   ;;  %v8609_v17 = vld [vmem:[%s8807_s20 + $0x28] sm:$0xff]   ;;  %7889 = vmatpush3.bf16.msra.mxu1 %v8625_v34 }
  0x12   : > { %v8610_v18 = vld [vmem:[%s8807_s20 + $0x30] sm:$0xff]   ;;  %v8611_v19 = vld [vmem:[%s8807_s20 + $0x38] sm:$0xff]   ;;  %v8612_v20 = vld [vmem:[%s8807_s20 + $0x40] sm:$0xff]   ;;  %7890 = vmatprep.subr.bf16.mxu1 %v8627_v37 }
  0x13   : > { %7699 = vmatpush3.bf16.msra.mxu0 %v8599_v3  ;;  %v8613_v21 = vld [vmem:[%s8807_s20 + $0x48] sm:$0xff]   ;;  %v8614_v22 = vld [vmem:[%s8807_s20 + $0x50] sm:$0xff]   ;;  %v8615_v23 = vld [vmem:[%s8807_s20 + $0x58] sm:$0xff]  }
  0x14   : > { %7700 = vmatprep.subr.bf16.mxu0 %v8600_v5  ;;  %v8616_v24 = vld [vmem:[%s8807_s20 + $0x60] sm:$0xff]   ;;  %v8617_v25 = vld [vmem:[%s8807_s20 + $0x68] sm:$0xff]   ;;  %v8618_v26 = vld [vmem:[%s8807_s20 + $0x70] sm:$0xff]  }
  0x15   : > { %v8619_v27 = vld [vmem:[%s8807_s20 + $0x78] sm:$0xff]   ;;  %7891 = vmatpush3.bf16.msra.mxu1 %v8627_v37  ;;  %v450_v40 = vld [vmem:[#allocation2] sm:$0xf8]  ;;  %v455_v44 = vld [vmem:[#allocation2 + $0x8] sm:$0x1f] }
  0x16   : > { %v451_v42 = vsel %vm8882_vm8, 0, %v450_v40  ;;  %v456_v45 = vsel %vm8892_vm9, 0, %v455_v44  ;;  %7892 = vmatprep.subr.bf16.mxu1 %v8629_v41  ;;  %v8928_v9 = vld [vmem:[%s10140_s3 + $0x100] sm:$0xff]   ;;  %v352_v11 = vld [vmem:[#allocation2 + $0x50] sm:$0x8]  ;;  %v8683_v32 = vld [vmem:[%s10140_s3 + $0x1f8] sm:$0xff]  }
  0x17   : > { %7701 = vmatpush3.bf16.msra.mxu0 %v8600_v5  ;;  %452 = vst [vmem:[#allocation2] sm:$0xf8] %v451_v42  ;;  %457 = vst [vmem:[#allocation2 + $0x8] sm:$0x1f] %v456_v45  ;;  %v349_v5 = vld [vmem:[#allocation2 + $0x40] sm:$0x8] }
  0x18   : > { %7702 = vmatprep.subr.bf16.mxu0 %v8601_v6  ;;  %v376_v29 = vld [vmem:[#allocation2 + $0xd0] sm:$0x8]  ;;  %v385_v33 = vld [vmem:[#allocation2 + $0x100] sm:$0x8]  ;;  %v397_v37 = vld [vmem:[#allocation2 + $0x18] sm:$0x10] }
  0x19   : > { %7893 = vmatpush3.bf16.msra.mxu1 %v8629_v41  ;;  %v377_v31 = vsel %vm8853_vm4, 0, %v376_v29  ;;  %v382_v34 = vld [vmem:[#allocation2 + $0xf0] sm:$0x8]  ;;  %v386_v35 = vsel %vm8853_vm4, 0, %v385_v33  ;;  %v8966_v40 = vld [vmem:[%s10139_s2] ss:$0 sm:$0xff] }
  0x1a   : > { %7894 = vmatprep.subr.bf16.mxu1 %v8631_v49  ;;  %378 = vst [vmem:[#allocation2 + $0xd0] sm:$0x8] %v377_v31  ;;  %387 = vst [vmem:[#allocation2 + $0x100] sm:$0x8] %v386_v35 }
  0x1b   : > { %7703 = vmatpush3.bf16.msra.mxu0 %v8601_v6  ;;  %v346_v6 = vld [vmem:[#allocation2 + $0x30] sm:$0x8] }
  0x1c   : > { %7704 = vmatprep.subr.bf16.mxu0 %v8602_v7 }
  0x1d   : > { %7895 = vmatpush3.bf16.msra.mxu1 %v8631_v49 }
  0x1e   : > { %v954_v54 = vld [vmem:[#allocation2] sm:$0xf8]  ;;  %v955_v55 = vld [vmem:[#allocation2 + $0x8] sm:$0xf]  ;;  %7896 = vmatprep.subr.bf16.mxu1 %v8633_v53 }
  0x1f   : > { %7705 = vmatpush3.bf16.msra.mxu0 %v8602_v7  ;;  %v987_v56 = vshrl.u32 %v954_v54, 16  ;;  %v990_v57 = vshll.u32 %v954_v54, 16  ;;  %v995_v58 = vshrl.u32 %v955_v55, 16  ;;  %v998_v59 = vshll.u32 %v955_v55, 16 }
  0x20   : > { %7706 = vmatprep.subr.bf16.mxu0 %v8603_v8  ;;  %v350_v7 = vsel %vm8853_vm4, 0, %v349_v5 }
  0x21   : > { %7897 = vmatpush3.bf16.msra.mxu1 %v8633_v53  ;;  %v989_v61 = vrot.slane %v987_v56, 3  ;;  %v992_v62 = vrot.slane %v990_v57, 4  ;;  %v997_v0 = vrot.slane %v995_v58, 3  ;;  %v1000_v1 = vrot.slane %v998_v59, 4  ;;  %351 = vst [vmem:[#allocation2 + $0x40] sm:$0x8] %v350_v7 }
  0x22   : > { %7898 = vmatprep.subr.bf16.mxu1 %v8635_v63 }
  0x23   : > { %7707 = vmatpush3.bf16.msra.mxu0 %v8603_v8  ;;  %v993_v2 = vor.u32 %v992_v62, %v989_v61  ;;  %v1001_v3 = vor.u32 %v1000_v1, %v997_v0  ;;  %v347_v8 = vsel %vm8853_vm4, 0, %v346_v6 }
  0x24   : > { %7740 = vmatprep.subr.bf16.mxu0 %v8620_v10  ;;  %348 = vst [vmem:[#allocation2 + $0x30] sm:$0x8] %v347_v8 }
  0x25   : > { %7899 = vmatpush3.bf16.msra.mxu1 %v8635_v63  ;;  %v1002_v4 = vsel %vm392_vm3, %v993_v2, %v1001_v3  ;;  %v1531_v2 = vld [vmem:[#allocation2] sm:$0xf0]  ;;  %v1532_v3 = vld [vmem:[#allocation2 + $0x8] sm:$0xf] }
  0x26   : > { %7709 = vmatmul.mubr.bf16.vlgmr.msra.gmra.mrb[0].mxu0 %v8605_v12  ;;  %7932 = vmatprep.subr.bf16.mxu1 %v8928_v9 }
  0x27   : > { %7712 = vmatprep.mubr.bf16.mxu0 %v8606_v13  ;;  %7741 = vmatpush3.bf16.msra.mxu0 %v8620_v10  ;;  %v355_v10 = vld [vmem:[#allocation2 + $0x60] sm:$0x8]  ;;  %v353_v13 = vsel %vm8853_vm4, 0, %v352_v11 }
  0x28   : > { %7742 = vmatprep.subr.bf16.mxu0 %v8622_v14  ;;  %v356_v12 = vsel %vm8853_vm4, 0, %v355_v10  ;;  %354 = vst [vmem:[#allocation2 + $0x50] sm:$0x8] %v353_v13  ;;  %v1597_v13 = vrot.slane %v1532_v3, 4 }
  0x29   : > { %357 = vst [vmem:[#allocation2 + $0x60] sm:$0x8] %v356_v12  ;;  %v1596_v12 = vrot.slane %v1531_v2, 4 }
  0x2b   : > { %7743 = vmatpush3.bf16.msra.mxu0 %v8622_v14  ;;  %v361_v14 = vld [vmem:[#allocation2 + $0x80] sm:$0x8]  ;;  %v8982_v29 = vsel %vm1595_vm10, %v1596_v12, %v1597_v13 }
  0x2c   : > { %7744 = vmatprep.subr.bf16.mxu0 %v8624_v30 }
  0x2e   : > { %7713 = vmatmul.mubr.bf16.gmra.mrb[4].mxu0 %v8607_v15  ;;  %v358_v15 = vld [vmem:[#allocation2 + $0x70] sm:$0x8] }
  0x2f   : > { %7716 = vmatprep.mubr.bf16.mxu0 %v8608_v16  ;;  %7745 = vmatpush3.bf16.msra.mxu0 %v8624_v30  ;;  %v362_v16 = vsel %vm8853_vm4, 0, %v361_v14 }
  0x30   : > { %7746 = vmatprep.subr.bf16.mxu0 %v8626_v36  ;;  %363 = vst [vmem:[#allocation2 + $0x80] sm:$0x8] %v362_v16 }
  0x33   : > { %7747 = vmatpush3.bf16.msra.mxu0 %v8626_v36  ;;  %v383_v36 = vsel %vm8853_vm4, 0, %v382_v34 }
  0x34   : > { %7748 = vmatprep.subr.bf16.mxu0 %v8628_v38  ;;  %384 = vst [vmem:[#allocation2 + $0xf0] sm:$0x8] %v383_v36 }
  0x36   : > { %7717 = vmatmul.mubr.bf16.gmra.mrb[8].mxu0 %v8609_v17  ;;  %v359_v17 = vsel %vm8853_vm4, 0, %v358_v15 }
  0x37   : > { %7720 = vmatprep.mubr.bf16.mxu0 %v8610_v18  ;;  %7749 = vmatpush3.bf16.msra.mxu0 %v8628_v38  ;;  %360 = vst [vmem:[#allocation2 + $0x70] sm:$0x8] %v359_v17  ;;  %v367_v18 = vld [vmem:[#allocation2 + $0xa0] sm:$0x8]  ;;  %v398_v38 = vsel %vm8863_vm5, 0, %v397_v37 }
  0x38   : > { %7750 = vmatprep.subr.bf16.mxu0 %v8630_v48  ;;  %399 = vst [vmem:[#allocation2 + $0x18] sm:$0x10] %v398_v38 }
  0x3b   : > { %7751 = vmatpush3.bf16.msra.mxu0 %v8630_v48 }
  0x3c   : > { %7752 = vmatprep.subr.bf16.mxu0 %v8632_v52 }
  0x3e   : > { %7721 = vmatmul.mubr.bf16.gmra.mrb[12].mxu0 %v8611_v19  ;;  %v364_v19 = vld [vmem:[#allocation2 + $0x90] sm:$0x8] }
  0x3f   : > { %7724 = vmatprep.mubr.bf16.mxu0 %v8612_v20  ;;  %7753 = vmatpush3.bf16.msra.mxu0 %v8632_v52  ;;  %v368_v20 = vsel %vm8853_vm4, 0, %v367_v18 }
  0x40   : > { %7754 = vmatprep.subr.bf16.mxu0 %v8634_v60  ;;  %369 = vst [vmem:[#allocation2 + $0xa0] sm:$0x8] %v368_v20 }
  0x43   : > { %7755 = vmatpush3.bf16.msra.mxu0 %v8634_v60 }
  0x46   : > { %7725 = vmatmul.mubr.bf16.gmra.mrb[16].mxu0 %v8613_v21  ;;  %v365_v21 = vsel %vm8853_vm4, 0, %v364_v19 }
  0x47   : > { %7728 = vmatprep.mubr.bf16.mxu0 %v8614_v22  ;;  %366 = vst [vmem:[#allocation2 + $0x90] sm:$0x8] %v365_v21  ;;  %v8946_v22 = vld [vmem:[%s10140_s3 + $0x40] sm:$0xff]  }
  0x48   : > { %7788 = vmatprep.subr.bf16.mxu0 %v8946_v22 }
  0x4e   : > { %7729 = vmatmul.mubr.bf16.gmra.mrb[20].mxu0 %v8615_v23  ;;  %v373_v23 = vld [vmem:[#allocation2 + $0xc0] sm:$0x8] }
  0x4f   : > { %7732 = vmatprep.mubr.bf16.mxu0 %v8616_v24  ;;  %v370_v24 = vld [vmem:[#allocation2 + $0xb0] sm:$0x8] }
  0x56   : > { %7733 = vmatmul.mubr.bf16.gmra.mrb[24].mxu0 %v8617_v25  ;;  %v374_v25 = vsel %vm8853_vm4, 0, %v373_v23 }
  0x57   : > { %7736 = vmatprep.mubr.bf16.mxu0 %v8618_v26  ;;  %v371_v26 = vsel %vm8853_vm4, 0, %v370_v24  ;;  %375 = vst [vmem:[#allocation2 + $0xc0] sm:$0x8] %v374_v25 }
  0x58   : > { %372 = vst [vmem:[#allocation2 + $0xb0] sm:$0x8] %v371_v26 }
  0x5e   : > { %7737 = vmatmul.mubr.bf16.gmra.mrb[28].mxu0 %v8619_v27  ;;  %v379_v27 = vld [vmem:[#allocation2 + $0xe0] sm:$0x8] }
  0x5f   : > { %7756 = vmatprep.mubr.bf16.mxu0 %v1002_v4  ;;  %v380_v30 = vsel %vm8853_vm4, 0, %v379_v27  ;;  %v400_v4 = vld [vmem:[#allocation2 + $0x28] sm:$0x10] }
  0x60   : > { %381 = vst [vmem:[#allocation2 + $0xe0] sm:$0x8] %v380_v30  ;;  %v401_v7 = vsel %vm8863_vm5, 0, %v400_v4 }
  0x61   : > { %402 = vst [vmem:[#allocation2 + $0x28] sm:$0x10] %v401_v7 }
  0xf9   : > { %v7710_v41 = vpop.f32.mrb[0].mxu0 }
  0xfa   : > { %v707_v42 = vadd.f32 %v7710_v41, %v8966_v40  ;;  %v698_v44 = vpop.f32.mrb[1].mxu0 }
  0xfb   : > { %v699_v45 = vadd.f32 %v8966_v40, %v698_v44  ;;  %v7711_v46 = vpop.f32.mrb[2].mxu0 }
  0xfc   : > { %v710_v47 = vadd.f32 %v7711_v46, %v8966_v40  ;;  %v701_v48 = vpop.f32.mrb[3].mxu0  ;;  %v827_v50 = vmax.f32 %v707_v42, 0.0 }
  0xfd   : > { %v702_v49 = vadd.f32 %v8966_v40, %v701_v48  ;;  %v825_v52 = vmax.f32 %v699_v45, 0.0 }
  0xfe   : > { %v828_v51 = vmax.f32 %v710_v47, 0.0 }
  0xff   : > { %v826_v53 = vmax.f32 %v702_v49, 0.0 }
 0x100   : > { %v858_v54 = vpack.c.bf16 %v828_v51, %v827_v50 }
 0x101   : > { %v857_v55 = vpack.c.bf16 %v826_v53, %v825_v52  ;;  %v7714_v56 = vpop.f32.mrb[4].mxu0 }
 0x102   : > { %v890_v57 = vrot.slane %v858_v54, 4  ;;  %v723_v58 = vadd.f32 %v7714_v56, %v8966_v40  ;;  %v714_v59 = vpop.f32.mrb[5].mxu0 }
 0x103   : > { %v889_v60 = vrot.slane %v857_v55, 4  ;;  %v715_v61 = vadd.f32 %v8966_v40, %v714_v59  ;;  %v7715_v62 = vpop.f32.mrb[6].mxu0 }
 0x104   : > { %924 = vst [vmem:[#allocation2 + $0x28] ss:$-4 sps:$4 sm:$0xff] %v890_v57   ;;  %v726_v63 = vadd.f32 %v7715_v62, %v8966_v40  ;;  %v717_v0 = vpop.f32.mrb[7].mxu0  ;;  %v831_v5 = vmax.f32 %v723_v58, 0.0 }
 0x105   : > { %922 = vst [vmem:[#allocation2 + $0x18] ss:$-4 sps:$4 sm:$0xff] %v889_v60   ;;  %v718_v1 = vadd.f32 %v8966_v40, %v717_v0  ;;  %v829_v8 = vmax.f32 %v715_v61, 0.0 }
 0x106   : > { %v832_v6 = vmax.f32 %v726_v63, 0.0 }
 0x107   : > { %v830_v10 = vmax.f32 %v718_v1, 0.0 }
 0x108   : > { %v860_v11 = vpack.c.bf16 %v832_v6, %v831_v5  ;;  %v8642_v5 = vld [vmem:[%s10140_s3 + $0x48] sm:$0xff]  }
 0x109   : > { %v859_v14 = vpack.c.bf16 %v830_v10, %v829_v8  ;;  %v7718_v15 = vpop.f32.mrb[8].mxu0 }
 0x10a   : > { %v892_v16 = vrot.slane %v860_v11, 4  ;;  %v739_v17 = vadd.f32 %v7718_v15, %v8966_v40  ;;  %v730_v18 = vpop.f32.mrb[9].mxu0 }
 0x10b   : > { %v891_v19 = vrot.slane %v859_v14, 4  ;;  %v731_v20 = vadd.f32 %v8966_v40, %v730_v18  ;;  %v7719_v21 = vpop.f32.mrb[10].mxu0  ;;  %v958_v62 = vld [vmem:[#allocation2 + $0x20] sm:$0xf8]  ;;  %v959_v4 = vld [vmem:[#allocation2 + $0x28] sm:$0xf] }
 0x10c   : > { %928 = vst [vmem:[#allocation2 + $0x48] ss:$-4 sps:$4 sm:$0xff] %v892_v16   ;;  %v835_v23 = vmax.f32 %v739_v17, 0.0  ;;  %v742_v24 = vadd.f32 %v7719_v21, %v8966_v40  ;;  %v733_v25 = vpop.f32.mrb[11].mxu0  ;;  %v956_v26 = vld [vmem:[#allocation2 + $0x10] sm:$0xf8] }
 0x10d   : > { %v957_v27 = vld [vmem:[#allocation2 + $0x18] sm:$0xf]  ;;  %926 = vst [vmem:[#allocation2 + $0x38] ss:$-4 sps:$4 sm:$0xff] %v891_v19   ;;  %v833_v30 = vmax.f32 %v731_v20, 0.0  ;;  %v734_v31 = vadd.f32 %v8966_v40, %v733_v25  ;;  %v1004_v33 = vshrl.u32 %v956_v26, 16 }
 0x10e   : > { %v1007_v34 = vshll.u32 %v956_v26, 16  ;;  %v2625_v35 = vld [vmem:[#allocation2 + $0x10] sm:$0xf8]  ;;  %v836_v36 = vmax.f32 %v742_v24, 0.0  ;;  %v1012_v37 = vshrl.u32 %v957_v27, 16  ;;  %v1015_v38 = vshll.u32 %v957_v27, 16 }
 0x10f   : > { %v2626_v41 = vld [vmem:[#allocation2 + $0x18] sm:$0xf]  ;;  %v2658_v42 = vshrl.u32 %v2625_v35, 16  ;;  %v834_v44 = vmax.f32 %v734_v31, 0.0  ;;  %v1006_v45 = vrot.slane %v1004_v33, 3  ;;  %v2661_v47 = vshll.u32 %v2625_v35, 16 }
 0x110   : > { %v1009_v46 = vrot.slane %v1007_v34, 4  ;;  %v862_v48 = vpack.c.bf16 %v836_v36, %v835_v23  ;;  %v1014_v49 = vrot.slane %v1012_v37, 3  ;;  %v1017_v50 = vrot.slane %v1015_v38, 4  ;;  %v2627_v12 = vld [vmem:[#allocation2 + $0x20] sm:$0xf8]  ;;  %v8643_v21 = vld [vmem:[%s10140_s3 + $0x50] sm:$0xff]  }
 0x111   : > { %v2660_v51 = vrot.slane %v2658_v42, 3  ;;  %v861_v52 = vpack.c.bf16 %v834_v44, %v833_v30  ;;  %v7722_v53 = vpop.f32.mrb[12].mxu0  ;;  %v2663_v55 = vrot.slane %v2661_v47, 4  ;;  %v2666_v56 = vshrl.u32 %v2626_v41, 16  ;;  %v2628_v26 = vld [vmem:[#allocation2 + $0x28] sm:$0xf] }
 0x112   : > { %v1010_v54 = vor.u32 %v1009_v46, %v1006_v45  ;;  %v894_v57 = vrot.slane %v862_v48, 4  ;;  %v755_v58 = vadd.f32 %v7722_v53, %v8966_v40  ;;  %v746_v59 = vpop.f32.mrb[13].mxu0  ;;  %v1018_v60 = vor.u32 %v1017_v50, %v1014_v49 }
 0x113   : > { %v2669_v61 = vshll.u32 %v2626_v41, 16  ;;  %v893_v63 = vrot.slane %v861_v52, 4  ;;  %v747_v0 = vadd.f32 %v8966_v40, %v746_v59  ;;  %v7723_v1 = vpop.f32.mrb[14].mxu0  ;;  %v2664_v2 = vor.u32 %v2663_v55, %v2660_v51 }
 0x114   : > { %v2668_v3 = vrot.slane %v2666_v56, 3  ;;  %932 = vst [vmem:[#allocation2 + $0x68] ss:$-4 sps:$4 sm:$0xff] %v894_v57   ;;  %v839_v6 = vmax.f32 %v755_v58, 0.0  ;;  %v758_v7 = vadd.f32 %v7723_v1, %v8966_v40  ;;  %v749_v8 = vpop.f32.mrb[15].mxu0  ;;  %v1019_v10 = vsel %vm392_vm3, %v1010_v54, %v1018_v60  ;;  %v8645_v54 = vld [vmem:[%s10140_s3 + $0x58] sm:$0xff]  }
 0x115   : > { %v2671_v11 = vrot.slane %v2669_v61, 4  ;;  %930 = vst [vmem:[#allocation2 + $0x58] ss:$-4 sps:$4 sm:$0xff] %v893_v63   ;;  %v837_v13 = vmax.f32 %v747_v0, 0.0  ;;  %v750_v14 = vadd.f32 %v8966_v40, %v749_v8  ;;  %7757 = vmatmul.mubr.bf16.vlgmr.msra.gmra.mrb[32].mxu0 %v1019_v10  ;;  %v1021_v15 = vshrl.u32 %v958_v62, 16 }
 0x116   : > { %v1024_v16 = vshll.u32 %v958_v62, 16  ;;  %v840_v17 = vmax.f32 %v758_v7, 0.0  ;;  %v1029_v19 = vshrl.u32 %v959_v4, 16  ;;  %v1032_v20 = vshll.u32 %v959_v4, 16  ;;  %7789 = vmatpush3.bf16.msra.mxu0 %v8946_v22  ;;  %v960_v47 = vld [vmem:[#allocation2 + $0x30] sm:$0xf8] }
 0x117   : > { %v2672_v18 = vor.u32 %v2671_v11, %v2668_v3  ;;  %v838_v23 = vmax.f32 %v750_v14, 0.0  ;;  %v1023_v24 = vrot.slane %v1021_v15, 3  ;;  %v2675_v27 = vshrl.u32 %v2627_v12, 16  ;;  %7790 = vmatprep.subr.bf16.mxu0 %v8642_v5  ;;  %v961_v53 = vld [vmem:[#allocation2 + $0x38] sm:$0xf] }
 0x118   : > { %v1026_v25 = vrot.slane %v1024_v16, 4  ;;  %v864_v30 = vpack.c.bf16 %v840_v17, %v839_v6  ;;  %v1031_v33 = vrot.slane %v1029_v19, 3  ;;  %v1034_v34 = vrot.slane %v1032_v20, 4  ;;  %v2629_v60 = vld [vmem:[#allocation2 + $0x30] sm:$0xf8]  ;;  %v8646_v6 = vld [vmem:[%s10140_s3 + $0x60] sm:$0xff]  }
 0x119   : > { %v2673_v31 = vsel %vm392_vm3, %v2664_v2, %v2672_v18  ;;  %v863_v35 = vpack.c.bf16 %v838_v23, %v837_v13  ;;  %v2677_v37 = vrot.slane %v2675_v27, 3  ;;  %v2678_v22 = vshll.u32 %v2627_v12, 16  ;;  %v7726_v38 = vpop.f32.mrb[16].mxu0  ;;  %v2630_v11 = vld [vmem:[#allocation2 + $0x38] sm:$0xf] }
 0x11a   : > { %7900 = vmatprep.mubr.bf16.mxu1 %v2673_v31  ;;  %v1027_v36 = vor.u32 %v1026_v25, %v1023_v24  ;;  %v896_v41 = vrot.slane %v864_v30, 4  ;;  %v1035_v42 = vor.u32 %v1034_v34, %v1031_v33  ;;  %v2683_v44 = vshrl.u32 %v2628_v26, 16  ;;  %v762_v46 = vpop.f32.mrb[17].mxu0  ;;  %7791 = vmatpush3.bf16.msra.mxu0 %v8642_v5  ;;  %v8637_v5 = vld [vmem:[%s10140_s3 + $0x108] sm:$0xff]   ;;  %v962_v17 = vld [vmem:[#allocation2 + $0x40] sm:$0xf8] }
 0x11b   : > { %v2686_v45 = vshll.u32 %v2628_v26, 16  ;;  %v895_v48 = vrot.slane %v863_v35, 4  ;;  %v2680_v49 = vrot.slane %v2678_v22, 4  ;;  %v771_v50 = vadd.f32 %v7726_v38, %v8966_v40  ;;  %v7727_v52 = vpop.f32.mrb[18].mxu0  ;;  %7792 = vmatprep.subr.bf16.mxu0 %v8643_v21  ;;  %v963_v23 = vld [vmem:[#allocation2 + $0x48] sm:$0xf] }
 0x11c   : > { %v763_v51 = vadd.f32 %v8966_v40, %v762_v46  ;;  %936 = vst [vmem:[#allocation2 + $0x88] ss:$-4 sps:$4 sm:$0xff] %v896_v41   ;;  %v1036_v55 = vsel %vm392_vm3, %v1027_v36, %v1035_v42  ;;  %v2685_v56 = vrot.slane %v2683_v44, 3  ;;  %v774_v58 = vadd.f32 %v7727_v52, %v8966_v40  ;;  %v765_v59 = vpop.f32.mrb[19].mxu0  ;;  %v8638_v25 = vld [vmem:[%s10140_s3 + $0x110] sm:$0xff]  }
 0x11d   : > { %v2688_v57 = vrot.slane %v2686_v45, 4  ;;  %934 = vst [vmem:[#allocation2 + $0x78] ss:$-4 sps:$4 sm:$0xff] %v895_v48   ;;  %7760 = vmatprep.mubr.bf16.mxu0 %v1036_v55  ;;  %v2681_v61 = vor.u32 %v2680_v49, %v2677_v37  ;;  %v843_v62 = vmax.f32 %v771_v50, 0.0  ;;  %v766_v0 = vadd.f32 %v8966_v40, %v765_v59  ;;  %v2631_v33 = vld [vmem:[#allocation2 + $0x40] sm:$0xf8] }
 0x11e   : > { %v841_v63 = vmax.f32 %v763_v51, 0.0  ;;  %v844_v2 = vmax.f32 %v774_v58, 0.0  ;;  %v1038_v3 = vshrl.u32 %v960_v47, 16  ;;  %v1041_v4 = vshll.u32 %v960_v47, 16  ;;  %7793 = vmatpush3.bf16.msra.mxu0 %v8643_v21  ;;  %v2632_v38 = vld [vmem:[#allocation2 + $0x48] sm:$0xf] }
 0x11f   : > { %v2689_v1 = vor.u32 %v2688_v57, %v2685_v56  ;;  %v842_v7 = vmax.f32 %v766_v0, 0.0  ;;  %v1046_v8 = vshrl.u32 %v961_v53, 16  ;;  %v1049_v10 = vshll.u32 %v961_v53, 16  ;;  %7794 = vmatprep.subr.bf16.mxu0 %v8645_v54  ;;  %v8648_v47 = vld [vmem:[%s10140_s3 + $0x68] sm:$0xff]  }
 0x120   : > { %v2692_v12 = vshrl.u32 %v2629_v60, 16  ;;  %v866_v14 = vpack.c.bf16 %v844_v2, %v843_v62  ;;  %v1040_v15 = vrot.slane %v1038_v3, 3  ;;  %v1043_v16 = vrot.slane %v1041_v4, 4  ;;  %v8649_v2 = vld [vmem:[%s10140_s3 + $0x70] sm:$0xff]  }
 0x121   : > { %v2690_v13 = vsel %vm392_vm3, %v2681_v61, %v2689_v1  ;;  %v865_v18 = vpack.c.bf16 %v842_v7, %v841_v63  ;;  %v1048_v19 = vrot.slane %v1046_v8, 3  ;;  %v1051_v20 = vrot.slane %v1049_v10, 4  ;;  %v7730_v24 = vpop.f32.mrb[20].mxu0  ;;  %v964_v1 = vld [vmem:[#allocation2 + $0x50] sm:$0xf8] }
 0x122   : > { %7901 = vmatmul.mubr.bf16.vlgmr.msra.gmra.mrb[0].mxu1 %v2690_v13  ;;  %v2694_v21 = vrot.slane %v2692_v12, 3  ;;  %v898_v26 = vrot.slane %v866_v14, 4  ;;  %v1044_v27 = vor.u32 %v1043_v16, %v1040_v15  ;;  %v2695_v30 = vshll.u32 %v2629_v60, 16  ;;  %v778_v34 = vpop.f32.mrb[21].mxu0  ;;  %7795 = vmatpush3.bf16.msra.mxu0 %v8645_v54  ;;  %v8639_v60 = vld [vmem:[%s10140_s3 + $0x118] sm:$0xff]  }
 0x123   : > { %7933 = vmatpush3.bf16.msra.mxu1 %v8928_v9  ;;  %v2700_v31 = vshrl.u32 %v2630_v11, 16  ;;  %v897_v35 = vrot.slane %v865_v18, 4  ;;  %v1052_v36 = vor.u32 %v1051_v20, %v1048_v19  ;;  %v2703_v37 = vshll.u32 %v2630_v11, 16  ;;  %v7731_v41 = vpop.f32.mrb[22].mxu0  ;;  %7796 = vmatprep.subr.bf16.mxu0 %v8646_v6  ;;  %v965_v13 = vld [vmem:[#allocation2 + $0x58] sm:$0xf] }
 0x124   : > { %7934 = vmatprep.subr.bf16.mxu1 %v8637_v5  ;;  %v1055_v22 = vshrl.u32 %v962_v17, 16  ;;  %940 = vst [vmem:[#allocation2 + $0xa8] ss:$-4 sps:$4 sm:$0xff] %v898_v26   ;;  %v2697_v42 = vrot.slane %v2695_v30, 4  ;;  %v1058_v45 = vshll.u32 %v962_v17, 16  ;;  %v1063_v9 = vshrl.u32 %v963_v23, 16 }
 0x125   : > { %v2702_v44 = vrot.slane %v2700_v31, 3  ;;  %v781_v46 = vpop.f32.mrb[23].mxu0  ;;  %938 = vst [vmem:[#allocation2 + $0x98] ss:$-4 sps:$4 sm:$0xff] %v897_v35   ;;  %v1053_v48 = vsel %vm392_vm3, %v1044_v27, %v1052_v36  ;;  %v2705_v49 = vrot.slane %v2703_v37, 4  ;;  %v1066_v51 = vshll.u32 %v963_v23, 16 }
 0x126   : > { %v1057_v50 = vrot.slane %v1055_v22, 3  ;;  %7761 = vmatmul.mubr.bf16.gmra.mrb[36].mxu0 %v1053_v48  ;;  %v2698_v52 = vor.u32 %v2697_v42, %v2694_v21  ;;  %v1060_v53 = vrot.slane %v1058_v45, 4  ;;  %v1065_v54 = vrot.slane %v1063_v9, 3  ;;  %v2633_v19 = vld [vmem:[#allocation2 + $0x50] sm:$0xf8]  ;;  %v8641_v21 = vld [vmem:[%s10140_s3 + $0x120] sm:$0xff]  }
 0x127   : > { %v2709_v55 = vshrl.u32 %v2631_v33, 16  ;;  %7935 = vmatpush3.bf16.msra.mxu1 %v8637_v5  ;;  %v2706_v56 = vor.u32 %v2705_v49, %v2702_v44  ;;  %v1068_v57 = vrot.slane %v1066_v51, 4  ;;  %v2712_v58 = vshll.u32 %v2631_v33, 16  ;;  %7797 = vmatpush3.bf16.msra.mxu0 %v8646_v6  ;;  %v8651_v30 = vld [vmem:[%s10140_s3 + $0x78] sm:$0xff]   ;;  %v966_v42 = vld [vmem:[#allocation2 + $0x60] sm:$0xf8] }
 0x128   : > { %v2717_v59 = vshrl.u32 %v2632_v38, 16  ;;  %7936 = vmatprep.subr.bf16.mxu1 %v8638_v25  ;;  %v1061_v61 = vor.u32 %v1060_v53, %v1057_v50  ;;  %v2720_v63 = vshll.u32 %v2632_v38, 16  ;;  %v787_v0 = vadd.f32 %v7730_v24, %v8966_v40  ;;  %7798 = vmatprep.subr.bf16.mxu0 %v8648_v47  ;;  %v2634_v36 = vld [vmem:[#allocation2 + $0x58] sm:$0xf]  ;;  %v8644_v48 = vld [vmem:[%s10140_s3 + $0x128] sm:$0xff]  }
 0x129   : > { %v2711_v62 = vrot.slane %v2709_v55, 3  ;;  %v2707_v3 = vsel %vm392_vm3, %v2698_v52, %v2706_v56  ;;  %v1069_v4 = vor.u32 %v1068_v57, %v1065_v54  ;;  %v2714_v5 = vrot.slane %v2712_v58, 4  ;;  %v9029_v8 = vpop.f32.mrb[24].mxu0  ;;  %v2635_v53 = vld [vmem:[#allocation2 + $0x60] sm:$0xf8] }
 0x12a   : > { %v2719_v7 = vrot.slane %v2717_v59, 3  ;;  %7904 = vmatprep.mubr.bf16.mxu1 %v2707_v3  ;;  %v2722_v6 = vrot.slane %v2720_v63, 4  ;;  %v847_v10 = vmax.f32 %v787_v0, 0.0  ;;  %v779_v11 = vadd.f32 %v8966_v40, %v778_v34  ;;  %v9033_v14 = vpop.f32.mrb[25].mxu0  ;;  %v2636_v58 = vld [vmem:[#allocation2 + $0x68] sm:$0xf] }
 0x12b   : > { %v790_v12 = vadd.f32 %v7731_v41, %v8966_v40  ;;  %7937 = vmatpush3.bf16.msra.mxu1 %v8638_v25  ;;  %v1070_v15 = vsel %vm392_vm3, %v1061_v61, %v1069_v4  ;;  %v2715_v16 = vor.u32 %v2714_v5, %v2711_v62  ;;  %v782_v17 = vadd.f32 %v8966_v40, %v781_v46  ;;  %v9037_v20 = vpop.f32.mrb[26].mxu0 }
 0x12c   : > { %v1072_v18 = vshrl.u32 %v964_v1, 16  ;;  %7938 = vmatprep.subr.bf16.mxu1 %v8639_v60  ;;  %7799 = vmatpush3.bf16.msra.mxu0 %v8648_v47  ;;  %v2723_v23 = vor.u32 %v2722_v6, %v2719_v7  ;;  %v845_v24 = vmax.f32 %v779_v11, 0.0  ;;  %v1075_v26 = vshll.u32 %v964_v1, 16  ;;  %v9042_v27 = vpop.f32.mrb[27].mxu0  ;;  %v967_v47 = vld [vmem:[#allocation2 + $0x68] sm:$0xf] }
 0x12d   : > { %7764 = vmatprep.mubr.bf16.mxu0 %v1070_v15  ;;  %v848_v25 = vmax.f32 %v790_v12, 0.0  ;;  %7800 = vmatprep.subr.bf16.mxu0 %v8649_v2  ;;  %v846_v31 = vmax.f32 %v782_v17, 0.0  ;;  %v1080_v34 = vshrl.u32 %v965_v13, 16  ;;  %v1083_v35 = vshll.u32 %v965_v13, 16  ;;  %v9058_v1 = vld [vmem:[%s10140_s3 + $0x80] sm:$0xff]   ;;  %v8647_v6 = vld [vmem:[%s10140_s3 + $0x130] sm:$0xff]  }
 0x12e   : > { %v1074_v33 = vrot.slane %v1072_v18, 3  ;;  %v2724_v37 = vsel %vm392_vm3, %v2715_v16, %v2723_v23  ;;  %v1077_v38 = vrot.slane %v1075_v26, 4  ;;  %v2726_v41 = vshrl.u32 %v2633_v19, 16  ;;  %v968_v26 = vld [vmem:[#allocation2 + $0x70] sm:$0xf8] }
 0x12f   : > { %v868_v22 = vpack.c.bf16 %v848_v25, %v847_v10  ;;  %7939 = vmatpush3.bf16.msra.mxu1 %v8639_v60  ;;  %v867_v44 = vpack.c.bf16 %v846_v31, %v845_v24  ;;  %v1082_v45 = vrot.slane %v1080_v34, 3  ;;  %v1085_v9 = vrot.slane %v1083_v35, 4 }
 0x130   : > { %7905 = vmatmul.mubr.bf16.gmra.mrb[4].mxu1 %v2724_v37  ;;  %v2729_v46 = vshll.u32 %v2633_v19, 16  ;;  %7940 = vmatprep.subr.bf16.mxu1 %v8641_v21  ;;  %v1078_v50 = vor.u32 %v1077_v38, %v1074_v33  ;;  %v2728_v51 = vrot.slane %v2726_v41, 3  ;;  %v2734_v52 = vshrl.u32 %v2634_v36, 16  ;;  %v969_v38 = vld [vmem:[#allocation2 + $0x78] sm:$0xf] }
 0x131   : > { %v900_v49 = vrot.slane %v868_v22, 4  ;;  %7801 = vmatpush3.bf16.msra.mxu0 %v8649_v2  ;;  %v899_v54 = vrot.slane %v867_v44, 4  ;;  %v1086_v55 = vor.u32 %v1085_v9, %v1082_v45  ;;  %v2737_v57 = vshll.u32 %v2634_v36, 16  ;;  %v9051_v59 = vpop.f32.mrb[28].mxu0  ;;  %v2637_v9 = vld [vmem:[#allocation2 + $0x70] sm:$0xf8] }
 0x132   : > { %v2731_v56 = vrot.slane %v2729_v46, 4  ;;  %7802 = vmatprep.subr.bf16.mxu0 %v8651_v30  ;;  %v2736_v60 = vrot.slane %v2734_v52, 3  ;;  %v1089_v61 = vshrl.u32 %v966_v42, 16  ;;  %v1092_v62 = vshll.u32 %v966_v42, 16  ;;  %v9053_v0 = vpop.f32.mrb[29].mxu0 }
 0x133   : > { %944 = vst [vmem:[#allocation2 + $0xc8] ss:$-4 sps:$4 sm:$0xff] %v900_v49   ;;  %v1097_v63 = vshrl.u32 %v967_v47, 16  ;;  %7941 = vmatpush3.bf16.msra.mxu1 %v8641_v21  ;;  %942 = vst [vmem:[#allocation2 + $0xb8] ss:$-4 sps:$4 sm:$0xff] %v899_v54   ;;  %v1087_v2 = vsel %vm392_vm3, %v1078_v50, %v1086_v55  ;;  %v2739_v4 = vrot.slane %v2737_v57, 4  ;;  %v803_v25 = vadd.f32 %v9029_v8, %v8966_v40 }
 0x134   : > { %v2732_v3 = vor.u32 %v2731_v56, %v2728_v51  ;;  %v1100_v5 = vshll.u32 %v967_v47, 16  ;;  %v9061_v7 = vpop.f32.mrb[30].mxu0  ;;  %7942 = vmatprep.subr.bf16.mxu1 %v8644_v48  ;;  %7765 = vmatmul.mubr.bf16.gmra.mrb[40].mxu0 %v1087_v2  ;;  %v1091_v10 = vrot.slane %v1089_v61, 3  ;;  %v1094_v11 = vrot.slane %v1092_v62, 4  ;;  %v970_v57 = vld [vmem:[#allocation2 + $0x80] sm:$0xf8] }
 0x135   : > { %v1099_v12 = vrot.slane %v1097_v63, 3  ;;  %v2743_v13 = vshrl.u32 %v2635_v53, 16  ;;  %v9066_v15 = vpop.f32.mrb[31].mxu0  ;;  %v2740_v16 = vor.u32 %v2739_v4, %v2736_v60  ;;  %v2746_v18 = vshll.u32 %v2635_v53, 16  ;;  %7803 = vmatpush3.bf16.msra.mxu0 %v8651_v30  ;;  %v8650_v30 = vld [vmem:[%s10140_s3 + $0x138] sm:$0xff]  }
 0x136   : > { %v1102_v17 = vrot.slane %v1100_v5, 4  ;;  %v2751_v19 = vshrl.u32 %v2636_v58, 16  ;;  %v1095_v21 = vor.u32 %v1094_v11, %v1091_v10  ;;  %v2754_v24 = vshll.u32 %v2636_v58, 16  ;;  %7836 = vmatprep.subr.bf16.mxu0 %v9058_v1  ;;  %v2638_v53 = vld [vmem:[#allocation2 + $0x78] sm:$0xf] }
 0x137   : > { %v2745_v23 = vrot.slane %v2743_v13, 3  ;;  %7943 = vmatpush3.bf16.msra.mxu1 %v8644_v48  ;;  %v2741_v31 = vsel %vm392_vm3, %v2732_v3, %v2740_v16  ;;  %v2748_v34 = vrot.slane %v2746_v18, 4  ;;  %v851_v37 = vmax.f32 %v803_v25, 0.0  ;;  %v971_v63 = vld [vmem:[#allocation2 + $0x88] sm:$0xf] }
 0x138   : > { %v1103_v33 = vor.u32 %v1102_v17, %v1099_v12  ;;  %v2753_v35 = vrot.slane %v2751_v19, 3  ;;  %7944 = vmatprep.subr.bf16.mxu1 %v8647_v6  ;;  %7908 = vmatprep.mubr.bf16.mxu1 %v2741_v31  ;;  %v2756_v36 = vrot.slane %v2754_v24, 4  ;;  %v795_v8 = vadd.f32 %v8966_v40, %v9033_v14  ;;  %v9085_v14 = vld [vmem:[%s10140_s3 + $0x140] sm:$0xff]  }
 0x139   : > { %v806_v22 = vadd.f32 %v9037_v20, %v8966_v40  ;;  %v2749_v42 = vor.u32 %v2748_v34, %v2745_v23  ;;  %v798_v44 = vadd.f32 %v8966_v40, %v9042_v27  ;;  %v1106_v45 = vshrl.u32 %v968_v26, 16  ;;  %v2639_v13 = vld [vmem:[#allocation2 + $0x80] sm:$0xf8] }
 0x13a   : > { %v1104_v41 = vsel %vm392_vm3, %v1095_v21, %v1103_v33  ;;  %v2757_v46 = vor.u32 %v2756_v36, %v2753_v35  ;;  %v849_v47 = vmax.f32 %v795_v8, 0.0  ;;  %v1109_v49 = vshll.u32 %v968_v26, 16  ;;  %v2640_v21 = vld [vmem:[#allocation2 + $0x88] sm:$0xf] }
 0x13b   : > { %7768 = vmatprep.mubr.bf16.mxu0 %v1104_v41  ;;  %v852_v48 = vmax.f32 %v806_v22, 0.0  ;;  %7945 = vmatpush3.bf16.msra.mxu1 %v8647_v6  ;;  %v850_v20 = vmax.f32 %v798_v44, 0.0  ;;  %v1108_v50 = vrot.slane %v1106_v45, 3  ;;  %v1114_v51 = vshrl.u32 %v969_v38, 16  ;;  %v972_v44 = vld [vmem:[#allocation2 + $0x90] sm:$0xf8] }
 0x13c   : > { %v1117_v52 = vshll.u32 %v969_v38, 16  ;;  %7946 = vmatprep.subr.bf16.mxu1 %v8650_v30  ;;  %v2758_v27 = vsel %vm392_vm3, %v2749_v42, %v2757_v46  ;;  %v1111_v55 = vrot.slane %v1109_v49, 4  ;;  %v2760_v56 = vshrl.u32 %v2637_v9, 16 }
 0x13d   : > { %v870_v54 = vpack.c.bf16 %v852_v48, %v851_v37  ;;  %7909 = vmatmul.mubr.bf16.gmra.mrb[8].mxu1 %v2758_v27  ;;  %v869_v58 = vpack.c.bf16 %v850_v20, %v849_v47  ;;  %v1116_v60 = vrot.slane %v1114_v51, 3  ;;  %v2763_v62 = vshll.u32 %v2637_v9, 16  ;;  %v973_v51 = vld [vmem:[#allocation2 + $0x98] sm:$0xf] }
 0x13e   : > { %v1119_v61 = vrot.slane %v1117_v52, 4  ;;  %v1112_v3 = vor.u32 %v1111_v55, %v1108_v50  ;;  %v2762_v4 = vrot.slane %v2760_v56, 3  ;;  %v2768_v5 = vshrl.u32 %v2638_v53, 16 }
 0x13f   : > { %v902_v2 = vrot.slane %v870_v54, 4  ;;  %7947 = vmatpush3.bf16.msra.mxu1 %v8650_v30  ;;  %v901_v6 = vrot.slane %v869_v58, 4  ;;  %v2765_v11 = vrot.slane %v2763_v62, 4  ;;  %v2771_v12 = vshll.u32 %v2638_v53, 16  ;;  %v2641_v54 = vld [vmem:[#allocation2 + $0x90] sm:$0xf8] }
 0x140   : > { %v1120_v10 = vor.u32 %v1119_v61, %v1116_v60  ;;  %7980 = vmatprep.subr.bf16.mxu1 %v9085_v14  ;;  %v2770_v16 = vrot.slane %v2768_v5, 3  ;;  %v1123_v17 = vshrl.u32 %v970_v57, 16  ;;  %v1126_v18 = vshll.u32 %v970_v57, 16  ;;  %v974_v5 = vld [vmem:[#allocation2 + $0xa0] sm:$0xf8] }
 0x141   : > { %948 = vst [vmem:[#allocation2 + $0xe8] ss:$-4 sps:$4 sm:$0xff] %v902_v2   ;;  %v1131_v19 = vshrl.u32 %v971_v63, 16  ;;  %946 = vst [vmem:[#allocation2 + $0xd8] ss:$-4 sps:$4 sm:$0xff] %v901_v6   ;;  %v2766_v24 = vor.u32 %v2765_v11, %v2762_v4  ;;  %v2773_v25 = vrot.slane %v2771_v12, 4  ;;  %v819_v42 = vadd.f32 %v9051_v59, %v8966_v40 }
 0x142   : > { %v1121_v23 = vsel %vm392_vm3, %v1112_v3, %v1120_v10  ;;  %v1134_v26 = vshll.u32 %v971_v63, 16  ;;  %v1125_v31 = vrot.slane %v1123_v17, 3  ;;  %v1128_v33 = vrot.slane %v1126_v18, 4  ;;  %v2642_v63 = vld [vmem:[#allocation2 + $0x98] sm:$0xf] }
 0x143   : > { %7769 = vmatmul.mubr.bf16.gmra.mrb[44].mxu0 %v1121_v23  ;;  %v1133_v34 = vrot.slane %v1131_v19, 3  ;;  %v2777_v35 = vshrl.u32 %v2639_v13, 16  ;;  %v2774_v30 = vor.u32 %v2773_v25, %v2770_v16  ;;  %v2780_v37 = vshll.u32 %v2639_v13, 16  ;;  %v975_v11 = vld [vmem:[#allocation2 + $0xa8] sm:$0xf] }
 0x144   : > { %v1136_v36 = vrot.slane %v1134_v26, 4  ;;  %v2785_v8 = vshrl.u32 %v2640_v21, 16  ;;  %v1129_v22 = vor.u32 %v1128_v33, %v1125_v31  ;;  %v2788_v41 = vshll.u32 %v2640_v21, 16 }
 0x145   : > { %v2779_v38 = vrot.slane %v2777_v35, 3  ;;  %v2775_v45 = vsel %vm392_vm3, %v2766_v24, %v2774_v30  ;;  %v2782_v46 = vrot.slane %v2780_v37, 4  ;;  %v855_v49 = vmax.f32 %v819_v42, 0.0  ;;  %v2643_v24 = vld [vmem:[#allocation2 + $0xa0] sm:$0xf8] }
 0x146   : > { %v1137_v9 = vor.u32 %v1136_v36, %v1133_v34  ;;  %v2787_v47 = vrot.slane %v2785_v8, 3  ;;  %7912 = vmatprep.mubr.bf16.mxu1 %v2775_v45  ;;  %v2790_v48 = vrot.slane %v2788_v41, 4  ;;  %v811_v20 = vadd.f32 %v8966_v40, %v9053_v0  ;;  %v2644_v34 = vld [vmem:[#allocation2 + $0xa8] sm:$0xf]  ;;  %v976_v8 = vld [vmem:[#allocation2 + $0xb0] sm:$0xf8] }
 0x147   : > { %v822_v50 = vadd.f32 %v9061_v7, %v8966_v40  ;;  %v2783_v53 = vor.u32 %v2782_v46, %v2779_v38  ;;  %v814_v59 = vadd.f32 %v8966_v40, %v9066_v15  ;;  %v1140_v27 = vshrl.u32 %v972_v44, 16 }
 0x148   : > { %v1138_v52 = vsel %vm392_vm3, %v1129_v22, %v1137_v9  ;;  %v2791_v55 = vor.u32 %v2790_v48, %v2787_v47  ;;  %v853_v56 = vmax.f32 %v811_v20, 0.0  ;;  %v1143_v58 = vshll.u32 %v972_v44, 16  ;;  %v977_v47 = vld [vmem:[#allocation2 + $0xb8] sm:$0xf] }
 0x149   : > { %7772 = vmatprep.mubr.bf16.mxu0 %v1138_v52  ;;  %v856_v57 = vmax.f32 %v822_v50, 0.0  ;;  %v854_v60 = vmax.f32 %v814_v59, 0.0  ;;  %v1142_v61 = vrot.slane %v1140_v27, 3  ;;  %v1148_v0 = vshrl.u32 %v973_v51, 16 }
 0x14a   : > { %v1151_v62 = vshll.u32 %v973_v51, 16  ;;  %v2792_v7 = vsel %vm392_vm3, %v2783_v53, %v2791_v55  ;;  %v1145_v3 = vrot.slane %v1143_v58, 4  ;;  %v2794_v4 = vshrl.u32 %v2641_v54, 16  ;;  %v2645_v51 = vld [vmem:[#allocation2 + $0xb0] sm:$0xf8] }
 0x14b   : > { %v872_v2 = vpack.c.bf16 %v856_v57, %v855_v49  ;;  %7913 = vmatmul.mubr.bf16.gmra.mrb[12].mxu1 %v2792_v7  ;;  %v871_v40 = vpack.c.bf16 %v854_v60, %v853_v56  ;;  %v1150_v15 = vrot.slane %v1148_v0, 3  ;;  %v2797_v10 = vshll.u32 %v2641_v54, 16  ;;  %v2646_v58 = vld [vmem:[#allocation2 + $0xb8] sm:$0xf] }
 0x14c   : > { %v1153_v6 = vrot.slane %v1151_v62, 4  ;;  %v1146_v13 = vor.u32 %v1145_v3, %v1142_v61  ;;  %v2796_v16 = vrot.slane %v2794_v4, 3  ;;  %v2802_v17 = vshrl.u32 %v2642_v63, 16 }
 0x14d   : > { %v904_v12 = vrot.slane %v872_v2, 4  ;;  %v903_v18 = vrot.slane %v871_v40, 4  ;;  %v2799_v21 = vrot.slane %v2797_v10, 4  ;;  %v2805_v23 = vshll.u32 %v2642_v63, 16  ;;  %v978_v63 = vld [vmem:[#allocation2 + $0xc0] sm:$0xf8] }
 0x14e   : > { %v1154_v19 = vor.u32 %v1153_v6, %v1150_v15  ;;  %v2804_v25 = vrot.slane %v2802_v17, 3  ;;  %v1157_v26 = vshrl.u32 %v974_v5, 16  ;;  %v1160_v31 = vshll.u32 %v974_v5, 16  ;;  %v979_v10 = vld [vmem:[#allocation2 + $0xc8] sm:$0xf] }
 0x14f   : > { %952 = vst [vmem:[#allocation2 + $0x108] ss:$-4 sps:$4 sm:$0xff] %v904_v12   ;;  %v1165_v33 = vshrl.u32 %v975_v11, 16  ;;  %950 = vst [vmem:[#allocation2 + $0xf8] ss:$-4 sps:$4 sm:$0xff] %v903_v18   ;;  %v2800_v30 = vor.u32 %v2799_v21, %v2796_v16  ;;  %v2807_v36 = vrot.slane %v2805_v23, 4 }
 0x150   : > { %v1155_v35 = vsel %vm392_vm3, %v1146_v13, %v1154_v19  ;;  %v1168_v37 = vshll.u32 %v975_v11, 16  ;;  %v1159_v22 = vrot.slane %v1157_v26, 3  ;;  %v1162_v38 = vrot.slane %v1160_v31, 4  ;;  %v2647_v17 = vld [vmem:[#allocation2 + $0xc0] sm:$0xf8] }
 0x151   : > { %7773 = vmatmul.mubr.bf16.gmra.mrb[48].mxu0 %v1155_v35  ;;  %v1167_v41 = vrot.slane %v1165_v33, 3  ;;  %v2811_v42 = vshrl.u32 %v2643_v24, 16  ;;  %v2808_v44 = vor.u32 %v2807_v36, %v2804_v25  ;;  %v2814_v9 = vshll.u32 %v2643_v24, 16  ;;  %v2648_v24 = vld [vmem:[#allocation2 + $0xc8] sm:$0xf] }
 0x152   : > { %v1170_v45 = vrot.slane %v1168_v37, 4  ;;  %v2819_v46 = vshrl.u32 %v2644_v34, 16  ;;  %v1163_v48 = vor.u32 %v1162_v38, %v1159_v22  ;;  %v2822_v20 = vshll.u32 %v2644_v34, 16  ;;  %v980_v37 = vld [vmem:[#allocation2 + $0xd0] sm:$0xf8] }
 0x153   : > { %v2813_v49 = vrot.slane %v2811_v42, 3  ;;  %v1174_v50 = vshrl.u32 %v976_v8, 16  ;;  %v2809_v52 = vsel %vm392_vm3, %v2800_v30, %v2808_v44  ;;  %v2816_v59 = vrot.slane %v2814_v9, 4  ;;  %v981_v42 = vld [vmem:[#allocation2 + $0xd8] sm:$0xf] }
 0x154   : > { %v1171_v53 = vor.u32 %v1170_v45, %v1167_v41  ;;  %v2821_v27 = vrot.slane %v2819_v46, 3  ;;  %7916 = vmatprep.mubr.bf16.mxu1 %v2809_v52  ;;  %v2824_v54 = vrot.slane %v2822_v20, 4  ;;  %v1177_v56 = vshll.u32 %v976_v8, 16 }
 0x155   : > { %v1176_v55 = vrot.slane %v1174_v50, 3  ;;  %v1182_v57 = vshrl.u32 %v977_v47, 16  ;;  %v2817_v61 = vor.u32 %v2816_v59, %v2813_v49  ;;  %v1185_v0 = vshll.u32 %v977_v47, 16  ;;  %v2649_v47 = vld [vmem:[#allocation2 + $0xd0] sm:$0xf8] }
 0x156   : > { %v1172_v60 = vsel %vm392_vm3, %v1163_v48, %v1171_v53  ;;  %v2828_v62 = vshrl.u32 %v2645_v51, 16  ;;  %v2825_v7 = vor.u32 %v2824_v54, %v2821_v27  ;;  %v1179_v2 = vrot.slane %v1177_v56, 4  ;;  %v2650_v27 = vld [vmem:[#allocation2 + $0xd8] sm:$0xf] }
 0x157   : > { %7776 = vmatprep.mubr.bf16.mxu0 %v1172_v60  ;;  %v1184_v3 = vrot.slane %v1182_v57, 3  ;;  %v2831_v4 = vshll.u32 %v2645_v51, 16  ;;  %v1187_v5 = vrot.slane %v1185_v0, 4  ;;  %v2836_v15 = vshrl.u32 %v2646_v58, 16 }
 0x158   : > { %v2830_v40 = vrot.slane %v2828_v62, 3  ;;  %v2839_v6 = vshll.u32 %v2646_v58, 16  ;;  %v2826_v11 = vsel %vm392_vm3, %v2817_v61, %v2825_v7  ;;  %v1180_v12 = vor.u32 %v1179_v2, %v1176_v55  ;;  %v982_v58 = vld [vmem:[#allocation2 + $0xe0] sm:$0xf8] }
 0x159   : > { %v2833_v13 = vrot.slane %v2831_v4, 4  ;;  %v1191_v16 = vshrl.u32 %v978_v63, 16  ;;  %7917 = vmatmul.mubr.bf16.gmra.mrb[16].mxu1 %v2826_v11  ;;  %v1188_v18 = vor.u32 %v1187_v5, %v1184_v3  ;;  %v2838_v19 = vrot.slane %v2836_v15, 3  ;;  %v983_v4 = vld [vmem:[#allocation2 + $0xe8] sm:$0xf] }
 0x15a   : > { %v2841_v21 = vrot.slane %v2839_v6, 4  ;;  %v1194_v23 = vshll.u32 %v978_v63, 16  ;;  %v1199_v31 = vshrl.u32 %v979_v10, 16  ;;  %v1202_v33 = vshll.u32 %v979_v10, 16  ;;  %v2651_v10 = vld [vmem:[#allocation2 + $0xe0] sm:$0xf8] }
 0x15b   : > { %v2834_v25 = vor.u32 %v2833_v13, %v2830_v40  ;;  %v1193_v26 = vrot.slane %v1191_v16, 3  ;;  %v1189_v34 = vsel %vm392_vm3, %v1180_v12, %v1188_v18  ;;  %v2845_v36 = vshrl.u32 %v2647_v17, 16 }
 0x15c   : > { %v2842_v35 = vor.u32 %v2841_v21, %v2838_v19  ;;  %v1196_v30 = vrot.slane %v1194_v23, 4  ;;  %7777 = vmatmul.mubr.bf16.gmra.mrb[52].mxu0 %v1189_v34  ;;  %v1201_v8 = vrot.slane %v1199_v31, 3  ;;  %v1204_v22 = vrot.slane %v1202_v33, 4  ;;  %v984_v33 = vld [vmem:[#allocation2 + $0xf0] sm:$0xf8] }
 0x15d   : > { %v2848_v38 = vshll.u32 %v2647_v17, 16  ;;  %v2853_v41 = vshrl.u32 %v2648_v24, 16  ;;  %v2847_v9 = vrot.slane %v2845_v36, 3  ;;  %v2856_v46 = vshll.u32 %v2648_v24, 16  ;;  %v2652_v17 = vld [vmem:[#allocation2 + $0xe8] sm:$0xf] }
 0x15e   : > { %v2843_v44 = vsel %vm392_vm3, %v2834_v25, %v2842_v35  ;;  %v1197_v45 = vor.u32 %v1196_v30, %v1193_v26  ;;  %v1205_v48 = vor.u32 %v1204_v22, %v1201_v8  ;;  %v1208_v50 = vshrl.u32 %v980_v37, 16 }
 0x15f   : > { %7920 = vmatprep.mubr.bf16.mxu1 %v2843_v44  ;;  %v2850_v49 = vrot.slane %v2848_v38, 4  ;;  %v2855_v20 = vrot.slane %v2853_v41, 3  ;;  %v2858_v51 = vrot.slane %v2856_v46, 4  ;;  %v1211_v52 = vshll.u32 %v980_v37, 16  ;;  %v985_v37 = vld [vmem:[#allocation2 + $0xf8] sm:$0xf] }
 0x160   : > { %v1216_v53 = vshrl.u32 %v981_v42, 16  ;;  %v1219_v59 = vshll.u32 %v981_v42, 16  ;;  %v1206_v54 = vsel %vm392_vm3, %v1197_v45, %v1205_v48  ;;  %v1210_v56 = vrot.slane %v1208_v50, 3  ;;  %v2653_v42 = vld [vmem:[#allocation2 + $0xf0] sm:$0xf8] }
 0x161   : > { %v2851_v55 = vor.u32 %v2850_v49, %v2847_v9  ;;  %v2862_v57 = vshrl.u32 %v2649_v47, 16  ;;  %7780 = vmatprep.mubr.bf16.mxu0 %v1206_v54  ;;  %v2859_v60 = vor.u32 %v2858_v51, %v2855_v20  ;;  %v1213_v61 = vrot.slane %v1211_v52, 4  ;;  %v2654_v50 = vld [vmem:[#allocation2 + $0xf8] sm:$0xf] }
 0x162   : > { %v1218_v0 = vrot.slane %v1216_v53, 3  ;;  %v1221_v62 = vrot.slane %v1219_v59, 4  ;;  %v2865_v7 = vshll.u32 %v2649_v47, 16  ;;  %v2870_v2 = vshrl.u32 %v2650_v27, 16 }
 0x163   : > { %v2864_v63 = vrot.slane %v2862_v57, 3  ;;  %v2873_v3 = vshll.u32 %v2650_v27, 16  ;;  %v2860_v5 = vsel %vm392_vm3, %v2851_v55, %v2859_v60  ;;  %v1214_v40 = vor.u32 %v1213_v61, %v1210_v56  ;;  %v2655_v27 = vld [vmem:[#allocation2 + $0x100] sm:$0xf8] }
 0x164   : > { %v1222_v15 = vor.u32 %v1221_v62, %v1218_v0  ;;  %v1225_v6 = vshrl.u32 %v982_v58, 16  ;;  %7921 = vmatmul.mubr.bf16.gmra.mrb[20].mxu1 %v2860_v5  ;;  %v2867_v11 = vrot.slane %v2865_v7, 4  ;;  %v2872_v12 = vrot.slane %v2870_v2, 3  ;;  %v2656_v62 = vld [vmem:[#allocation2 + $0x108] sm:$0xf] }
 0x165   : > { %v2875_v13 = vrot.slane %v2873_v3, 4  ;;  %v1228_v16 = vshll.u32 %v982_v58, 16  ;;  %v1233_v21 = vshrl.u32 %v983_v4, 16  ;;  %v1236_v23 = vshll.u32 %v983_v4, 16 }
 0x166   : > { %v1223_v18 = vsel %vm392_vm3, %v1214_v40, %v1222_v15  ;;  %v1227_v19 = vrot.slane %v1225_v6, 3  ;;  %v2868_v24 = vor.u32 %v2867_v11, %v2864_v63  ;;  %v2879_v31 = vshrl.u32 %v2651_v10, 16  ;;  %v3267_v6 = vld [vmem:[#allocation2 + $0x10] sm:$0xf0] }
 0x167   : > { %7781 = vmatmul.mubr.bf16.gmra.mrb[56].mxu0 %v1223_v18  ;;  %v2876_v25 = vor.u32 %v2875_v13, %v2872_v12  ;;  %v1230_v26 = vrot.slane %v1228_v16, 4  ;;  %v1235_v34 = vrot.slane %v1233_v21, 3  ;;  %v1238_v35 = vrot.slane %v1236_v23, 4  ;;  %v3268_v16 = vld [vmem:[#allocation2 + $0x18] sm:$0xf] }
 0x168   : > { %v2882_v30 = vshll.u32 %v2651_v10, 16  ;;  %v2887_v36 = vshrl.u32 %v2652_v17, 16  ;;  %v2881_v38 = vrot.slane %v2879_v31, 3  ;;  %v2890_v41 = vshll.u32 %v2652_v17, 16  ;;  %v1533_v21 = vld [vmem:[#allocation2 + $0x10] sm:$0xf0] }
 0x169   : > { %v2877_v8 = vsel %vm392_vm3, %v2868_v24, %v2876_v25  ;;  %v1231_v22 = vor.u32 %v1230_v26, %v1227_v19  ;;  %v1239_v44 = vor.u32 %v1238_v35, %v1235_v34  ;;  %v1242_v46 = vshrl.u32 %v984_v33, 16  ;;  %v1534_v23 = vld [vmem:[#allocation2 + $0x18] sm:$0xf]  ;;  %v1535_v26 = vld [vmem:[#allocation2 + $0x20] sm:$0xf0] }
 0x16a   : > { %7924 = vmatprep.mubr.bf16.mxu1 %v2877_v8  ;;  %v2884_v45 = vrot.slane %v2882_v30, 4  ;;  %v2889_v9 = vrot.slane %v2887_v36, 3  ;;  %v2892_v47 = vrot.slane %v2890_v41, 4  ;;  %v1245_v48 = vshll.u32 %v984_v33, 16  ;;  %v1536_v31 = vld [vmem:[#allocation2 + $0x28] sm:$0xf] }
 0x16b   : > { %v1250_v49 = vshrl.u32 %v985_v37, 16  ;;  %v1253_v20 = vshll.u32 %v985_v37, 16  ;;  %v1240_v51 = vsel %vm392_vm3, %v1231_v22, %v1239_v44  ;;  %v1244_v53 = vrot.slane %v1242_v46, 3  ;;  %v3269_v22 = vld [vmem:[#allocation2 + $0x20] sm:$0xf0] }
 0x16c   : > { %v2885_v52 = vor.u32 %v2884_v45, %v2881_v38  ;;  %v2896_v59 = vshrl.u32 %v2653_v42, 16  ;;  %7784 = vmatprep.mubr.bf16.mxu0 %v1240_v51  ;;  %v2893_v54 = vor.u32 %v2892_v47, %v2889_v9  ;;  %v1247_v55 = vrot.slane %v1245_v48, 4  ;;  %v3271_v44 = vld [vmem:[#allocation2 + $0x30] sm:$0xf0]  ;;  %v3272_v9 = vld [vmem:[#allocation2 + $0x38] sm:$0xf] }
 0x16d   : > { %v1252_v56 = vrot.slane %v1250_v49, 3  ;;  %v1255_v57 = vrot.slane %v1253_v20, 4  ;;  %v2899_v60 = vshll.u32 %v2653_v42, 16  ;;  %v2904_v61 = vshrl.u32 %v2654_v50, 16  ;;  %v3270_v42 = vld [vmem:[#allocation2 + $0x28] sm:$0xf] }
 0x16e   : > { %v2898_v58 = vrot.slane %v2896_v59, 3  ;;  %v2907_v0 = vshll.u32 %v2654_v50, 16  ;;  %v2894_v63 = vsel %vm392_vm3, %v2885_v52, %v2893_v54  ;;  %v1248_v7 = vor.u32 %v1247_v55, %v1244_v53  ;;  %v1538_v46 = vld [vmem:[#allocation2 + $0x38] sm:$0xf]  ;;  %v1539_v48 = vld [vmem:[#allocation2 + $0x40] sm:$0xf0] }
 0x16f   : > { %v1256_v2 = vor.u32 %v1255_v57, %v1252_v56  ;;  %v2913_v3 = vshrl.u32 %v2655_v27, 16  ;;  %7925 = vmatmul.mubr.bf16.gmra.mrb[24].mxu1 %v2894_v63  ;;  %v2901_v4 = vrot.slane %v2899_v60, 4  ;;  %v2906_v5 = vrot.slane %v2904_v61, 3  ;;  %v1540_v49 = vld [vmem:[#allocation2 + $0x48] sm:$0xf]  ;;  %v8659_v61 = vld [vmem:[%s10140_s3 + $0x90] sm:$0xff]  }
 0x170   : > { %v2909_v40 = vrot.slane %v2907_v0, 4  ;;  %v2916_v15 = vshll.u32 %v2655_v27, 16  ;;  %v2921_v12 = vshrl.u32 %v2656_v62, 16  ;;  %v2924_v13 = vshll.u32 %v2656_v62, 16  ;;  %v8658_v20 = vld [vmem:[%s10140_s3 + $0x88] sm:$0xff]  }
 0x171   : > { %v1257_v10 = vsel %vm392_vm3, %v1248_v7, %v1256_v2  ;;  %v2915_v11 = vrot.slane %v2913_v3, 3  ;;  %v2902_v17 = vor.u32 %v2901_v4, %v2898_v58  ;;  %v3331_v35 = vrot.slane %v3267_v6, 4  ;;  %v9122_v59 = vld [vmem:[#allocation2 + $0x40] sm:$0xf0]  ;;  %v9125_v57 = vld [vmem:[#allocation2 + $0x48] sm:$0xf] }
 0x172   : > { %7785 = vmatmul.mubr.bf16.gmra.mrb[60].mxu0 %v1257_v10  ;;  %v2910_v18 = vor.u32 %v2909_v40, %v2906_v5  ;;  %v2918_v19 = vrot.slane %v2916_v15, 4  ;;  %v2923_v24 = vrot.slane %v2921_v12, 3  ;;  %v2926_v25 = vrot.slane %v2924_v13, 4  ;;  %v9127_v58 = vld [vmem:[#allocation2 + $0x50] sm:$0xf0] }
 0x173   : > { %7804 = vmatprep.mubr.bf16.mxu0 %v8982_v29  ;;  %v3332_v30 = vrot.slane %v3268_v16, 4  ;;  %v1599_v37 = vrot.slane %v1533_v21, 4  ;;  %v1600_v8 = vrot.slane %v1534_v23, 4  ;;  %v1602_v38 = vrot.slane %v1535_v26, 4  ;;  %v1537_v29 = vld [vmem:[#allocation2 + $0x30] sm:$0xf0] }
 0x174   : > { %v2911_v33 = vsel %vm392_vm3, %v2902_v17, %v2910_v18  ;;  %v2919_v34 = vor.u32 %v2918_v19, %v2915_v11  ;;  %v2927_v36 = vor.u32 %v2926_v25, %v2923_v24  ;;  %v1603_v41 = vrot.slane %v1536_v31, 4  ;;  %v9129_v60 = vld [vmem:[#allocation2 + $0x58] sm:$0xf]  ;;  %v9134_v63 = vld [vmem:[#allocation2 + $0x50] sm:$0xf0] }
 0x175   : > { %7928 = vmatprep.mubr.bf16.mxu1 %v2911_v33  ;;  %v3333_v47 = vsel %vm1595_vm10, %v3331_v35, %v3332_v30  ;;  %v1601_v50 = vsel %vm1595_vm10, %v1599_v37, %v1600_v8  ;;  %v3334_v51 = vrot.slane %v3269_v22, 4  ;;  %v3335_v52 = vrot.slane %v3270_v42, 4  ;;  %v9136_v7 = vld [vmem:[#allocation2 + $0x58] sm:$0xf]  ;;  %v9138_v2 = vld [vmem:[#allocation2 + $0x60] sm:$0xf0] }
 0x176   : > { %v2928_v45 = vsel %vm392_vm3, %v2919_v34, %v2927_v36  ;;  %v3337_v53 = vrot.slane %v3271_v44, 4  ;;  %v1604_v27 = vsel %vm1595_vm10, %v1602_v38, %v1603_v41  ;;  %v3338_v54 = vrot.slane %v3272_v9, 4  ;;  %v9140_v3 = vld [vmem:[#allocation2 + $0x68] sm:$0xf]  ;;  %v9143_v4 = vld [vmem:[#allocation2 + $0x60] sm:$0xf0] }
 0x177   : > { %7929 = vmatmul.mubr.bf16.gmra.mrb[28].mxu1 %v2928_v45  ;;  %v1605_v55 = vrot.slane %v1537_v29, 4  ;;  %v1606_v56 = vrot.slane %v1538_v46, 4  ;;  %v1608_v0 = vrot.slane %v1539_v48, 4  ;;  %v1609_v62 = vrot.slane %v1540_v49, 4  ;;  %v9145_v5 = vld [vmem:[#allocation2 + $0x68] sm:$0xf] }
 0x178   : > { %7948 = vmatprep.mubr.bf16.mxu1 %v3333_v47  ;;  %v9147_v40 = vld [vmem:[#allocation2 + $0x70] sm:$0xf0]  ;;  %v9149_v15 = vld [vmem:[#allocation2 + $0x78] sm:$0xf]  ;;  %v3336_v11 = vsel %vm1595_vm10, %v3334_v51, %v3335_v52  ;;  %v3339_v12 = vsel %vm1595_vm10, %v3337_v53, %v3338_v54  ;;  %v3340_v16 = vrot.slane %v9122_v59, 4  ;;  %v3341_v21 = vrot.slane %v9125_v57, 4 }
 0x179   : > { %v9151_v6 = vld [vmem:[#allocation2 + $0x70] sm:$0xf0]  ;;  %v9153_v10 = vld [vmem:[#allocation2 + $0x78] sm:$0xf]  ;;  %v1607_v13 = vsel %vm1595_vm10, %v1605_v55, %v1606_v56  ;;  %v9162_v17 = vld [vmem:[#allocation2 + $0x80] sm:$0xf0]  ;;  %v1610_v19 = vsel %vm1595_vm10, %v1608_v0, %v1609_v62 }
 0x17a   : > { %7805 = vmatmul.mubr.bf16.vlgmr.msra.gmra.mrb[32].mxu0 %v1601_v50  ;;  %v1548_v18 = vld [vmem:[#allocation2 + $0x88] sm:$0xf]  ;;  %v3343_v23 = vrot.slane %v9127_v58, 4  ;;  %v3344_v24 = vrot.slane %v9129_v60, 4  ;;  %v3281_v25 = vld [vmem:[#allocation2 + $0x80] sm:$0xf0]  ;;  %v3342_v53 = vsel %vm1595_vm10, %v3340_v16, %v3341_v21 }
 0x17b   : > { %7808 = vmatprep.mubr.bf16.mxu0 %v1604_v27  ;;  %7837 = vmatpush3.bf16.msra.mxu0 %v9058_v1  ;;  %v8653_v1 = vld [vmem:[%s10140_s3 + $0x148] sm:$0xff]   ;;  %v8661_v26 = vld [vmem:[%s10140_s3 + $0x98] sm:$0xff]   ;;  %v1611_v31 = vrot.slane %v9134_v63, 4  ;;  %v1612_v33 = vrot.slane %v9136_v7, 4  ;;  %v9176_v34 = vld [vmem:[%s10140_s3 + $0x150] sm:$0xff]   ;;  %v1614_v35 = vrot.slane %v9138_v2, 4 }
 0x17c   : > { %7838 = vmatprep.subr.bf16.mxu0 %v8658_v20  ;;  %v1615_v30 = vrot.slane %v9140_v3, 4  ;;  %v3282_v36 = vld [vmem:[#allocation2 + $0x88] sm:$0xf]  ;;  %v3346_v37 = vrot.slane %v9143_v4, 4  ;;  %v3347_v8 = vrot.slane %v9145_v5, 4  ;;  %v3349_v22 = vrot.slane %v9147_v40, 4 }
 0x17d   : > { %v3350_v38 = vrot.slane %v9149_v15, 4  ;;  %v9185_v41 = vld [vmem:[#allocation2 + $0x90] sm:$0xf0]  ;;  %v1617_v42 = vrot.slane %v9151_v6, 4  ;;  %v1618_v44 = vrot.slane %v9153_v10, 4  ;;  %v1620_v45 = vrot.slane %v9162_v17, 4 }
 0x17e   : > { %v9190_v9 = vld [vmem:[#allocation2 + $0x98] sm:$0xf]  ;;  %v9192_v29 = vld [vmem:[#allocation2 + $0x90] sm:$0xf0]  ;;  %v9199_v47 = vld [vmem:[%s10140_s3 + $0xa0] sm:$0xff]   ;;  %v3352_v48 = vrot.slane %v3281_v25, 4  ;;  %v3345_v56 = vsel %vm1595_vm10, %v3343_v23, %v3344_v24  ;;  %v1613_v57 = vsel %vm1595_vm10, %v1611_v31, %v1612_v33  ;;  %v1616_v58 = vsel %vm1595_vm10, %v1614_v35, %v1615_v30 }
 0x17f   : > { %7839 = vmatpush3.bf16.msra.mxu0 %v8658_v20  ;;  %7949 = vmatmul.mubr.bf16.vlgmr.msra.gmra.mrb[0].mxu1 %v3336_v11  ;;  %v9194_v46 = vld [vmem:[#allocation2 + $0x98] sm:$0xf]  ;;  %v3353_v49 = vrot.slane %v3282_v36, 4  ;;  %v9201_v20 = vld [vmem:[#allocation2 + $0xa0] sm:$0xf0]  ;;  %v9222_v60 = vsel %vm1595_vm10, %v3346_v37, %v3347_v8  ;;  %v9234_v7 = vsel %vm1595_vm10, %v3349_v22, %v3350_v38  ;;  %v9237_v2 = vsel %vm1595_vm10, %v1617_v42, %v1618_v44  ;;  %v8664_v16 = vld [vmem:[%s10140_s3 + $0xa8] sm:$0xff]  }
 0x180   : > { %7840 = vmatprep.subr.bf16.mxu0 %v8659_v61  ;;  %7981 = vmatpush3.bf16.msra.mxu1 %v9085_v14  ;;  %v1621_v14 = vrot.slane %v1548_v18, 4  ;;  %v9203_v50 = vld [vmem:[#allocation2 + $0xa8] sm:$0xf]  ;;  %v9205_v51 = vld [vmem:[#allocation2 + $0xa0] sm:$0xf0]  ;;  %v8655_v3 = vld [vmem:[%s10140_s3 + $0x158] sm:$0xff]  }
 0x181   : > { %7952 = vmatprep.mubr.bf16.mxu1 %v3339_v12  ;;  %7982 = vmatprep.subr.bf16.mxu1 %v8653_v1  ;;  %v9207_v52 = vld [vmem:[#allocation2 + $0xa8] sm:$0xf]  ;;  %v9210_v59 = vld [vmem:[#allocation2 + $0xb0] sm:$0xf0]  ;;  %v9212_v27 = vld [vmem:[#allocation2 + $0xb8] sm:$0xf]  ;;  %v9253_v10 = vsel %vm1595_vm10, %v3352_v48, %v3353_v49 }
 0x182   : > { %7809 = vmatmul.mubr.bf16.gmra.mrb[36].mxu0 %v1607_v13  ;;  %v9214_v54 = vld [vmem:[#allocation2 + $0xb0] sm:$0xf0]  ;;  %v9216_v55 = vld [vmem:[#allocation2 + $0xb8] sm:$0xf]  ;;  %v9226_v0 = vld [vmem:[#allocation2 + $0xc8] sm:$0xf]  ;;  %v9243_v4 = vsel %vm1595_vm10, %v1620_v45, %v1621_v14 }
 0x183   : > { %7812 = vmatprep.mubr.bf16.mxu0 %v1610_v19  ;;  %7841 = vmatpush3.bf16.msra.mxu0 %v8659_v61  ;;  %v9224_v61 = vld [vmem:[#allocation2 + $0xc0] sm:$0xf0]  ;;  %v9230_v63 = vld [vmem:[#allocation2 + $0xc8] sm:$0xf]  ;;  %v3355_v5 = vrot.slane %v9185_v41, 4  ;;  %v3356_v11 = vrot.slane %v9190_v9, 4 }
 0x184   : > { %7842 = vmatprep.subr.bf16.mxu0 %v8661_v26  ;;  %7983 = vmatpush3.bf16.msra.mxu1 %v8653_v1  ;;  %v9228_v62 = vld [vmem:[#allocation2 + $0xc0] sm:$0xf0]  ;;  %v9246_v40 = vld [vmem:[#allocation2 + $0xd0] sm:$0xf0]  ;;  %v9248_v15 = vld [vmem:[#allocation2 + $0xd8] sm:$0xf] }
 0x185   : > { %7984 = vmatprep.subr.bf16.mxu1 %v9176_v34  ;;  %v9250_v6 = vld [vmem:[#allocation2 + $0xd0] sm:$0xf0]  ;;  %v1623_v12 = vrot.slane %v9192_v29, 4  ;;  %v1624_v13 = vrot.slane %v9194_v46, 4  ;;  %v1558_v1 = vld [vmem:[#allocation2 + $0xd8] sm:$0xf]  ;;  %v9288_v14 = vsel %vm1595_vm10, %v3355_v5, %v3356_v11 }
 0x186   : > { %v9264_v17 = vld [vmem:[%s10140_s3 + $0x160] sm:$0xff]   ;;  %v1626_v18 = vrot.slane %v9201_v20, 4  ;;  %v1627_v19 = vrot.slane %v9203_v50, 4  ;;  %v3358_v21 = vrot.slane %v9205_v51, 4  ;;  %v3359_v23 = vrot.slane %v9207_v52, 4  ;;  %v8665_v22 = vld [vmem:[%s10140_s3 + $0xb0] sm:$0xff]  }
 0x187   : > { %7843 = vmatpush3.bf16.msra.mxu0 %v8661_v26  ;;  %7953 = vmatmul.mubr.bf16.gmra.mrb[4].mxu1 %v3342_v53  ;;  %v1559_v24 = vld [vmem:[#allocation2 + $0xe0] sm:$0xf0]  ;;  %v3361_v25 = vrot.slane %v9210_v59, 4  ;;  %v3362_v26 = vrot.slane %v9212_v27, 4  ;;  %v1629_v31 = vrot.slane %v9214_v54, 4  ;;  %v1630_v33 = vrot.slane %v9216_v55, 4 }
 0x188   : > { %7844 = vmatprep.subr.bf16.mxu0 %v9199_v47  ;;  %7956 = vmatprep.mubr.bf16.mxu1 %v3345_v56  ;;  %v1560_v35 = vld [vmem:[#allocation2 + $0xe8] sm:$0xf]  ;;  %v1632_v30 = vrot.slane %v9224_v61, 4  ;;  %v1633_v36 = vrot.slane %v9226_v0, 4  ;;  %v3364_v37 = vrot.slane %v9228_v62, 4  ;;  %v3365_v8 = vrot.slane %v9230_v63, 4 }
 0x189   : > { %7985 = vmatpush3.bf16.msra.mxu1 %v9176_v34  ;;  %v3293_v34 = vld [vmem:[#allocation2 + $0xe0] sm:$0xf0]  ;;  %v3367_v38 = vrot.slane %v9246_v40, 4  ;;  %v3368_v41 = vrot.slane %v9248_v15, 4  ;;  %v1635_v42 = vrot.slane %v9250_v6, 4  ;;  %v1636_v44 = vrot.slane %v1558_v1, 4 }
 0x18a   : > { %7813 = vmatmul.mubr.bf16.gmra.mrb[40].mxu0 %v1613_v57  ;;  %7986 = vmatprep.subr.bf16.mxu1 %v8655_v3  ;;  %v3294_v45 = vld [vmem:[#allocation2 + $0xe8] sm:$0xf]  ;;  %v9291_v9 = vsel %vm1595_vm10, %v1623_v12, %v1624_v13  ;;  %v1638_v46 = vrot.slane %v1559_v24, 4  ;;  %v1639_v48 = vrot.slane %v1560_v35, 4  ;;  %v9298_v49 = vld [vmem:[#allocation2 + $0xf0] sm:$0xf0]  ;;  %v9304_v50 = vsel %vm1595_vm10, %v3358_v21, %v3359_v23 }
 0x18b   : > { %7816 = vmatprep.mubr.bf16.mxu0 %v1616_v58  ;;  %7845 = vmatpush3.bf16.msra.mxu0 %v9199_v47  ;;  %v9296_v29 = vld [vmem:[%s10140_s3 + $0x168] sm:$0xff]   ;;  %v3717_v20 = vld [vmem:[#allocation2 + $0x10] sm:$0xf0]  ;;  %v9301_v47 = vsel %vm1595_vm10, %v1626_v18, %v1627_v19  ;;  %v9307_v51 = vsel %vm1595_vm10, %v3361_v25, %v3362_v26  ;;  %v9310_v52 = vsel %vm1595_vm10, %v1629_v31, %v1630_v33  ;;  %v9312_v53 = vld [vmem:[#allocation2 + $0xf8] sm:$0xf]  ;;  %v3370_v56 = vrot.slane %v3293_v34, 4 }
 0x18c   : > { %7846 = vmatprep.subr.bf16.mxu0 %v8664_v16  ;;  %v9314_v59 = vld [vmem:[#allocation2 + $0xf0] sm:$0xf0]  ;;  %v9316_v27 = vld [vmem:[#allocation2 + $0xf8] sm:$0xf]  ;;  %v9320_v54 = vsel %vm1595_vm10, %v1632_v30, %v1633_v36  ;;  %v9323_v55 = vsel %vm1595_vm10, %v3364_v37, %v3365_v8  ;;  %v3371_v57 = vrot.slane %v3294_v45, 4  ;;  %v9328_v62 = vsel %vm1595_vm10, %v3367_v38, %v3368_v41 }
 0x18d   : > { %7987 = vmatpush3.bf16.msra.mxu1 %v8655_v3  ;;  %v9325_v58 = vld [vmem:[#allocation2 + $0x100] sm:$0xf0]  ;;  %v3718_v61 = vld [vmem:[#allocation2 + $0x18] sm:$0x1f]  ;;  %v9331_v63 = vsel %vm1595_vm10, %v1635_v42, %v1636_v44  ;;  %v9333_v3 = vld [vmem:[#allocation2 + $0x108] sm:$0xf]  ;;  %v9337_v6 = vsel %vm1595_vm10, %v1638_v46, %v1639_v48 }
 0x18e   : > { %7988 = vmatprep.subr.bf16.mxu1 %v9264_v17  ;;  %v1982_v0 = vld [vmem:[#allocation2] sm:$0xf0]  ;;  %v3750_v5 = vshrl.u32 %v3717_v20, 16  ;;  %v3753_v40 = vshll.u32 %v3717_v20, 16  ;;  %v1983_v15 = vld [vmem:[#allocation2 + $0x8] sm:$0x1f]  ;;  %v9353_v25 = vsel %vm1595_vm10, %v3370_v56, %v3371_v57 }
 0x18f   : > { %7847 = vmatpush3.bf16.msra.mxu0 %v8664_v16  ;;  %7957 = vmatmul.mubr.bf16.gmra.mrb[8].mxu1 %v9222_v60  ;;  %v3373_v11 = vrot.slane %v9298_v49, 4  ;;  %v3374_v12 = vrot.slane %v9312_v53, 4  ;;  %v1641_v13 = vrot.slane %v9314_v59, 4  ;;  %v8667_v1 = vld [vmem:[%s10140_s3 + $0xb8] sm:$0xff]   ;;  %v1984_v16 = vld [vmem:[#allocation2 + $0x10] sm:$0xf0] }
 0x190   : > { %7848 = vmatprep.subr.bf16.mxu0 %v8665_v22  ;;  %7960 = vmatprep.mubr.bf16.mxu1 %v9234_v7  ;;  %v3758_v60 = vshrl.u32 %v3718_v61, 16  ;;  %v3761_v18 = vshll.u32 %v3718_v61, 16  ;;  %v2016_v19 = vshrl.u32 %v1982_v0, 16  ;;  %v2019_v21 = vshll.u32 %v1982_v0, 16  ;;  %v1985_v23 = vld [vmem:[#allocation2 + $0x18] sm:$0x1f] }
 0x191   : > { %7989 = vmatpush3.bf16.msra.mxu1 %v9264_v17  ;;  %v8663_v24 = vld [vmem:[%s10140_s3 + $0x170] sm:$0xff]   ;;  %v1642_v7 = vrot.slane %v9316_v27, 4  ;;  %v2024_v26 = vshrl.u32 %v1983_v15, 16  ;;  %v2027_v17 = vshll.u32 %v1983_v15, 16  ;;  %v1986_v31 = vld [vmem:[#allocation2 + $0x20] sm:$0xf0]  ;;  %v9369_v46 = vsel %vm1595_vm10, %v3373_v11, %v3374_v12 }
 0x192   : > { %7817 = vmatmul.mubr.bf16.gmra.mrb[44].mxu0 %v9237_v2  ;;  %7990 = vmatprep.subr.bf16.mxu1 %v9296_v29  ;;  %v3376_v33 = vrot.slane %v9325_v58, 4  ;;  %v3377_v2 = vrot.slane %v9333_v3, 4  ;;  %v9359_v35 = vrot.slane %v3750_v5, 4  ;;  %v9361_v30 = vrot.slane %v3753_v40, 5  ;;  %v1987_v36 = vld [vmem:[#allocation2 + $0x28] sm:$0x1f] }
 0x193   : > { %7820 = vmatprep.mubr.bf16.mxu0 %v9243_v4  ;;  %7849 = vmatpush3.bf16.msra.mxu0 %v8665_v22  ;;  %v2033_v37 = vshrl.u32 %v1984_v16, 16  ;;  %v2036_v8 = vshll.u32 %v1984_v16, 16  ;;  %v2041_v34 = vshrl.u32 %v1985_v23, 16  ;;  %v2044_v38 = vshll.u32 %v1985_v23, 16  ;;  %v403_v41 = vld [vmem:[#allocation2 + $0x38] sm:$0x10] }
 0x194   : > { %7850 = vmatprep.subr.bf16.mxu0 %v8667_v1  ;;  %v3760_v4 = vrot.slane %v3758_v60, 4  ;;  %v3763_v22 = vrot.slane %v3761_v18, 5  ;;  %v9364_v42 = vrot.slane %v2016_v19, 4  ;;  %v9366_v44 = vrot.slane %v2019_v21, 5  ;;  %v3719_v45 = vld [vmem:[#allocation2 + $0x20] sm:$0xf0] }
 0x195   : > { %7991 = vmatpush3.bf16.msra.mxu1 %v9296_v29  ;;  %v8666_v48 = vld [vmem:[%s10140_s3 + $0x178] sm:$0xff]   ;;  %v9374_v49 = vrot.slane %v2024_v26, 4  ;;  %v2029_v20 = vrot.slane %v2027_v17, 5  ;;  %v2050_v53 = vshrl.u32 %v1986_v31, 16  ;;  %v406_v29 = vld [vmem:[#allocation2 + $0x48] sm:$0x10] }
 0x196   : > { %7992 = vmatprep.subr.bf16.mxu1 %v8663_v24  ;;  %v2053_v56 = vshll.u32 %v1986_v31, 16  ;;  %v2058_v57 = vshrl.u32 %v1987_v36, 16  ;;  %v2061_v61 = vshll.u32 %v1987_v36, 16  ;;  %v3720_v0 = vld [vmem:[#allocation2 + $0x28] sm:$0x1f]  ;;  %v404_v5 = vsel %vm8863_vm5, 0, %v403_v41 }
 0x197   : > { %7851 = vmatpush3.bf16.msra.mxu0 %v8667_v1  ;;  %7961 = vmatmul.mubr.bf16.gmra.mrb[12].mxu1 %v9253_v10  ;;  %v2035_v40 = vrot.slane %v2033_v37, 4  ;;  %v2038_v15 = vrot.slane %v2036_v8, 5  ;;  %v2043_v11 = vrot.slane %v2041_v34, 4  ;;  %v2046_v12 = vrot.slane %v2044_v38, 5  ;;  %405 = vst [vmem:[#allocation2 + $0x38] sm:$0x10] %v404_v5 }
 0x198   : > { %7964 = vmatprep.mubr.bf16.mxu1 %v9288_v14  ;;  %v3756_v1 = vor.u32 %v9361_v30, %v9359_v35  ;;  %v3764_v16 = vor.u32 %v3763_v22, %v3760_v4  ;;  %v2022_v60 = vor.u32 %v9366_v44, %v9364_v42  ;;  %v9387_v18 = vld [vmem:[%s10140_s3 + $0x180] sm:$0xff]   ;;  %v3721_v10 = vld [vmem:[#allocation2 + $0x30] sm:$0xf0]  ;;  %v407_v19 = vsel %vm8863_vm5, 0, %v406_v29  ;;  %v409_v26 = vld [vmem:[#allocation2 + $0x58] sm:$0x10] }
 0x199   : > { %7993 = vmatpush3.bf16.msra.mxu1 %v8663_v24  ;;  %v2052_v14 = vrot.slane %v2050_v53, 4  ;;  %v3767_v21 = vshrl.u32 %v3719_v45, 16  ;;  %v3770_v23 = vshll.u32 %v3719_v45, 16  ;;  %v3775_v24 = vshrl.u32 %v3720_v0, 16  ;;  %408 = vst [vmem:[#allocation2 + $0x48] sm:$0x10] %v407_v19 }
 0x19a   : > { %7821 = vmatmul.mubr.bf16.gmra.mrb[48].mxu0 %v9291_v9  ;;  %7994 = vmatprep.subr.bf16.mxu1 %v8666_v48  ;;  %v2055_v17 = vrot.slane %v2053_v56, 5  ;;  %v2060_v31 = vrot.slane %v2058_v57, 4  ;;  %v2063_v35 = vrot.slane %v2061_v61, 5  ;;  %v3778_v30 = vshll.u32 %v3720_v0, 16  ;;  %v1988_v38 = vld [vmem:[#allocation2 + $0x30] sm:$0xf0] }
 0x19b   : > { %7824 = vmatprep.mubr.bf16.mxu0 %v9301_v47  ;;  %v2030_v36 = vor.u32 %v2029_v20, %v9374_v49  ;;  %v2039_v37 = vor.u32 %v2038_v15, %v2035_v40  ;;  %v2047_v8 = vor.u32 %v2046_v12, %v2043_v11  ;;  %v3784_v34 = vshrl.u32 %v3721_v10, 16  ;;  %v1990_v58 = vld [vmem:[#allocation2 + $0x40] sm:$0xf0]  ;;  %v3725_v0 = vld [vmem:[#allocation2 + $0x50] sm:$0xf0] }
 0x19c   : > { %v9399_v9 = vsel %vm1595_vm10, %v1641_v13, %v1642_v7  ;;  %v9406_v47 = vsel %vm1595_vm10, %v3376_v33, %v3377_v2  ;;  %v3787_v41 = vshll.u32 %v3721_v10, 16  ;;  %v410_v4 = vsel %vm8863_vm5, 0, %v409_v26  ;;  %v3723_v53 = vld [vmem:[#allocation2 + $0x40] sm:$0xf0] }
 0x19d   : > { %7995 = vmatpush3.bf16.msra.mxu1 %v8666_v48  ;;  %v9411_v22 = vsel %vm2014_vm11, %v3756_v1, %v3764_v16  ;;  %v9414_v59 = vrot.slane %v3767_v21, 4  ;;  %v9416_v27 = vrot.slane %v3770_v23, 5  ;;  %v9418_v3 = vrot.slane %v3775_v24, 4  ;;  %411 = vst [vmem:[#allocation2 + $0x58] sm:$0x10] %v410_v4 }
 0x19e   : > { %8028 = vmatprep.subr.bf16.mxu1 %v9387_v18  ;;  %v2056_v13 = vor.u32 %v2055_v17, %v2052_v14  ;;  %v2064_v7 = vor.u32 %v2063_v35, %v2060_v31  ;;  %v3780_v33 = vrot.slane %v3778_v30, 5  ;;  %v3722_v2 = vld [vmem:[#allocation2 + $0x38] sm:$0x1f]  ;;  %v2067_v44 = vshrl.u32 %v1988_v38, 16  ;;  %v9444_v21 = vld [vmem:[#allocation2 + $0x50] sm:$0xf0] }
 0x19f   : > { %v1989_v42 = vld [vmem:[#allocation2 + $0x38] sm:$0x1f]  ;;  %7965 = vmatmul.mubr.bf16.gmra.mrb[16].mxu1 %v9304_v50  ;;  %v9422_v45 = vsel %vm2014_vm11, %v2022_v60, %v2030_v36  ;;  %v9425_v48 = vsel %vm2014_vm11, %v2039_v37, %v2047_v8  ;;  %v9427_v49 = vrot.slane %v3784_v34, 4  ;;  %v2070_v20 = vshll.u32 %v1988_v38, 16  ;;  %v412_v17 = vld [vmem:[#allocation2 + $0x68] sm:$0x10] }
 0x1a0   : > { %7968 = vmatprep.mubr.bf16.mxu1 %v9307_v51  ;;  %v9430_v29 = vrot.slane %v3787_v41, 5  ;;  %v3792_v56 = vshrl.u32 %v3722_v2, 16  ;;  %v3795_v57 = vshll.u32 %v3722_v2, 16  ;;  %v2084_v61 = vshrl.u32 %v1990_v58, 16  ;;  %v1991_v1 = vld [vmem:[#allocation2 + $0x48] sm:$0x1f] }
 0x1a1   : > { %v3773_v50 = vor.u32 %v9416_v27, %v9414_v59  ;;  %v2075_v5 = vshrl.u32 %v1989_v42, 16  ;;  %v2078_v40 = vshll.u32 %v1989_v42, 16  ;;  %v2087_v15 = vshll.u32 %v1990_v58, 16  ;;  %v415_v58 = vld [vmem:[#allocation2 + $0x78] sm:$0x10] }
 0x1a2   : > { %7825 = vmatmul.mubr.bf16.gmra.mrb[52].mxu0 %v9310_v52  ;;  %v9437_v11 = vsel %vm2014_vm11, %v2056_v13, %v2064_v7  ;;  %v3781_v51 = vor.u32 %v3780_v33, %v9418_v3  ;;  %v9440_v12 = vrot.slane %v2067_v44, 4  ;;  %v3801_v16 = vshrl.u32 %v3723_v53, 16  ;;  %v3724_v52 = vld [vmem:[#allocation2 + $0x48] sm:$0x1f] }
 0x1a3   : > { %7828 = vmatprep.mubr.bf16.mxu0 %v9320_v54  ;;  %v9442_v60 = vrot.slane %v2070_v20, 5  ;;  %v3804_v10 = vshll.u32 %v3723_v53, 16  ;;  %v3818_v19 = vshrl.u32 %v3725_v0, 16  ;;  %v3821_v14 = vshll.u32 %v3725_v0, 16  ;;  %v1994_v20 = vld [vmem:[#allocation2 + $0x60] sm:$0xf0] }
 0x1a4   : > { %v3790_v54 = vor.u32 %v9430_v29, %v9427_v49  ;;  %v3794_v23 = vrot.slane %v3792_v56, 4  ;;  %v3797_v24 = vrot.slane %v3795_v57, 5  ;;  %v9448_v26 = vrot.slane %v2084_v61, 4  ;;  %v3726_v37 = vld [vmem:[#allocation2 + $0x58] sm:$0x1f] }
 0x1a5   : > { %v2077_v31 = vrot.slane %v2075_v5, 4  ;;  %v2080_v35 = vrot.slane %v2078_v40, 5  ;;  %v9450_v30 = vrot.slane %v2087_v15, 5  ;;  %v2092_v36 = vshrl.u32 %v1991_v1, 16  ;;  %v1993_v56 = vld [vmem:[#allocation2 + $0x58] sm:$0x1f] }
 0x1a6   : > { %v2095_v8 = vshll.u32 %v1991_v1, 16  ;;  %v9452_v34 = vrot.slane %v3801_v16, 4  ;;  %v3809_v38 = vshrl.u32 %v3724_v52, 16  ;;  %v3812_v41 = vshll.u32 %v3724_v52, 16  ;;  %v3727_v5 = vld [vmem:[#allocation2 + $0x60] sm:$0xf0] }
 0x1a7   : > { %7969 = vmatmul.mubr.bf16.gmra.mrb[20].mxu1 %v9323_v55  ;;  %v9455_v4 = vrot.slane %v3804_v10, 5  ;;  %v9457_v59 = vrot.slane %v3818_v19, 4  ;;  %v9459_v27 = vrot.slane %v3821_v14, 5  ;;  %v413_v3 = vsel %vm8863_vm5, 0, %v412_v17  ;;  %v3729_v1 = vld [vmem:[#allocation2 + $0x70] sm:$0xf0] }
 0x1a8   : > { %7972 = vmatprep.mubr.bf16.mxu1 %v9328_v62  ;;  %v3798_v13 = vor.u32 %v3797_v24, %v3794_v23  ;;  %v3826_v7 = vshrl.u32 %v3726_v37, 16  ;;  %v3829_v33 = vshll.u32 %v3726_v37, 16  ;;  %v2101_v2 = vshrl.u32 %v9444_v21, 16  ;;  %414 = vst [vmem:[#allocation2 + $0x68] sm:$0x10] %v413_v3 }
 0x1a9   : > { %v9467_v55 = vsel %vm2014_vm11, %v3773_v50, %v3781_v51  ;;  %v2073_v42 = vor.u32 %v9442_v60, %v9440_v12  ;;  %v2081_v44 = vor.u32 %v2080_v35, %v2077_v31  ;;  %v2094_v49 = vrot.slane %v2092_v36, 4  ;;  %v1996_v19 = vld [vmem:[#allocation2 + $0x70] sm:$0xf0] }
 0x1aa   : > { %7829 = vmatmul.mubr.bf16.gmra.mrb[56].mxu0 %v9331_v63  ;;  %v2097_v62 = vrot.slane %v2095_v8, 5  ;;  %v3811_v53 = vrot.slane %v3809_v38, 4  ;;  %v3814_v29 = vrot.slane %v3812_v41, 5  ;;  %v416_v57 = vsel %vm8863_vm5, 0, %v415_v58 }
 0x1ab   : > { %7832 = vmatprep.mubr.bf16.mxu0 %v9337_v6  ;;  %v2090_v63 = vor.u32 %v9450_v30, %v9448_v26  ;;  %v3807_v61 = vor.u32 %v9455_v4, %v9452_v34  ;;  %v3824_v0 = vor.u32 %v9459_v27, %v9457_v59  ;;  %v2104_v50 = vshll.u32 %v9444_v21, 16  ;;  %417 = vst [vmem:[#allocation2 + $0x78] sm:$0x10] %v416_v57  ;;  %v418_v6 = vld [vmem:[#allocation2 + $0x88] sm:$0x10] }
 0x1ac   : > { %v9482_v40 = vsel %vm2014_vm11, %v3790_v54, %v3798_v13  ;;  %v3828_v15 = vrot.slane %v3826_v7, 4  ;;  %v3831_v51 = vrot.slane %v3829_v33, 5  ;;  %v9484_v12 = vrot.slane %v2101_v2, 4  ;;  %v421_v57 = vld [vmem:[#allocation2 + $0x98] sm:$0x10] }
 0x1ad   : > { %v2109_v16 = vshrl.u32 %v1993_v56, 16  ;;  %v2112_v60 = vshll.u32 %v1993_v56, 16  ;;  %v2118_v52 = vshrl.u32 %v1994_v20, 16  ;;  %v2121_v10 = vshll.u32 %v1994_v20, 16 }
 0x1ae   : > { %v9487_v14 = vsel %vm2014_vm11, %v2073_v42, %v2081_v44  ;;  %v2098_v21 = vor.u32 %v2097_v62, %v2094_v49  ;;  %v3815_v23 = vor.u32 %v3814_v29, %v3811_v53  ;;  %v419_v24 = vsel %vm8863_vm5, 0, %v418_v6 }
 0x1af   : > { %7973 = vmatmul.mubr.bf16.gmra.mrb[24].mxu1 %v9353_v25  ;;  %v1995_v54 = vld [vmem:[#allocation2 + $0x68] sm:$0x1f]  ;;  %v3835_v26 = vshrl.u32 %v3727_v5, 16  ;;  %v3838_v17 = vshll.u32 %v3727_v5, 16  ;;  %v3852_v31 = vshrl.u32 %v3729_v1, 16  ;;  %v3855_v35 = vshll.u32 %v3729_v1, 16 }
 0x1b0   : > { %420 = vst [vmem:[#allocation2 + $0x88] sm:$0x10] %v419_v24  ;;  %7976 = vmatprep.mubr.bf16.mxu1 %v9369_v46  ;;  %v3832_v30 = vor.u32 %v3831_v51, %v3828_v15  ;;  %v9493_v36 = vrot.slane %v2104_v50, 5  ;;  %v2135_v37 = vshrl.u32 %v1996_v19, 16  ;;  %v2138_v8 = vshll.u32 %v1996_v19, 16 }
 0x1b1   : > { %v9496_v34 = vrot.slane %v2109_v16, 4  ;;  %v9498_v38 = vrot.slane %v2112_v60, 5  ;;  %v9500_v25 = vrot.slane %v2118_v52, 4  ;;  %v9502_v41 = vrot.slane %v2121_v10, 5  ;;  %v3728_v3 = vld [vmem:[#allocation2 + $0x68] sm:$0x1f] }
 0x1b2   : > { %7833 = vmatmul.mubr.bf16.gmra.mrb[60].mxu0 %v9399_v9  ;;  %v9506_v4 = vsel %vm2014_vm11, %v2090_v63, %v2098_v21  ;;  %v9509_v46 = vsel %vm2014_vm11, %v3807_v61, %v3815_v23  ;;  %v2126_v59 = vshrl.u32 %v1995_v54, 16  ;;  %v2129_v27 = vshll.u32 %v1995_v54, 16  ;;  %v1998_v9 = vld [vmem:[#allocation2 + $0x80] sm:$0xf0]  ;;  %v3730_v42 = vld [vmem:[#allocation2 + $0x78] sm:$0x1f] }
 0x1b3   : > { %7852 = vmatprep.mubr.bf16.mxu0 %v9422_v45  ;;  %v9511_v58 = vrot.slane %v3835_v26, 4  ;;  %v9513_v13 = vrot.slane %v3838_v17, 5  ;;  %v9515_v7 = vrot.slane %v3852_v31, 4  ;;  %v9517_v33 = vrot.slane %v3855_v35, 5  ;;  %v1997_v44 = vld [vmem:[#allocation2 + $0x78] sm:$0x1f] }
 0x1b4   : > { %v9520_v45 = vsel %vm2014_vm11, %v3824_v0, %v3832_v30  ;;  %v2107_v2 = vor.u32 %v9493_v36, %v9484_v12  ;;  %v9524_v49 = vrot.slane %v2135_v37, 4  ;;  %v9526_v20 = vrot.slane %v2138_v8, 5  ;;  %v3731_v16 = vld [vmem:[#allocation2 + $0x80] sm:$0xf0]  ;;  %v424_v21 = vld [vmem:[#allocation2 + $0xa8] sm:$0x10] }
 0x1b5   : > { %v2115_v62 = vor.u32 %v9498_v38, %v9496_v34  ;;  %v2124_v53 = vor.u32 %v9502_v41, %v9500_v25  ;;  %v3843_v29 = vshrl.u32 %v3728_v3, 16  ;;  %v2152_v56 = vshrl.u32 %v1998_v9, 16  ;;  %v2000_v37 = vld [vmem:[#allocation2 + $0x90] sm:$0xf0] }
 0x1b6   : > { %v9532_v63 = vrot.slane %v2126_v59, 4  ;;  %v9534_v61 = vrot.slane %v2129_v27, 5  ;;  %v3846_v0 = vshll.u32 %v3728_v3, 16  ;;  %v2155_v5 = vshll.u32 %v1998_v9, 16  ;;  %v2002_v3 = vld [vmem:[#allocation2 + $0xa0] sm:$0xf0] }
 0x1b7   : > { %v1999_v50 = vld [vmem:[#allocation2 + $0x88] sm:$0x1f]  ;;  %7977 = vmatmul.mubr.bf16.gmra.mrb[28].mxu1 %v9406_v47  ;;  %v3860_v6 = vshrl.u32 %v3730_v42, 16  ;;  %v3863_v15 = vshll.u32 %v3730_v42, 16  ;;  %v2143_v51 = vshrl.u32 %v1997_v44, 16  ;;  %v2146_v1 = vshll.u32 %v1997_v44, 16 }
 0x1b8   : > { %7996 = vmatprep.mubr.bf16.mxu1 %v9411_v22  ;;  %v3841_v60 = vor.u32 %v9513_v13, %v9511_v58  ;;  %v3858_v52 = vor.u32 %v9517_v33, %v9515_v7  ;;  %v2141_v10 = vor.u32 %v9526_v20, %v9524_v49  ;;  %v422_v19 = vsel %vm8863_vm5, 0, %v421_v57  ;;  %v3733_v47 = vld [vmem:[#allocation2 + $0x90] sm:$0xf0]  ;;  %v3732_v26 = vld [vmem:[#allocation2 + $0x88] sm:$0x1f]  ;;  %v8671_v58 = vld [vmem:[%s10140_s3 + $0x198] sm:$0xff]  }
 0x1b9   : > { %v9547_v23 = vrot.slane %v3843_v29, 4  ;;  %v9549_v24 = vrot.slane %v2152_v56, 4  ;;  %v2160_v22 = vshrl.u32 %v1999_v50, 16  ;;  %v2163_v54 = vshll.u32 %v1999_v50, 16  ;;  %423 = vst [vmem:[#allocation2 + $0x98] sm:$0x10] %v422_v19 }
 0x1ba   : > { %7853 = vmatmul.mubr.bf16.vlgmr.msra.gmra.mrb[32].mxu0 %v9425_v48  ;;  %v2132_v17 = vor.u32 %v9534_v61, %v9532_v63  ;;  %v3848_v31 = vrot.slane %v3846_v0, 5  ;;  %v9554_v35 = vrot.slane %v2155_v5, 5  ;;  %v3869_v30 = vshrl.u32 %v3731_v16, 16  ;;  %v8669_v56 = vld [vmem:[%s10140_s3 + $0x188] sm:$0xff]   ;;  %v3735_v19 = vld [vmem:[#allocation2 + $0xa0] sm:$0xf0] }
 0x1bb   : > { %7856 = vmatprep.mubr.bf16.mxu0 %v9437_v11  ;;  %v3862_v8 = vrot.slane %v3860_v6, 4  ;;  %v3865_v48 = vrot.slane %v3863_v15, 5  ;;  %v2145_v59 = vrot.slane %v2143_v51, 4  ;;  %v2148_v27 = vrot.slane %v2146_v1, 5  ;;  %v427_v11 = vld [vmem:[#allocation2 + $0xb8] sm:$0x10] }
 0x1bc   : > { %v3872_v9 = vshll.u32 %v3731_v16, 16  ;;  %v3877_v42 = vshrl.u32 %v3732_v26, 16  ;;  %v3880_v44 = vshll.u32 %v3732_v26, 16  ;;  %v425_v29 = vsel %vm8863_vm5, 0, %v424_v21  ;;  %v3737_v41 = vld [vmem:[#allocation2 + $0xb0] sm:$0xf0] }
 0x1bd   : > { %v2162_v57 = vrot.slane %v2160_v22, 4  ;;  %v2165_v63 = vrot.slane %v2163_v54, 5  ;;  %v3886_v61 = vshrl.u32 %v3733_v47, 16  ;;  %v3889_v0 = vshll.u32 %v3733_v47, 16  ;;  %426 = vst [vmem:[#allocation2 + $0xa8] sm:$0x10] %v425_v29 }
 0x1be   : > { %v3849_v50 = vor.u32 %v3848_v31, %v9547_v23  ;;  %v2158_v5 = vor.u32 %v9554_v35, %v9549_v24  ;;  %v2169_v6 = vshrl.u32 %v2000_v37, 16  ;;  %v2172_v15 = vshll.u32 %v2000_v37, 16  ;;  %v2004_v20 = vld [vmem:[#allocation2 + $0xb0] sm:$0xf0] }
 0x1bf   : > { %7997 = vmatmul.mubr.bf16.vlgmr.msra.gmra.mrb[0].mxu1 %v9467_v55  ;;  %v9565_v51 = vrot.slane %v3869_v30, 4  ;;  %v2186_v1 = vshrl.u32 %v2002_v3, 16  ;;  %v2189_v16 = vshll.u32 %v2002_v3, 16  ;;  %v428_v21 = vsel %vm8863_vm5, 0, %v427_v11  ;;  %v8670_v55 = vld [vmem:[%s10140_s3 + $0x190] sm:$0xff]  }
 0x1c0   : > { %8029 = vmatpush3.bf16.msra.mxu1 %v9387_v18  ;;  %8000 = vmatprep.mubr.bf16.mxu1 %v9482_v40  ;;  %v3866_v47 = vor.u32 %v3865_v48, %v3862_v8  ;;  %v2149_v23 = vor.u32 %v2148_v27, %v2145_v59  ;;  %v9571_v22 = vrot.slane %v3872_v9, 5  ;;  %v9573_v24 = vrot.slane %v3877_v42, 4  ;;  %429 = vst [vmem:[#allocation2 + $0xb8] sm:$0x10] %v428_v21  ;;  %v3734_v18 = vld [vmem:[#allocation2 + $0x98] sm:$0x1f] }
 0x1c1   : > { %8030 = vmatprep.subr.bf16.mxu1 %v8669_v56  ;;  %v2166_v54 = vor.u32 %v2165_v63, %v2162_v57  ;;  %v9579_v26 = vrot.slane %v3880_v44, 5  ;;  %v9581_v31 = vrot.slane %v3886_v61, 4  ;;  %v9583_v40 = vrot.slane %v3889_v0, 5  ;;  %v2001_v48 = vld [vmem:[#allocation2 + $0x98] sm:$0x1f] }
 0x1c2   : > { %7857 = vmatmul.mubr.bf16.gmra.mrb[36].mxu0 %v9487_v14  ;;  %v2116_v14 = vsel %vm2014_vm11, %v2107_v2, %v2115_v62  ;;  %v9593_v35 = vrot.slane %v2169_v6, 4  ;;  %v9595_v30 = vrot.slane %v2172_v15, 5  ;;  %v3903_v37 = vshrl.u32 %v3735_v19, 16 }
 0x1c3   : > { %7860 = vmatprep.mubr.bf16.mxu0 %v9506_v4  ;;  %v2133_v8 = vsel %vm2014_vm11, %v2124_v53, %v2132_v17  ;;  %v9601_v4 = vrot.slane %v2186_v1, 4  ;;  %v9603_v59 = vrot.slane %v2189_v16, 5  ;;  %v3906_v34 = vshll.u32 %v3735_v19, 16  ;;  %v430_v17 = vld [vmem:[#allocation2 + $0xc8] sm:$0x10] }
 0x1c4   : > { %8031 = vmatpush3.bf16.msra.mxu1 %v8669_v56  ;;  %v9609_v12 = vsel %vm2014_vm11, %v3841_v60, %v3849_v50  ;;  %v9615_v36 = vsel %vm2014_vm11, %v3858_v52, %v3866_v47  ;;  %v9621_v38 = vsel %vm2014_vm11, %v2141_v10, %v2149_v23  ;;  %v3894_v25 = vshrl.u32 %v3734_v18, 16  ;;  %v2003_v49 = vld [vmem:[#allocation2 + $0xa8] sm:$0x1f]  ;;  %v433_v23 = vld [vmem:[#allocation2 + $0xd8] sm:$0x10] }
 0x1c5   : > { %8032 = vmatprep.subr.bf16.mxu1 %v8670_v55  ;;  %v9627_v13 = vsel %vm2014_vm11, %v2158_v5, %v2166_v54  ;;  %v3875_v7 = vor.u32 %v9571_v22, %v9565_v51  ;;  %v3883_v33 = vor.u32 %v9579_v26, %v9573_v24  ;;  %v3892_v2 = vor.u32 %v9583_v40, %v9581_v31  ;;  %v3736_v52 = vld [vmem:[#allocation2 + $0xa8] sm:$0x1f] }
 0x1c6   : > { %v3897_v62 = vshll.u32 %v3734_v18, 16  ;;  %v2175_v53 = vor.u32 %v9595_v30, %v9593_v35  ;;  %v2177_v60 = vshrl.u32 %v2001_v48, 16  ;;  %v9637_v10 = vrot.slane %v3903_v37, 4  ;;  %v2006_v37 = vld [vmem:[#allocation2 + $0xc0] sm:$0xf0]  ;;  %v8675_v35 = vld [vmem:[%s10140_s3 + $0x1b8] sm:$0xff]  }
 0x1c7   : > { %8001 = vmatmul.mubr.bf16.gmra.mrb[4].mxu1 %v9509_v46  ;;  %v2180_v27 = vshll.u32 %v2001_v48, 16  ;;  %v2192_v3 = vor.u32 %v9603_v59, %v9601_v4  ;;  %v9642_v9 = vrot.slane %v3906_v34, 5  ;;  %v3738_v42 = vld [vmem:[#allocation2 + $0xb8] sm:$0x1f]  ;;  %v3920_v44 = vshrl.u32 %v3737_v41, 16  ;;  %v8672_v46 = vld [vmem:[%s10140_s3 + $0x1a0] sm:$0xff]  }
 0x1c8   : > { %8004 = vmatprep.mubr.bf16.mxu1 %v9520_v45  ;;  %8033 = vmatpush3.bf16.msra.mxu1 %v8670_v55  ;;  %v9645_v29 = vrot.slane %v3894_v25, 4  ;;  %v2194_v11 = vshrl.u32 %v2003_v49, 16  ;;  %v2197_v56 = vshll.u32 %v2003_v49, 16  ;;  %v3923_v57 = vshll.u32 %v3737_v41, 16  ;;  %v2005_v63 = vld [vmem:[#allocation2 + $0xb8] sm:$0x1f] }
 0x1c9   : > { %8034 = vmatprep.subr.bf16.mxu1 %v8671_v58  ;;  %v3911_v61 = vshrl.u32 %v3736_v52, 16  ;;  %v3914_v0 = vshll.u32 %v3736_v52, 16  ;;  %v3928_v50 = vshrl.u32 %v3738_v42, 16  ;;  %v3931_v5 = vshll.u32 %v3738_v42, 16  ;;  %v8673_v41 = vld [vmem:[%s10140_s3 + $0x1a8] sm:$0xff]  }
 0x1ca   : > { %7861 = vmatmul.mubr.bf16.gmra.mrb[40].mxu0 %v2116_v14  ;;  %v3899_v6 = vrot.slane %v3897_v62, 5  ;;  %v2179_v45 = vrot.slane %v2177_v60, 4  ;;  %v2203_v15 = vshrl.u32 %v2004_v20, 16  ;;  %v2206_v1 = vshll.u32 %v2004_v20, 16  ;;  %v436_v60 = vld [vmem:[#allocation2 + $0xe8] sm:$0x10] }
 0x1cb   : > { %7864 = vmatprep.mubr.bf16.mxu0 %v2133_v8  ;;  %v2182_v16 = vrot.slane %v2180_v27, 5  ;;  %v2211_v19 = vshrl.u32 %v2005_v63, 16  ;;  %v2214_v21 = vshll.u32 %v2005_v63, 16  ;;  %v431_v47 = vsel %vm8863_vm5, 0, %v430_v17 }
 0x1cc   : > { %8035 = vmatpush3.bf16.msra.mxu1 %v8671_v58  ;;  %v2196_v55 = vrot.slane %v2194_v11, 4  ;;  %v2199_v54 = vrot.slane %v2197_v56, 5  ;;  %v3922_v18 = vrot.slane %v3920_v44, 4  ;;  %v3925_v14 = vrot.slane %v3923_v57, 5  ;;  %432 = vst [vmem:[#allocation2 + $0xc8] sm:$0x10] %v431_v47 }
 0x1cd   : > { %8036 = vmatprep.subr.bf16.mxu1 %v8672_v46  ;;  %v3913_v8 = vrot.slane %v3911_v61, 4  ;;  %v3916_v48 = vrot.slane %v3914_v0, 5  ;;  %v3930_v34 = vrot.slane %v3928_v50, 4  ;;  %v3933_v25 = vrot.slane %v3931_v5, 5  ;;  %v3739_v44 = vld [vmem:[#allocation2 + $0xc0] sm:$0xf0] }
 0x1ce   : > { %v3909_v49 = vor.u32 %v9642_v9, %v9637_v10  ;;  %v2205_v20 = vrot.slane %v2203_v15, 4  ;;  %v2208_v58 = vrot.slane %v2206_v1, 5  ;;  %v434_v62 = vsel %vm8863_vm5, 0, %v433_v23  ;;  %v8674_v61 = vld [vmem:[%s10140_s3 + $0x1b0] sm:$0xff]   ;;  %v2010_v47 = vld [vmem:[#allocation2 + $0xe0] sm:$0xf0] }
 0x1cf   : > { %8005 = vmatmul.mubr.bf16.gmra.mrb[8].mxu1 %v9609_v12  ;;  %v2213_v52 = vrot.slane %v2211_v19, 4  ;;  %v2216_v17 = vrot.slane %v2214_v21, 5  ;;  %v2220_v27 = vshrl.u32 %v2006_v37, 16  ;;  %v2223_v42 = vshll.u32 %v2006_v37, 16  ;;  %435 = vst [vmem:[#allocation2 + $0xd8] sm:$0x10] %v434_v62 }
 0x1d0   : > { %8008 = vmatprep.mubr.bf16.mxu1 %v9615_v36  ;;  %v3900_v11 = vor.u32 %v3899_v6, %v9645_v29  ;;  %v2183_v56 = vor.u32 %v2182_v16, %v2179_v45  ;;  %v2200_v10 = vor.u32 %v2199_v54, %v2196_v55  ;;  %8037 = vmatpush3.bf16.msra.mxu1 %v8672_v46  ;;  %v3741_v12 = vld [vmem:[#allocation2 + $0xd0] sm:$0xf0]  ;;  %v437_v0 = vsel %vm8863_vm5, 0, %v436_v60  ;;  %v9709_v23 = vld [vmem:[%s10140_s3 + $0x1c0] sm:$0xff]   ;;  %v439_v37 = vld [vmem:[#allocation2 + $0xf8] sm:$0x10] }
 0x1d1   : > { %v3917_v9 = vor.u32 %v3916_v48, %v3913_v8  ;;  %v3926_v57 = vor.u32 %v3925_v14, %v3922_v18  ;;  %v3934_v63 = vor.u32 %v3933_v25, %v3930_v34  ;;  %8038 = vmatprep.subr.bf16.mxu1 %v8673_v41  ;;  %v3884_v36 = vsel %vm2014_vm11, %v3875_v7, %v3883_v33  ;;  %v2008_v46 = vld [vmem:[#allocation2 + $0xd0] sm:$0xf0]  ;;  %v3743_v60 = vld [vmem:[#allocation2 + $0xe0] sm:$0xf0] }
 0x1d2   : > { %7865 = vmatmul.mubr.bf16.gmra.mrb[44].mxu0 %v9621_v38  ;;  %v2209_v38 = vor.u32 %v2208_v58, %v2205_v20  ;;  %v3937_v29 = vshrl.u32 %v3739_v44, 16  ;;  %438 = vst [vmem:[#allocation2 + $0xe8] sm:$0x10] %v437_v0  ;;  %v2217_v50 = vor.u32 %v2216_v17, %v2213_v52  ;;  %v9676_v6 = vrot.slane %v2220_v27, 4  ;;  %v442_v0 = vld [vmem:[#allocation2 + $0x108] sm:$0x10] }
 0x1d3   : > { %7868 = vmatprep.mubr.bf16.mxu0 %v9627_v13  ;;  %v2007_v5 = vld [vmem:[#allocation2 + $0xc8] sm:$0x1f]  ;;  %v9678_v45 = vrot.slane %v2223_v42, 5  ;;  %v3940_v15 = vshll.u32 %v3739_v44, 16  ;;  %v3901_v24 = vsel %vm2014_vm11, %v3892_v2, %v3900_v11  ;;  %v2184_v51 = vsel %vm2014_vm11, %v2175_v53, %v2183_v56 }
 0x1d4   : > { %v2201_v22 = vsel %vm2014_vm11, %v2192_v3, %v2200_v10  ;;  %v3740_v26 = vld [vmem:[#allocation2 + $0xc8] sm:$0x1f]  ;;  %8039 = vmatpush3.bf16.msra.mxu1 %v8673_v41  ;;  %v3954_v13 = vshrl.u32 %v3741_v12, 16  ;;  %v3918_v7 = vsel %vm2014_vm11, %v3909_v49, %v3917_v9  ;;  %v9694_v33 = vsel %vm2014_vm11, %v3926_v57, %v3934_v63 }
 0x1d5   : > { %v2228_v31 = vshrl.u32 %v2007_v5, 16  ;;  %v2231_v40 = vshll.u32 %v2007_v5, 16  ;;  %8040 = vmatprep.subr.bf16.mxu1 %v8674_v61  ;;  %v9699_v30 = vrot.slane %v3937_v29, 4  ;;  %v3957_v59 = vshll.u32 %v3741_v12, 16 }
 0x1d6   : > { %v3742_v4 = vld [vmem:[#allocation2 + $0xd8] sm:$0x1f]  ;;  %v2237_v2 = vshrl.u32 %v2008_v46, 16  ;;  %v2240_v53 = vshll.u32 %v2008_v46, 16  ;;  %v2218_v3 = vsel %vm2014_vm11, %v2209_v38, %v2217_v50  ;;  %v2226_v1 = vor.u32 %v9678_v45, %v9676_v6 }
 0x1d7   : > { %8009 = vmatmul.mubr.bf16.gmra.mrb[12].mxu1 %v3884_v36  ;;  %v9704_v16 = vrot.slane %v3940_v15, 5  ;;  %v3945_v19 = vshrl.u32 %v3740_v26, 16  ;;  %v2009_v21 = vld [vmem:[#allocation2 + $0xd8] sm:$0x1f]  ;;  %v3948_v55 = vshll.u32 %v3740_v26, 16  ;;  %v9711_v54 = vrot.slane %v3954_v13, 4 }
 0x1d8   : > { %8012 = vmatprep.mubr.bf16.mxu1 %v3901_v24  ;;  %v3962_v18 = vshrl.u32 %v3742_v4, 16  ;;  %v3965_v14 = vshll.u32 %v3742_v4, 16  ;;  %8041 = vmatpush3.bf16.msra.mxu1 %v8674_v61  ;;  %v2230_v8 = vrot.slane %v2228_v31, 4  ;;  %v2233_v48 = vrot.slane %v2231_v40, 5  ;;  %v3745_v15 = vld [vmem:[#allocation2 + $0xf0] sm:$0xf0] }
 0x1d9   : > { %v2245_v34 = vshrl.u32 %v2009_v21, 16  ;;  %v2248_v25 = vshll.u32 %v2009_v21, 16  ;;  %v2011_v41 = vld [vmem:[#allocation2 + $0xe8] sm:$0x1f]  ;;  %8042 = vmatprep.subr.bf16.mxu1 %v8675_v35  ;;  %v3959_v49 = vrot.slane %v3957_v59, 5  ;;  %v9713_v20 = vrot.slane %v2237_v2, 4 }
 0x1da   : > { %7869 = vmatmul.mubr.bf16.gmra.mrb[48].mxu0 %v2184_v51  ;;  %v2242_v58 = vrot.slane %v2240_v53, 5  ;;  %v2254_v62 = vshrl.u32 %v2010_v47, 16  ;;  %v3947_v52 = vrot.slane %v3945_v19, 4  ;;  %v2257_v17 = vshll.u32 %v2010_v47, 16  ;;  %v3744_v44 = vld [vmem:[#allocation2 + $0xe8] sm:$0x1f] }
 0x1db   : > { %7872 = vmatprep.mubr.bf16.mxu0 %v2201_v22  ;;  %v2262_v27 = vshrl.u32 %v2011_v41, 16  ;;  %v2265_v42 = vshll.u32 %v2011_v41, 16  ;;  %v3950_v11 = vrot.slane %v3948_v55, 5  ;;  %v3964_v56 = vrot.slane %v3962_v18, 4  ;;  %v3747_v41 = vld [vmem:[#allocation2 + $0x100] sm:$0xf0] }
 0x1dc   : > { %v3967_v10 = vrot.slane %v3965_v14, 5  ;;  %v440_v9 = vsel %vm8863_vm5, 0, %v439_v37  ;;  %8043 = vmatpush3.bf16.msra.mxu1 %v8675_v35  ;;  %v2234_v57 = vor.u32 %v2233_v48, %v2230_v8  ;;  %v2247_v63 = vrot.slane %v2245_v34, 4  ;;  %v2012_v35 = vld [vmem:[#allocation2 + $0xf0] sm:$0xf0] }
 0x1dd   : > { %v2250_v12 = vrot.slane %v2248_v25, 5  ;;  %v3971_v61 = vshrl.u32 %v3743_v60, 16  ;;  %441 = vst [vmem:[#allocation2 + $0xf8] sm:$0x10] %v440_v9  ;;  %8076 = vmatprep.subr.bf16.mxu1 %v9709_v23  ;;  %v3943_v36 = vor.u32 %v9704_v16, %v9699_v30  ;;  %v3974_v38 = vshll.u32 %v3743_v60, 16 }
 0x1de   : > { %v3979_v29 = vshrl.u32 %v3744_v44, 16  ;;  %v3982_v46 = vshll.u32 %v3744_v44, 16  ;;  %v2256_v50 = vrot.slane %v2254_v62, 4  ;;  %v2259_v5 = vrot.slane %v2257_v17, 5 }
 0x1df   : > { %8013 = vmatmul.mubr.bf16.gmra.mrb[16].mxu1 %v3918_v7  ;;  %v2264_v6 = vrot.slane %v2262_v27, 4  ;;  %v2267_v45 = vrot.slane %v2265_v42, 5  ;;  %v3951_v24 = vor.u32 %v3950_v11, %v3947_v52  ;;  %v3960_v51 = vor.u32 %v3959_v49, %v9711_v54  ;;  %v4360_v49 = vld [vmem:[#allocation2 + $0x20] sm:$0xf8]  ;;  %v4361_v52 = vld [vmem:[#allocation2 + $0x28] sm:$0xf] }
 0x1e0   : > { %8016 = vmatprep.mubr.bf16.mxu1 %v9694_v33  ;;  %v3968_v22 = vor.u32 %v3967_v10, %v3964_v56  ;;  %v443_v26 = vsel %vm8863_vm5, 0, %v442_v0  ;;  %v2235_v13 = vsel %vm2014_vm11, %v2226_v1, %v2234_v57  ;;  %v2243_v31 = vor.u32 %v2242_v58, %v9713_v20 }
 0x1e1   : > { %v2251_v7 = vor.u32 %v2250_v12, %v2247_v63  ;;  %v3973_v40 = vrot.slane %v3971_v61, 4  ;;  %444 = vst [vmem:[#allocation2 + $0x108] sm:$0x10] %v443_v26  ;;  %v3976_v30 = vrot.slane %v3974_v38, 5  ;;  %v3981_v4 = vrot.slane %v3979_v29, 4 }
 0x1e2   : > { %7873 = vmatmul.mubr.bf16.gmra.mrb[52].mxu0 %v2218_v3  ;;  %v3984_v33 = vrot.slane %v3982_v46, 5  ;;  %v3988_v59 = vshrl.u32 %v3745_v15, 16  ;;  %v2260_v2 = vor.u32 %v2259_v5, %v2256_v50  ;;  %v2268_v53 = vor.u32 %v2267_v45, %v2264_v6 }
 0x1e3   : > { %7876 = vmatprep.mubr.bf16.mxu0 %v2235_v13  ;;  %v3991_v16 = vshll.u32 %v3745_v15, 16  ;;  %v3952_v19 = vsel %vm2014_vm11, %v3943_v36, %v3951_v24  ;;  %v3969_v3 = vsel %vm2014_vm11, %v3960_v51, %v3968_v22  ;;  %v2271_v47 = vshrl.u32 %v2012_v35, 16  ;;  %v4362_v24 = vld [vmem:[#allocation2 + $0x30] sm:$0xf8] }
 0x1e4   : > { %v3746_v21 = vld [vmem:[#allocation2 + $0xf8] sm:$0x1f]  ;;  %v2274_v55 = vshll.u32 %v2012_v35, 16  ;;  %v2252_v8 = vsel %vm2014_vm11, %v2243_v31, %v2251_v7  ;;  %v3977_v48 = vor.u32 %v3976_v30, %v3973_v40  ;;  %v3985_v34 = vor.u32 %v3984_v33, %v3981_v4  ;;  %v4364_v35 = vld [vmem:[#allocation2 + $0x40] sm:$0xf8] }
 0x1e5   : > { %v2013_v1 = vld [vmem:[#allocation2 + $0xf8] sm:$0x1f]  ;;  %v3996_v54 = vshrl.u32 %v3746_v21, 16  ;;  %v3999_v18 = vshll.u32 %v3746_v21, 16  ;;  %v3990_v25 = vrot.slane %v3988_v59, 4  ;;  %v2269_v20 = vsel %vm2014_vm11, %v2260_v2, %v2268_v53 }
 0x1e6   : > { %v2279_v14 = vshrl.u32 %v2013_v1, 16  ;;  %v2282_v37 = vshll.u32 %v2013_v1, 16  ;;  %v3993_v58 = vrot.slane %v3991_v16, 5  ;;  %v2273_v17 = vrot.slane %v2271_v47, 4  ;;  %v4363_v31 = vld [vmem:[#allocation2 + $0x38] sm:$0xf] }
 0x1e7   : > { %8017 = vmatmul.mubr.bf16.gmra.mrb[20].mxu1 %v3952_v19  ;;  %v3998_v62 = vrot.slane %v3996_v54, 4  ;;  %v4001_v60 = vrot.slane %v3999_v18, 5  ;;  %v2276_v27 = vrot.slane %v2274_v55, 5  ;;  %v4005_v56 = vshrl.u32 %v3747_v41, 16  ;;  %v4365_v30 = vld [vmem:[#allocation2 + $0x48] sm:$0xf] }
 0x1e8   : > { %8020 = vmatprep.mubr.bf16.mxu1 %v3969_v3  ;;  %v2281_v42 = vrot.slane %v2279_v14, 4  ;;  %v2284_v44 = vrot.slane %v2282_v37, 5  ;;  %v3748_v11 = vld [vmem:[#allocation2 + $0x108] sm:$0x1f]  ;;  %v4008_v10 = vshll.u32 %v3747_v41, 16  ;;  %v4393_v9 = vshrl.u32 %v4360_v49, 16 }
 0x1e9   : > { %v4396_v57 = vshll.u32 %v4360_v49, 16  ;;  %v4013_v63 = vshrl.u32 %v3748_v11, 16  ;;  %v4016_v12 = vshll.u32 %v3748_v11, 16  ;;  %v4401_v61 = vshrl.u32 %v4361_v52, 16 }
 0x1ea   : > { %7877 = vmatmul.mubr.bf16.gmra.mrb[56].mxu0 %v2252_v8  ;;  %v4404_v0 = vshll.u32 %v4361_v52, 16  ;;  %v3994_v36 = vor.u32 %v3993_v58, %v3990_v25  ;;  %v4002_v38 = vor.u32 %v4001_v60, %v3998_v62  ;;  %v3986_v29 = vsel %vm2014_vm11, %v3977_v48, %v3985_v34  ;;  %v4366_v34 = vld [vmem:[#allocation2 + $0x50] sm:$0xf8]  ;;  %v4367_v25 = vld [vmem:[#allocation2 + $0x58] sm:$0xf] }
 0x1eb   : > { %7880 = vmatprep.mubr.bf16.mxu0 %v2269_v20  ;;  %v2277_v46 = vor.u32 %v2276_v27, %v2273_v17  ;;  %v2285_v50 = vor.u32 %v2284_v44, %v2281_v42  ;;  %v4007_v5 = vrot.slane %v4005_v56, 4  ;;  %v4010_v6 = vrot.slane %v4008_v10, 5  ;;  %v4368_v62 = vld [vmem:[#allocation2 + $0x60] sm:$0xf8]  ;;  %v4369_v60 = vld [vmem:[#allocation2 + $0x68] sm:$0xf] }
 0x1ec   : > { %v4395_v45 = vrot.slane %v4393_v9, 3  ;;  %v4398_v15 = vrot.slane %v4396_v57, 4  ;;  %v4015_v51 = vrot.slane %v4013_v63, 4  ;;  %v4018_v22 = vrot.slane %v4016_v12, 5 }
 0x1ed   : > { %v4403_v26 = vrot.slane %v4401_v61, 3  ;;  %v4406_v13 = vrot.slane %v4404_v0, 4  ;;  %v4003_v7 = vsel %vm2014_vm11, %v3994_v36, %v4002_v38  ;;  %v2286_v40 = vsel %vm2014_vm11, %v2277_v46, %v2285_v50  ;;  %v8677_v0 = vld [vmem:[%s10140_s3 + $0x1c8] sm:$0xff]  }
 0x1ee   : > { %v4410_v4 = vshrl.u32 %v4362_v24, 16  ;;  %v4413_v33 = vshll.u32 %v4362_v24, 16  ;;  %v4418_v59 = vshrl.u32 %v4363_v31, 16  ;;  %v4421_v2 = vshll.u32 %v4363_v31, 16  ;;  %v4373_v31 = vld [vmem:[#allocation2 + $0x88] sm:$0xf] }
 0x1ef   : > { %8021 = vmatmul.mubr.bf16.gmra.mrb[24].mxu1 %v3986_v29  ;;  %v4011_v53 = vor.u32 %v4010_v6, %v4007_v5  ;;  %v4019_v16 = vor.u32 %v4018_v22, %v4015_v51  ;;  %v4399_v19 = vor.u32 %v4398_v15, %v4395_v45  ;;  %v4407_v3 = vor.u32 %v4406_v13, %v4403_v26  ;;  %v4370_v29 = vld [vmem:[#allocation2 + $0x70] sm:$0xf8]  ;;  %v4371_v45 = vld [vmem:[#allocation2 + $0x78] sm:$0xf]  ;;  %v4372_v22 = vld [vmem:[#allocation2 + $0x80] sm:$0xf8] }
 0x1f0   : > { %8024 = vmatprep.mubr.bf16.mxu1 %v4003_v7  ;;  %v4427_v21 = vshrl.u32 %v4364_v35, 16  ;;  %v4430_v1 = vshll.u32 %v4364_v35, 16  ;;  %v4435_v47 = vshrl.u32 %v4365_v30, 16  ;;  %v4438_v55 = vshll.u32 %v4365_v30, 16  ;;  %v8678_v7 = vld [vmem:[%s10140_s3 + $0x1d0] sm:$0xff]  }
 0x1f1   : > { %v4412_v54 = vrot.slane %v4410_v4, 3  ;;  %v4415_v18 = vrot.slane %v4413_v33, 4  ;;  %v4420_v14 = vrot.slane %v4418_v59, 3  ;;  %v4423_v37 = vrot.slane %v4421_v2, 4 }
 0x1f2   : > { %7881 = vmatmul.mubr.bf16.gmra.mrb[60].mxu0 %v2286_v40  ;;  %v4020_v8 = vsel %vm2014_vm11, %v4011_v53, %v4019_v16  ;;  %v4408_v48 = vsel %vm392_vm3, %v4399_v19, %v4407_v3  ;;  %v4429_v41 = vrot.slane %v4427_v21, 3  ;;  %v4432_v49 = vrot.slane %v4430_v1, 4 }
 0x1f3   : > { %v4437_v20 = vrot.slane %v4435_v47, 3  ;;  %v4440_v58 = vrot.slane %v4438_v55, 4  ;;  %v4416_v52 = vor.u32 %v4415_v18, %v4412_v54  ;;  %v4424_v17 = vor.u32 %v4423_v37, %v4420_v14  ;;  %v8679_v47 = vld [vmem:[%s10140_s3 + $0x1d8] sm:$0xff]   ;;  %v4374_v55 = vld [vmem:[#allocation2 + $0x90] sm:$0xf8] }
 0x1f4   : > { %v4444_v27 = vshrl.u32 %v4366_v34, 16  ;;  %v4447_v42 = vshll.u32 %v4366_v34, 16  ;;  %v4452_v44 = vshrl.u32 %v4367_v25, 16  ;;  %v4455_v11 = vshll.u32 %v4367_v25, 16  ;;  %v4375_v14 = vld [vmem:[#allocation2 + $0x98] sm:$0xf] }
 0x1f5   : > { %v4461_v56 = vshrl.u32 %v4368_v62, 16  ;;  %v4464_v10 = vshll.u32 %v4368_v62, 16  ;;  %v4433_v9 = vor.u32 %v4432_v49, %v4429_v41  ;;  %v4441_v57 = vor.u32 %v4440_v58, %v4437_v20  ;;  %v4376_v37 = vld [vmem:[#allocation2 + $0xa0] sm:$0xf8]  ;;  %v4377_v41 = vld [vmem:[#allocation2 + $0xa8] sm:$0xf] }
 0x1f6   : > { %v4469_v63 = vshrl.u32 %v4369_v60, 16  ;;  %v4472_v12 = vshll.u32 %v4369_v60, 16  ;;  %v4425_v61 = vsel %vm392_vm3, %v4416_v52, %v4424_v17  ;;  %v4446_v36 = vrot.slane %v4444_v27, 3  ;;  %v8680_v17 = vld [vmem:[%s10140_s3 + $0x1e0] sm:$0xff]  }
 0x1f7   : > { %8025 = vmatmul.mubr.bf16.gmra.mrb[28].mxu1 %v4020_v8  ;;  %v4449_v38 = vrot.slane %v4447_v42, 4  ;;  %v4454_v46 = vrot.slane %v4452_v44, 3  ;;  %v4457_v50 = vrot.slane %v4455_v11, 4  ;;  %v4463_v5 = vrot.slane %v4461_v56, 3 }
 0x1f8   : > { %8044 = vmatprep.mubr.bf16.mxu1 %v4408_v48  ;;  %v4466_v6 = vrot.slane %v4464_v10, 4  ;;  %v4442_v15 = vsel %vm392_vm3, %v4433_v9, %v4441_v57  ;;  %v4471_v24 = vrot.slane %v4469_v63, 3  ;;  %v4474_v51 = vrot.slane %v4472_v12, 4  ;;  %v4378_v57 = vld [vmem:[#allocation2 + $0xb0] sm:$0xf8] }
 0x1f9   : > { %v4478_v26 = vshrl.u32 %v4370_v29, 16  ;;  %v4481_v13 = vshll.u32 %v4370_v29, 16  ;;  %v4486_v40 = vshrl.u32 %v4371_v45, 16  ;;  %v4489_v35 = vshll.u32 %v4371_v45, 16  ;;  %v4379_v63 = vld [vmem:[#allocation2 + $0xb8] sm:$0xf] }
 0x1fa   : > { %v4450_v30 = vor.u32 %v4449_v38, %v4446_v36  ;;  %v4458_v4 = vor.u32 %v4457_v50, %v4454_v46  ;;  %v4467_v33 = vor.u32 %v4466_v6, %v4463_v5  ;;  %v4495_v59 = vshrl.u32 %v4372_v22, 16  ;;  %v8681_v38 = vld [vmem:[%s10140_s3 + $0x1e8] sm:$0xff]   ;;  %v388_v29 = vld [vmem:[#allocation2 + $0x110] sm:$0x8]  ;;  %v445_v45 = vld [vmem:[#allocation2 + $0x118] sm:$0x10] }
 0x1fb   : > { %v4475_v2 = vor.u32 %v4474_v51, %v4471_v24  ;;  %v4498_v53 = vshll.u32 %v4372_v22, 16  ;;  %v4503_v16 = vshrl.u32 %v4373_v31, 16  ;;  %v4506_v19 = vshll.u32 %v4373_v31, 16  ;;  %v4380_v51 = vld [vmem:[#allocation2 + $0xc0] sm:$0xf8] }
 0x1fc   : > { %v4483_v3 = vrot.slane %v4481_v13, 4  ;;  %v4488_v21 = vrot.slane %v4486_v40, 3  ;;  %v4491_v1 = vrot.slane %v4489_v35, 4  ;;  %v4459_v54 = vsel %vm392_vm3, %v4450_v30, %v4458_v4  ;;  %v4381_v31 = vld [vmem:[#allocation2 + $0xc8] sm:$0xf]  ;;  %v8682_v40 = vld [vmem:[%s10140_s3 + $0x1f0] sm:$0xff]  }
 0x1fd   : > { %v4497_v18 = vrot.slane %v4495_v59, 3  ;;  %v4476_v8 = vsel %vm392_vm3, %v4467_v33, %v4475_v2  ;;  %v4500_v48 = vrot.slane %v4498_v53, 4  ;;  %v4505_v34 = vrot.slane %v4503_v16, 3 }
 0x1fe   : > { %v4508_v25 = vrot.slane %v4506_v19, 4  ;;  %v4512_v20 = vshrl.u32 %v4374_v55, 16  ;;  %v4492_v58 = vor.u32 %v4491_v1, %v4488_v21  ;;  %v4515_v62 = vshll.u32 %v4374_v55, 16  ;;  %v4382_v1 = vld [vmem:[#allocation2 + $0xd0] sm:$0xf8] }
 0x1ff   : > { %8045 = vmatmul.mubr.bf16.vlgmr.msra.gmra.mrb[0].mxu1 %v4425_v61  ;;  %v4520_v60 = vshrl.u32 %v4375_v14, 16  ;;  %v4523_v52 = vshll.u32 %v4375_v14, 16  ;;  %v4529_v27 = vshrl.u32 %v4376_v37, 16  ;;  %v4532_v42 = vshll.u32 %v4376_v37, 16 }
 0x200   : > { %8077 = vmatpush3.bf16.msra.mxu1 %v9709_v23  ;;  %8048 = vmatprep.mubr.bf16.mxu1 %v4442_v15  ;;  %v4480_v23 = vrot.slane %v4478_v26, 3  ;;  %v4537_v44 = vshrl.u32 %v4377_v41, 16  ;;  %v4540_v11 = vshll.u32 %v4377_v41, 16  ;;  %v4501_v56 = vor.u32 %v4500_v48, %v4497_v18  ;;  %v4384_v18 = vld [vmem:[#allocation2 + $0xe0] sm:$0xf8] }
 0x201   : > { %8078 = vmatprep.subr.bf16.mxu1 %v8677_v0  ;;  %v4509_v10 = vor.u32 %v4508_v25, %v4505_v34  ;;  %v4514_v9 = vrot.slane %v4512_v20, 3  ;;  %v4517_v61 = vrot.slane %v4515_v62, 4  ;;  %v4525_v36 = vrot.slane %v4523_v52, 4  ;;  %v4385_v34 = vld [vmem:[#allocation2 + $0xe8] sm:$0xf]  ;;  %v9772_v62 = vld [vmem:[%s10140_s3 + $0x200] sm:$0xff]  }
 0x202   : > { %v4484_v49 = vor.u32 %v4483_v3, %v4480_v23  ;;  %v4531_v46 = vrot.slane %v4529_v27, 3  ;;  %v4534_v50 = vrot.slane %v4532_v42, 4  ;;  %v4539_v5 = vrot.slane %v4537_v44, 3 }
 0x203   : > { %v4542_v6 = vrot.slane %v4540_v11, 4  ;;  %v4510_v15 = vsel %vm392_vm3, %v4501_v56, %v4509_v10  ;;  %v4546_v24 = vshrl.u32 %v4378_v57, 16  ;;  %v4549_v22 = vshll.u32 %v4378_v57, 16 }
 0x204   : > { %8079 = vmatpush3.bf16.msra.mxu1 %v8677_v0  ;;  %v4493_v12 = vsel %vm392_vm3, %v4484_v49, %v4492_v58  ;;  %v4522_v0 = vrot.slane %v4520_v60, 3  ;;  %v4554_v26 = vshrl.u32 %v4379_v63, 16  ;;  %v4557_v13 = vshll.u32 %v4379_v63, 16 }
 0x205   : > { %8080 = vmatprep.subr.bf16.mxu1 %v8678_v7  ;;  %v446_v35 = vsel %vm8863_vm5, 0, %v445_v45  ;;  %v4518_v30 = vor.u32 %v4517_v61, %v4514_v9  ;;  %v4535_v33 = vor.u32 %v4534_v50, %v4531_v46  ;;  %v4543_v59 = vor.u32 %v4542_v6, %v4539_v5  ;;  %v4386_v50 = vld [vmem:[#allocation2 + $0xf0] sm:$0xf8]  ;;  %v4387_v5 = vld [vmem:[#allocation2 + $0xf8] sm:$0xf] }
 0x206   : > { %v4526_v4 = vor.u32 %v4525_v36, %v4522_v0  ;;  %447 = vst [vmem:[#allocation2 + $0x118] sm:$0x10] %v446_v35  ;;  %v4563_v2 = vshrl.u32 %v4380_v51, 16  ;;  %v4566_v53 = vshll.u32 %v4380_v51, 16  ;;  %v4571_v16 = vshrl.u32 %v4381_v31, 16 }
 0x207   : > { %8049 = vmatmul.mubr.bf16.gmra.mrb[4].mxu1 %v4459_v54  ;;  %v4574_v19 = vshll.u32 %v4381_v31, 16  ;;  %v4548_v28 = vrot.slane %v4546_v24, 3  ;;  %v4551_v23 = vrot.slane %v4549_v22, 4  ;;  %v4556_v3 = vrot.slane %v4554_v26, 3  ;;  %v4383_v54 = vld [vmem:[#allocation2 + $0xd8] sm:$0xf] }
 0x208   : > { %8052 = vmatprep.mubr.bf16.mxu1 %v4476_v8  ;;  %8081 = vmatpush3.bf16.msra.mxu1 %v8678_v7  ;;  %v389_v7 = vsel %vm8853_vm4, 0, %v388_v29  ;;  %v4559_v21 = vrot.slane %v4557_v13, 4  ;;  %v4544_v55 = vsel %vm392_vm3, %v4535_v33, %v4543_v59  ;;  %v4565_v14 = vrot.slane %v4563_v2, 3  ;;  %v4388_v6 = vld [vmem:[#allocation2 + $0x100] sm:$0xf8] }
 0x209   : > { %8082 = vmatprep.subr.bf16.mxu1 %v8679_v47  ;;  %390 = vst [vmem:[#allocation2 + $0x110] sm:$0x8] %v389_v7  ;;  %v4568_v37 = vrot.slane %v4566_v53, 4  ;;  %v4573_v8 = vrot.slane %v4571_v16, 3  ;;  %v4576_v48 = vrot.slane %v4574_v19, 4  ;;  %v4552_v25 = vor.u32 %v4551_v23, %v4548_v28 }
 0x20a   : > { %v4560_v41 = vor.u32 %v4559_v21, %v4556_v3  ;;  %v4580_v49 = vshrl.u32 %v4382_v1, 16  ;;  %v4583_v20 = vshll.u32 %v4382_v1, 16  ;;  %v4588_v60 = vshrl.u32 %v4383_v54, 16  ;;  %v4389_v45 = vld [vmem:[#allocation2 + $0x108] sm:$0xf] }
 0x20b   : > { %v4591_v52 = vshll.u32 %v4383_v54, 16  ;;  %v4600_v44 = vshll.u32 %v4384_v18, 16  ;;  %v4605_v11 = vshrl.u32 %v4385_v34, 16  ;;  %v4608_v56 = vshll.u32 %v4385_v34, 16 }
 0x20c   : > { %8083 = vmatpush3.bf16.msra.mxu1 %v8679_v47  ;;  %v4527_v47 = vsel %vm392_vm3, %v4518_v30, %v4526_v4  ;;  %v4569_v9 = vor.u32 %v4568_v37, %v4565_v14  ;;  %v4577_v57 = vor.u32 %v4576_v48, %v4573_v8  ;;  %v4561_v63 = vsel %vm392_vm3, %v4552_v25, %v4560_v41 }
 0x20d   : > { %8084 = vmatprep.subr.bf16.mxu1 %v8680_v17  ;;  %v462_v42 = vld [vmem:[#allocation2 + $0x118] sm:$0x1f]  ;;  %v4585_v61 = vrot.slane %v4583_v20, 4  ;;  %v4590_v0 = vrot.slane %v4588_v60, 3  ;;  %v4593_v36 = vrot.slane %v4591_v52, 4  ;;  %v4607_v29 = vrot.slane %v4605_v11, 3 }
 0x20e   : > { %v463_v10 = vsel %vm8892_vm9, 0, %v462_v42  ;;  %v4610_v46 = vrot.slane %v4608_v56, 4  ;;  %v4578_v43 = vsel %vm392_vm3, %v4569_v9, %v4577_v57  ;;  %v4614_v51 = vshrl.u32 %v4386_v50, 16  ;;  %v5005_v9 = vld [vmem:[#allocation2 + $0x38] sm:$0xf] }
 0x20f   : > { %8053 = vmatmul.mubr.bf16.gmra.mrb[8].mxu1 %v4493_v12  ;;  %464 = vst [vmem:[#allocation2 + $0x118] sm:$0x1f] %v463_v10  ;;  %v4582_v12 = vrot.slane %v4580_v49, 3  ;;  %v4594_v24 = vor.u32 %v4593_v36, %v4590_v0  ;;  %v4617_v22 = vshll.u32 %v4386_v50, 16  ;;  %v4622_v31 = vshrl.u32 %v4387_v5, 16 }
 0x210   : > { %8056 = vmatprep.mubr.bf16.mxu1 %v4510_v15  ;;  %8085 = vmatpush3.bf16.msra.mxu1 %v8680_v17  ;;  %v459_v58 = vld [vmem:[#allocation2 + $0x110] sm:$0xf8]  ;;  %v4597_v17 = vshrl.u32 %v4384_v18, 16  ;;  %v4611_v13 = vor.u32 %v4610_v46, %v4607_v29  ;;  %v4625_v7 = vshll.u32 %v4387_v5, 16  ;;  %v4634_v35 = vshll.u32 %v4388_v6, 16 }
 0x211   : > { %8086 = vmatprep.subr.bf16.mxu1 %v8681_v38  ;;  %v460_v27 = vsel %vm8882_vm8, 0, %v459_v58  ;;  %v4586_v15 = vor.u32 %v4585_v61, %v4582_v12  ;;  %v4639_v30 = vshrl.u32 %v4389_v45, 16  ;;  %v4642_v4 = vshll.u32 %v4389_v45, 16  ;;  %v5004_v10 = vld [vmem:[#allocation2 + $0x30] sm:$0xf0] }
 0x212   : > { %461 = vst [vmem:[#allocation2 + $0x110] sm:$0xf8] %v460_v27  ;;  %v4599_v39 = vrot.slane %v4597_v17, 3  ;;  %v4616_v59 = vrot.slane %v4614_v51, 3  ;;  %v4619_v19 = vrot.slane %v4617_v22, 4  ;;  %v4624_v28 = vrot.slane %v4622_v31, 3 }
 0x213   : > { %v4595_v33 = vsel %vm392_vm3, %v4586_v15, %v4594_v24  ;;  %v4627_v23 = vrot.slane %v4625_v7, 4  ;;  %v4636_v21 = vrot.slane %v4634_v35, 4  ;;  %v4641_v1 = vrot.slane %v4639_v30, 3  ;;  %v5002_v17 = vld [vmem:[#allocation2 + $0x20] sm:$0xf0]  ;;  %v8687_v22 = vld [vmem:[%s10140_s3 + $0x218] sm:$0xff]  }
 0x214   : > { %8087 = vmatpush3.bf16.msra.mxu1 %v8681_v38  ;;  %v4602_v38 = vrot.slane %v4600_v44, 4  ;;  %v4620_v14 = vor.u32 %v4619_v19, %v4616_v59  ;;  %v5003_v27 = vld [vmem:[#allocation2 + $0x28] sm:$0xf]  ;;  %v5066_v42 = vrot.slane %v5002_v17, 4  ;;  %v5006_v57 = vld [vmem:[#allocation2 + $0x40] sm:$0xf0] }
 0x215   : > { %8088 = vmatprep.subr.bf16.mxu1 %v8682_v40  ;;  %v4628_v37 = vor.u32 %v4627_v23, %v4624_v28  ;;  %v5067_v44 = vrot.slane %v5003_v27, 4  ;;  %v5069_v12 = vrot.slane %v5004_v10, 4  ;;  %v5070_v61 = vrot.slane %v5005_v9, 4  ;;  %v5008_v46 = vld [vmem:[#allocation2 + $0x50] sm:$0xf0]  ;;  %v8692_v7 = vld [vmem:[%s10142_s5] sm:$0xff]  }
 0x216   : > { %v4603_v26 = vor.u32 %v4602_v38, %v4599_v39  ;;  %v4391_v53 = vld [vmem:[#allocation2 + $0x118] sm:$0xf]  ;;  %v5072_v0 = vrot.slane %v5006_v57, 4  ;;  %v8685_v39 = vld [vmem:[%s10140_s3 + $0x208] sm:$0xff]   ;;  %v5075_v45 = vrot.slane %v5008_v46, 4  ;;  %8172 = vmatprep.subr.bf16.mxu0 %v8692_v7 }
 0x217   : > { %8057 = vmatmul.mubr.bf16.gmra.mrb[12].mxu1 %v4527_v47  ;;  %v4656_v54 = vshrl.u32 %v4391_v53, 16  ;;  %v4659_v18 = vshll.u32 %v4391_v53, 16  ;;  %v4629_v20 = vsel %vm392_vm3, %v4620_v14, %v4628_v37  ;;  %v5068_v56 = vsel %vm1595_vm10, %v5066_v42, %v5067_v44  ;;  %v5009_v50 = vld [vmem:[#allocation2 + $0x58] sm:$0xf]  ;;  %v5011_v5 = vld [vmem:[#allocation2 + $0x68] sm:$0xf]  ;;  %8173 = vmatpush3.bf16.msra.mxu0 %v8692_v7 }
 0x218   : > { %8060 = vmatprep.mubr.bf16.mxu1 %v4544_v55  ;;  %8089 = vmatpush3.bf16.msra.mxu1 %v8682_v40  ;;  %v4631_v40 = vshrl.u32 %v4388_v6, 16  ;;  %v4612_v16 = vsel %vm392_vm3, %v4603_v26, %v4611_v13  ;;  %v5071_v38 = vsel %vm1595_vm10, %v5069_v12, %v5070_v61  ;;  %v8686_v6 = vld [vmem:[%s10140_s3 + $0x210] sm:$0xff]   ;;  %v5076_v15 = vrot.slane %v5009_v50, 4  ;;  %v5013_v31 = vld [vmem:[#allocation2 + $0x78] sm:$0xf]  ;;  %v8689_v19 = vld [vmem:[%s10140_s3 + $0x228] sm:$0xff]  }
 0x219   : > { %8090 = vmatprep.subr.bf16.mxu1 %v8683_v32  ;;  %v4390_v2 = vld [vmem:[#allocation2 + $0x110] sm:$0xf8]  ;;  %v4658_v41 = vrot.slane %v4656_v54, 3  ;;  %v4661_v49 = vrot.slane %v4659_v18, 4  ;;  %v5079_v51 = vrot.slane %v5011_v5, 4  ;;  %v5082_v59 = vrot.slane %v5013_v31, 4 }
 0x21a   : > { %v4633_v3 = vrot.slane %v4631_v40, 3  ;;  %v4648_v47 = vshrl.u32 %v4390_v2, 16  ;;  %v4651_v55 = vshll.u32 %v4390_v2, 16  ;;  %v5012_v26 = vld [vmem:[#allocation2 + $0x70] sm:$0xf0]  ;;  %v8693_v40 = vld [vmem:[%s10142_s5 + $0x8] sm:$0xff]  }
 0x21b   : > { %v4662_v52 = vor.u32 %v4661_v49, %v4658_v41  ;;  %v5014_v35 = vld [vmem:[#allocation2 + $0x80] sm:$0xf0]  ;;  %v5015_v30 = vld [vmem:[#allocation2 + $0x88] sm:$0xf]  ;;  %8174 = vmatprep.subr.bf16.mxu0 %v8693_v40  ;;  %v5020_v41 = vld [vmem:[#allocation2 + $0xb0] sm:$0xf0] }
 0x21c   : > { %8091 = vmatpush3.bf16.msra.mxu1 %v8683_v32  ;;  %v4644_v32 = vrot.slane %v4642_v4, 4  ;;  %v4637_v8 = vor.u32 %v4636_v21, %v4633_v3  ;;  %v4650_v34 = vrot.slane %v4648_v47, 3  ;;  %v4653_v25 = vrot.slane %v4651_v55, 4  ;;  %v8688_v4 = vld [vmem:[%s10140_s3 + $0x220] sm:$0xff]   ;;  %8175 = vmatpush3.bf16.msra.mxu0 %v8693_v40  ;;  %v5016_v3 = vld [vmem:[#allocation2 + $0x90] sm:$0xf0] }
 0x21d   : > { %8124 = vmatprep.subr.bf16.mxu1 %v9772_v62  ;;  %v5084_v2 = vrot.slane %v5014_v35, 4  ;;  %v5085_v53 = vrot.slane %v5015_v30, 4  ;;  %v5017_v21 = vld [vmem:[#allocation2 + $0x98] sm:$0xf]  ;;  %v5019_v47 = vld [vmem:[#allocation2 + $0xa8] sm:$0xf] }
 0x21e   : > { %v4645_v48 = vor.u32 %v4644_v32, %v4641_v1  ;;  %v4654_v60 = vor.u32 %v4653_v25, %v4650_v34  ;;  %v8695_v1 = vld [vmem:[%s10142_s5 + $0x18] sm:$0xff]   ;;  %v5018_v32 = vld [vmem:[#allocation2 + $0xa0] sm:$0xf0]  ;;  %v8690_v55 = vld [vmem:[%s10140_s3 + $0x230] sm:$0xff]   ;;  %v5087_v54 = vrot.slane %v5016_v3, 4  ;;  %v5088_v18 = vrot.slane %v5017_v21, 4 }
 0x21f   : > { %8061 = vmatmul.mubr.bf16.gmra.mrb[16].mxu1 %v4561_v63  ;;  %v5007_v63 = vld [vmem:[#allocation2 + $0x48] sm:$0xf]  ;;  %v5086_v23 = vsel %vm1595_vm10, %v5084_v2, %v5085_v53  ;;  %v5090_v14 = vrot.slane %v5018_v32, 4  ;;  %v5091_v37 = vrot.slane %v5019_v47, 4  ;;  %v5021_v49 = vld [vmem:[#allocation2 + $0xb8] sm:$0xf] }
 0x220   : > { %8064 = vmatprep.mubr.bf16.mxu1 %v4578_v43  ;;  %v4646_v58 = vsel %vm392_vm3, %v4637_v8, %v4645_v48  ;;  %v4663_v11 = vsel %vm392_vm3, %v4654_v60, %v4662_v52  ;;  %v5073_v36 = vrot.slane %v5007_v63, 4  ;;  %v5010_v43 = vld [vmem:[#allocation2 + $0x60] sm:$0xf0]  ;;  %v8691_v48 = vld [vmem:[%s10140_s3 + $0x238] sm:$0xff]   ;;  %v5089_v34 = vsel %vm1595_vm10, %v5087_v54, %v5088_v18  ;;  %v5023_v60 = vld [vmem:[#allocation2 + $0xc8] sm:$0xf] }
 0x221   : > { %v5078_v24 = vrot.slane %v5010_v43, 4  ;;  %v8696_v8 = vld [vmem:[%s10142_s5 + $0x20] sm:$0xff]   ;;  %v5092_v25 = vsel %vm1595_vm10, %v5090_v14, %v5091_v37  ;;  %v5093_v52 = vrot.slane %v5020_v41, 4  ;;  %v5094_v17 = vrot.slane %v5021_v49, 4  ;;  %v8698_v44 = vld [vmem:[%s10142_s5 + $0x30] sm:$0xff]  }
 0x222   : > { %v5074_v29 = vsel %vm1595_vm10, %v5072_v0, %v5073_v36  ;;  %v5097_v42 = vrot.slane %v5023_v60, 4  ;;  %v5024_v10 = vld [vmem:[#allocation2 + $0xd0] sm:$0xf0]  ;;  %v5025_v9 = vld [vmem:[#allocation2 + $0xd8] sm:$0xf] }
 0x223   : > { %v5080_v13 = vsel %vm1595_vm10, %v5078_v24, %v5079_v51  ;;  %v5026_v57 = vld [vmem:[#allocation2 + $0xe0] sm:$0xf0]  ;;  %v5027_v63 = vld [vmem:[#allocation2 + $0xe8] sm:$0xf]  ;;  %v5099_v12 = vrot.slane %v5024_v10, 4  ;;  %v5100_v61 = vrot.slane %v5025_v9, 4 }
 0x224   : > { %v5102_v0 = vrot.slane %v5026_v57, 4  ;;  %v5103_v36 = vrot.slane %v5027_v63, 4  ;;  %v5452_v50 = vld [vmem:[#allocation2 + $0x20] sm:$0xf0]  ;;  %v5453_v43 = vld [vmem:[#allocation2 + $0x28] sm:$0x1f] }
 0x225   : > { %v5030_v5 = vld [vmem:[#allocation2 + $0x100] sm:$0xf0]  ;;  %v5485_v24 = vshrl.u32 %v5452_v50, 16  ;;  %v5488_v51 = vshll.u32 %v5452_v50, 16  ;;  %v5032_v7 = vld [vmem:[#allocation2 + $0x110] sm:$0xf0] }
 0x226   : > { %v5104_v46 = vsel %vm1595_vm10, %v5102_v0, %v5103_v36  ;;  %v5033_v40 = vld [vmem:[#allocation2 + $0x118] sm:$0xf]  ;;  %v5454_v35 = vld [vmem:[#allocation2 + $0x30] sm:$0xf0] }
 0x227   : > { %8065 = vmatmul.mubr.bf16.gmra.mrb[20].mxu1 %v4595_v33  ;;  %v5081_v33 = vrot.slane %v5012_v26, 4  ;;  %v5108_v26 = vrot.slane %v5030_v5, 4  ;;  %v5487_v30 = vrot.slane %v5485_v24, 4  ;;  %v5455_v2 = vld [vmem:[#allocation2 + $0x38] sm:$0x1f]  ;;  %v5502_v3 = vshrl.u32 %v5454_v35, 16 }
 0x228   : > { %8068 = vmatprep.mubr.bf16.mxu1 %v4612_v16  ;;  %v8694_v16 = vld [vmem:[%s10142_s5 + $0x10] sm:$0xff]   ;;  %v5505_v21 = vshll.u32 %v5454_v35, 16  ;;  %v5513_v32 = vshll.u32 %v5455_v2, 16  ;;  %v5463_v5 = vld [vmem:[#allocation2 + $0x78] sm:$0x1f] }
 0x229   : > { %v5083_v28 = vsel %vm1595_vm10, %v5081_v33, %v5082_v59  ;;  %8176 = vmatprep.subr.bf16.mxu0 %v8694_v16  ;;  %v5465_v35 = vld [vmem:[#allocation2 + $0x88] sm:$0x1f] }
 0x22a   : > { %8177 = vmatpush3.bf16.msra.mxu0 %v8694_v16  ;;  %v5111_v16 = vrot.slane %v5032_v7, 4  ;;  %v5515_v41 = vrot.slane %v5513_v32, 5  ;;  %v5578_v7 = vshrl.u32 %v5463_v5, 16 }
 0x22b   : > { %8178 = vmatprep.subr.bf16.mxu0 %v8695_v1 }
 0x22e   : > { %8179 = vmatpush3.bf16.msra.mxu0 %v8695_v1  ;;  %v5510_v1 = vshrl.u32 %v5455_v2, 16 }
 0x22f   : > { %8069 = vmatmul.mubr.bf16.gmra.mrb[24].mxu1 %v4629_v20  ;;  %8180 = vmatprep.subr.bf16.mxu0 %v8696_v8  ;;  %v8697_v20 = vld [vmem:[%s10142_s5 + $0x28] sm:$0xff]  }
 0x230   : > { %8072 = vmatprep.mubr.bf16.mxu1 %v4646_v58  ;;  %v5022_v58 = vld [vmem:[#allocation2 + $0xc0] sm:$0xf0] }
 0x231   : > { %v5096_v27 = vrot.slane %v5022_v58, 4  ;;  %v5459_v58 = vld [vmem:[#allocation2 + $0x58] sm:$0x1f] }
 0x232   : > { %8181 = vmatpush3.bf16.msra.mxu0 %v8696_v8  ;;  %v5544_v57 = vshrl.u32 %v5459_v58, 16  ;;  %v5547_v63 = vshll.u32 %v5459_v58, 16 }
 0x233   : > { %8182 = vmatprep.subr.bf16.mxu0 %v8697_v20 }
 0x236   : > { %8183 = vmatpush3.bf16.msra.mxu0 %v8697_v20  ;;  %v5458_v20 = vld [vmem:[#allocation2 + $0x50] sm:$0xf0] }
 0x237   : > { %8073 = vmatmul.mubr.bf16.gmra.mrb[28].mxu1 %v4663_v11  ;;  %v5095_v11 = vsel %vm1595_vm10, %v5093_v52, %v5094_v17  ;;  %8184 = vmatprep.subr.bf16.mxu0 %v8698_v44  ;;  %v5536_v10 = vshrl.u32 %v5458_v20, 16  ;;  %v5539_v9 = vshll.u32 %v5458_v20, 16 }
 0x238   : > { %8092 = vmatprep.mubr.bf16.mxu1 %v5068_v56  ;;  %v5098_v56 = vsel %vm1595_vm10, %v5096_v27, %v5097_v42  ;;  %v5460_v42 = vld [vmem:[#allocation2 + $0x60] sm:$0xf0] }
 0x239   : > { %v5541_v50 = vrot.slane %v5539_v9, 5 }
 0x23a   : > { %8185 = vmatpush3.bf16.msra.mxu0 %v8698_v44  ;;  %v5461_v44 = vld [vmem:[#allocation2 + $0x68] sm:$0x1f] }
 0x23f   : > { %8093 = vmatmul.mubr.bf16.vlgmr.msra.gmra.mrb[0].mxu1 %v5071_v38  ;;  %v5028_v38 = vld [vmem:[#allocation2 + $0xf0] sm:$0xf0] }
 0x240   : > { %8125 = vmatpush3.bf16.msra.mxu1 %v9772_v62  ;;  %8096 = vmatprep.mubr.bf16.mxu1 %v5074_v29  ;;  %v5077_v62 = vsel %vm1595_vm10, %v5075_v45, %v5076_v15  ;;  %v5029_v29 = vld [vmem:[#allocation2 + $0xf8] sm:$0xf]  ;;  %v5105_v45 = vrot.slane %v5028_v38, 4  ;;  %v5564_v38 = vshll.u32 %v5461_v44, 16 }
 0x241   : > { %8126 = vmatprep.subr.bf16.mxu1 %v8685_v39  ;;  %v5106_v15 = vrot.slane %v5029_v29, 4 }
 0x243   : > { %v5107_v31 = vsel %vm1595_vm10, %v5105_v45, %v5106_v15  ;;  %v5549_v45 = vrot.slane %v5547_v63, 5 }
 0x244   : > { %8127 = vmatpush3.bf16.msra.mxu1 %v8685_v39  ;;  %v5101_v39 = vsel %vm1595_vm10, %v5099_v12, %v5100_v61  ;;  %v5553_v12 = vshrl.u32 %v5460_v42, 16  ;;  %v5556_v61 = vshll.u32 %v5460_v42, 16 }
 0x245   : > { %8128 = vmatprep.subr.bf16.mxu1 %v8686_v6 }
 0x246   : > { %v5555_v15 = vrot.slane %v5553_v12, 4  ;;  %v5558_v24 = vrot.slane %v5556_v61, 5 }
 0x247   : > { %8097 = vmatmul.mubr.bf16.gmra.mrb[4].mxu1 %v5077_v62  ;;  %v5496_v62 = vshll.u32 %v5453_v43, 16 }
 0x248   : > { %8100 = vmatprep.mubr.bf16.mxu1 %v5080_v13  ;;  %8129 = vmatpush3.bf16.msra.mxu1 %v8686_v6  ;;  %v5031_v6 = vld [vmem:[#allocation2 + $0x108] sm:$0xf] }
 0x249   : > { %8130 = vmatprep.subr.bf16.mxu1 %v8687_v22  ;;  %v5109_v13 = vrot.slane %v5031_v6, 4  ;;  %v5498_v59 = vrot.slane %v5496_v62, 5  ;;  %v5546_v6 = vrot.slane %v5544_v57, 4  ;;  %v5566_v62 = vrot.slane %v5564_v38, 5 }
 0x24b   : > { %v5110_v53 = vsel %vm1595_vm10, %v5108_v26, %v5109_v13  ;;  %v5464_v26 = vld [vmem:[#allocation2 + $0x80] sm:$0xf0] }
 0x24c   : > { %8131 = vmatpush3.bf16.msra.mxu1 %v8687_v22  ;;  %v5493_v22 = vshrl.u32 %v5453_v43, 16  ;;  %v5462_v43 = vld [vmem:[#allocation2 + $0x70] sm:$0xf0] }
 0x24d   : > { %8132 = vmatprep.subr.bf16.mxu1 %v8688_v4  ;;  %v5570_v13 = vshrl.u32 %v5462_v43, 16 }
 0x24e   : > { %v5495_v33 = vrot.slane %v5493_v22, 4 }
 0x24f   : > { %8101 = vmatmul.mubr.bf16.gmra.mrb[8].mxu1 %v5083_v28  ;;  %v5456_v28 = vld [vmem:[#allocation2 + $0x40] sm:$0xf0] }
 0x250   : > { %8104 = vmatprep.mubr.bf16.mxu1 %v5086_v23  ;;  %8133 = vmatpush3.bf16.msra.mxu1 %v8688_v4  ;;  %v5490_v4 = vrot.slane %v5488_v51, 5  ;;  %v5457_v23 = vld [vmem:[#allocation2 + $0x48] sm:$0x1f]  ;;  %v5519_v54 = vshrl.u32 %v5456_v28, 16  ;;  %v5522_v18 = vshll.u32 %v5456_v28, 16  ;;  %v5572_v28 = vrot.slane %v5570_v13, 4 }
 0x251   : > { %8134 = vmatprep.subr.bf16.mxu1 %v8689_v19  ;;  %v5527_v14 = vshrl.u32 %v5457_v23, 16  ;;  %v5530_v37 = vshll.u32 %v5457_v23, 16 }
 0x252   : > { %v5491_v47 = vor.u32 %v5490_v4, %v5487_v30  ;;  %v5521_v60 = vrot.slane %v5519_v54, 4  ;;  %v5524_v52 = vrot.slane %v5522_v18, 5  ;;  %v5550_v4 = vor.u32 %v5549_v45, %v5546_v6  ;;  %v5468_v54 = vld [vmem:[#allocation2 + $0xa0] sm:$0xf0]  ;;  %v5473_v6 = vld [vmem:[#allocation2 + $0xc8] sm:$0x1f] }
 0x253   : > { %v5529_v17 = vrot.slane %v5527_v14, 4  ;;  %v5532_v27 = vrot.slane %v5530_v37, 5 }
 0x254   : > { %8135 = vmatpush3.bf16.msra.mxu1 %v8689_v19  ;;  %v5112_v19 = vrot.slane %v5033_v40, 4  ;;  %v5525_v0 = vor.u32 %v5524_v52, %v5521_v60  ;;  %v5581_v40 = vshll.u32 %v5463_v5, 16  ;;  %v5621_v60 = vshrl.u32 %v5468_v54, 16  ;;  %v5472_v5 = vld [vmem:[#allocation2 + $0xc0] sm:$0xf0] }
 0x255   : > { %8136 = vmatprep.subr.bf16.mxu1 %v8690_v55  ;;  %v5533_v36 = vor.u32 %v5532_v27, %v5529_v17  ;;  %v5624_v52 = vshll.u32 %v5468_v54, 16 }
 0x256   : > { %v5113_v8 = vsel %vm1595_vm10, %v5111_v16, %v5112_v19  ;;  %v5595_v16 = vshrl.u32 %v5465_v35, 16  ;;  %v5598_v19 = vshll.u32 %v5465_v35, 16  ;;  %v5666_v35 = vshll.u32 %v5473_v6, 16 }
 0x257   : > { %8105 = vmatmul.mubr.bf16.gmra.mrb[12].mxu1 %v5089_v34  ;;  %v5507_v34 = vrot.slane %v5505_v21, 5  ;;  %v5534_v51 = vsel %vm2014_vm11, %v5525_v0, %v5533_v36  ;;  %v5583_v21 = vrot.slane %v5581_v40, 5  ;;  %v5623_v36 = vrot.slane %v5621_v60, 4 }
 0x258   : > { %8108 = vmatprep.mubr.bf16.mxu1 %v5092_v25  ;;  %8137 = vmatpush3.bf16.msra.mxu1 %v8690_v55  ;;  %v5499_v55 = vor.u32 %v5498_v59, %v5495_v33  ;;  %v5512_v25 = vrot.slane %v5510_v1, 4  ;;  %v5559_v33 = vor.u32 %v5558_v24, %v5555_v15  ;;  %v5587_v59 = vshrl.u32 %v5464_v26, 16  ;;  %v5466_v1 = vld [vmem:[#allocation2 + $0x90] sm:$0xf0] }
 0x259   : > { %8138 = vmatprep.subr.bf16.mxu1 %v8691_v48  ;;  %v5597_v37 = vrot.slane %v5595_v16, 4  ;;  %v5663_v40 = vshrl.u32 %v5473_v6, 16  ;;  %v5668_v54 = vrot.slane %v5666_v35, 5  ;;  %v5481_v6 = vld [vmem:[#allocation2 + $0x108] sm:$0x1f] }
 0x25a   : > { %v5500_v49 = vsel %vm2014_vm11, %v5491_v47, %v5499_v55  ;;  %v5589_v47 = vrot.slane %v5587_v59, 4  ;;  %v5467_v55 = vld [vmem:[#allocation2 + $0x98] sm:$0x1f]  ;;  %v5734_v35 = vshll.u32 %v5481_v6, 16 }
 0x25b   : > { %v5612_v20 = vshrl.u32 %v5467_v55, 16  ;;  %v5615_v58 = vshll.u32 %v5467_v55, 16  ;;  %v5665_v55 = vrot.slane %v5663_v40, 4  ;;  %v5731_v40 = vshrl.u32 %v5481_v6, 16 }
 0x25c   : > { %8139 = vmatpush3.bf16.msra.mxu1 %v8691_v48  ;;  %v5504_v48 = vrot.slane %v5502_v3, 4  ;;  %v5580_v3 = vrot.slane %v5578_v7, 4  ;;  %v5658_v7 = vshll.u32 %v5472_v5, 16 }
 0x25d   : > { %v5614_v12 = vrot.slane %v5612_v20, 4  ;;  %v5617_v61 = vrot.slane %v5615_v58, 5  ;;  %v5669_v58 = vor.u32 %v5668_v54, %v5665_v55 }
 0x25f   : > { %8109 = vmatmul.mubr.bf16.gmra.mrb[16].mxu1 %v5095_v11  ;;  %v5508_v11 = vor.u32 %v5507_v34, %v5504_v48  ;;  %v5469_v48 = vld [vmem:[#allocation2 + $0xa8] sm:$0x1f]  ;;  %v5618_v15 = vor.u32 %v5617_v61, %v5614_v12 }
 0x260   : > { %8112 = vmatprep.mubr.bf16.mxu1 %v5098_v56  ;;  %v5516_v56 = vor.u32 %v5515_v41, %v5512_v25  ;;  %v5584_v25 = vor.u32 %v5583_v21, %v5580_v3  ;;  %v5604_v41 = vshrl.u32 %v5466_v1, 16  ;;  %v5629_v17 = vshrl.u32 %v5469_v48, 16  ;;  %v5476_v21 = vld [vmem:[#allocation2 + $0xe0] sm:$0xf0] }
 0x261   : > { %v5632_v27 = vshll.u32 %v5469_v48, 16 }
 0x262   : > { %v5517_v29 = vsel %vm2014_vm11, %v5508_v11, %v5516_v56  ;;  %v5606_v57 = vrot.slane %v5604_v41, 4  ;;  %v5631_v38 = vrot.slane %v5629_v17, 4  ;;  %v5689_v41 = vshrl.u32 %v5476_v21, 16 }
 0x264   : > { %v5691_v61 = vrot.slane %v5689_v41, 4 }
 0x267   : > { %8113 = vmatmul.mubr.bf16.gmra.mrb[20].mxu1 %v5101_v39  ;;  %v5561_v39 = vshrl.u32 %v5461_v44, 16 }
 0x268   : > { %8116 = vmatprep.mubr.bf16.mxu1 %v5104_v46  ;;  %v5538_v46 = vrot.slane %v5536_v10, 4  ;;  %v5470_v10 = vld [vmem:[#allocation2 + $0xb0] sm:$0xf0] }
 0x269   : > { %v5563_v22 = vrot.slane %v5561_v39, 4  ;;  %v5626_v39 = vrot.slane %v5624_v52, 5  ;;  %v5638_v24 = vshrl.u32 %v5470_v10, 16 }
 0x26a   : > { %v5542_v30 = vor.u32 %v5541_v50, %v5538_v46 }
 0x26b   : > { %v5567_v2 = vor.u32 %v5566_v62, %v5563_v22  ;;  %v5627_v22 = vor.u32 %v5626_v39, %v5623_v36  ;;  %v5640_v59 = vrot.slane %v5638_v24, 4  ;;  %v5479_v39 = vld [vmem:[#allocation2 + $0xf8] sm:$0x1f] }
 0x26c   : > { %v5551_v32 = vsel %vm2014_vm11, %v5542_v30, %v5550_v4 }
 0x26d   : > { %v5568_v18 = vsel %vm2014_vm11, %v5559_v33, %v5567_v2  ;;  %v5474_v2 = vld [vmem:[#allocation2 + $0xd0] sm:$0xf0] }
 0x26f   : > { %8117 = vmatmul.mubr.bf16.gmra.mrb[24].mxu1 %v5107_v31  ;;  %v5573_v31 = vshll.u32 %v5462_v43, 16  ;;  %v5471_v43 = vld [vmem:[#allocation2 + $0xb8] sm:$0x1f] }
 0x270   : > { %8120 = vmatprep.mubr.bf16.mxu1 %v5110_v53  ;;  %v5590_v53 = vshll.u32 %v5464_v26, 16  ;;  %v5646_v26 = vshrl.u32 %v5471_v43, 16  ;;  %v5649_v13 = vshll.u32 %v5471_v43, 16 }
 0x271   : > { %v5575_v23 = vrot.slane %v5573_v31, 5  ;;  %v5655_v31 = vshrl.u32 %v5472_v5, 16  ;;  %v5480_v5 = vld [vmem:[#allocation2 + $0x100] sm:$0xf0] }
 0x272   : > { %v5592_v14 = vrot.slane %v5590_v53, 5  ;;  %v5475_v53 = vld [vmem:[#allocation2 + $0xd8] sm:$0x1f]  ;;  %v5651_v3 = vrot.slane %v5649_v13, 5  ;;  %v5723_v13 = vshrl.u32 %v5480_v5, 16 }
 0x273   : > { %v5576_v34 = vor.u32 %v5575_v23, %v5572_v28  ;;  %v5648_v23 = vrot.slane %v5646_v26, 4  ;;  %v5683_v48 = vshll.u32 %v5475_v53, 16  ;;  %v5717_v26 = vshll.u32 %v5479_v39, 16 }
 0x274   : > { %v5593_v42 = vor.u32 %v5592_v14, %v5589_v47  ;;  %v5660_v47 = vrot.slane %v5658_v7, 5  ;;  %v5672_v14 = vshrl.u32 %v5474_v2, 16  ;;  %v5726_v7 = vshll.u32 %v5480_v5, 16 }
 0x275   : > { %v5585_v11 = vsel %vm2014_vm11, %v5576_v34, %v5584_v25  ;;  %v5652_v25 = vor.u32 %v5651_v3, %v5648_v23 }
 0x277   : > { %8121 = vmatmul.mubr.bf16.gmra.mrb[28].mxu1 %v5113_v8  ;;  %v5600_v8 = vrot.slane %v5598_v19, 5 }
 0x278   : > { %8140 = vmatprep.mubr.bf16.mxu1 %v5500_v49  ;;  %v5607_v49 = vshll.u32 %v5466_v1, 16 }
 0x279   : > { %v5601_v44 = vor.u32 %v5600_v8, %v5597_v37  ;;  %v5675_v37 = vshll.u32 %v5474_v2, 16  ;;  %v5680_v8 = vshrl.u32 %v5475_v53, 16 }
 0x27a   : > { %v5609_v63 = vrot.slane %v5607_v49, 5  ;;  %v5692_v49 = vshll.u32 %v5476_v21, 16 }
 0x27b   : > { %v5602_v46 = vsel %vm2014_vm11, %v5593_v42, %v5601_v44  ;;  %v5674_v44 = vrot.slane %v5672_v14, 4  ;;  %v5733_v14 = vrot.slane %v5731_v40, 4  ;;  %v8700_v40 = vld [vmem:[%s10144_s7] sm:$0xff]  }
 0x27c   : > { %v5610_v45 = vor.u32 %v5609_v63, %v5606_v57  ;;  %v5685_v57 = vrot.slane %v5683_v48, 5  ;;  %v5694_v36 = vrot.slane %v5692_v49, 5 }
 0x27e   : > { %v5619_v4 = vsel %vm2014_vm11, %v5610_v45, %v5618_v15 }
 0x27f   : > { %8141 = vmatmul.mubr.bf16.vlgmr.msra.gmra.mrb[0].mxu1 %v5517_v29  ;;  %v5634_v29 = vrot.slane %v5632_v27, 5  ;;  %v5478_v27 = vld [vmem:[#allocation2 + $0xf0] sm:$0xf0] }
 0x280   : > { %8144 = vmatprep.mubr.bf16.mxu1 %v5534_v51  ;;  %v5641_v51 = vshll.u32 %v5470_v10, 16  ;;  %v5682_v10 = vrot.slane %v5680_v8, 4  ;;  %v5706_v24 = vshrl.u32 %v5478_v27, 16 }
 0x281   : > { %v5635_v62 = vor.u32 %v5634_v29, %v5631_v38 }
 0x282   : > { %v5643_v28 = vrot.slane %v5641_v51, 5  ;;  %v5686_v15 = vor.u32 %v5685_v57, %v5682_v10  ;;  %v5709_v51 = vshll.u32 %v5478_v27, 16  ;;  %v5708_v53 = vrot.slane %v5706_v24, 4 }
 0x283   : > { %v5636_v16 = vsel %vm2014_vm11, %v5627_v22, %v5635_v62  ;;  %v5695_v22 = vor.u32 %v5694_v36, %v5691_v61  ;;  %v5714_v62 = vshrl.u32 %v5479_v39, 16 }
 0x284   : > { %v5644_v34 = vor.u32 %v5643_v28, %v5640_v59  ;;  %v5483_v28 = vld [vmem:[#allocation2 + $0x118] sm:$0x1f]  ;;  %v5711_v3 = vrot.slane %v5709_v51, 5 }
 0x285   : > { %v5716_v21 = vrot.slane %v5714_v62, 4 }
 0x286   : > { %v5653_v63 = vsel %vm2014_vm11, %v5644_v34, %v5652_v25  ;;  %v5748_v34 = vshrl.u32 %v5483_v28, 16  ;;  %v5751_v25 = vshll.u32 %v5483_v28, 16  ;;  %v5712_v41 = vor.u32 %v5711_v3, %v5708_v53 }
 0x287   : > { %8145 = vmatmul.mubr.bf16.gmra.mrb[4].mxu1 %v5551_v32  ;;  %v5657_v32 = vrot.slane %v5655_v31, 4 }
 0x288   : > { %8148 = vmatprep.mubr.bf16.mxu1 %v5568_v18  ;;  %v5477_v18 = vld [vmem:[#allocation2 + $0xe8] sm:$0x1f] }
 0x289   : > { %v5661_v20 = vor.u32 %v5660_v47, %v5657_v32  ;;  %v5697_v60 = vshrl.u32 %v5477_v18, 16  ;;  %v5700_v52 = vshll.u32 %v5477_v18, 16  ;;  %v5719_v32 = vrot.slane %v5717_v26, 5 }
 0x28a   : > { %v5725_v47 = vrot.slane %v5723_v13, 4  ;;  %v5728_v18 = vrot.slane %v5726_v7, 5  ;;  %v8699_v7 = vld [vmem:[%s10142_s5 + $0x38] sm:$0xff]  }
 0x28b   : > { %v5670_v38 = vsel %vm2014_vm11, %v5661_v20, %v5669_v58  ;;  %v5702_v43 = vrot.slane %v5700_v52, 5  ;;  %v5720_v49 = vor.u32 %v5719_v32, %v5716_v21  ;;  %8186 = vmatprep.subr.bf16.mxu0 %v8699_v7 }
 0x28c   : > { %v5729_v20 = vor.u32 %v5728_v18, %v5725_v47  ;;  %8187 = vmatpush3.bf16.msra.mxu0 %v8699_v7 }
 0x28d   : > { %v9851_v56 = vpop.f32.mrb[32].mxu0  ;;  %v5721_v57 = vsel %vm2014_vm11, %v5712_v41, %v5720_v49  ;;  %8220 = vmatprep.subr.bf16.mxu0 %v8700_v40 }
 0x28e   : > { %v9853_v9 = vpop.f32.mrb[33].mxu0 }
 0x28f   : > { %v9855_v0 = vpop.f32.mrb[34].mxu0  ;;  %8149 = vmatmul.mubr.bf16.gmra.mrb[8].mxu1 %v5585_v11  ;;  %v5677_v11 = vrot.slane %v5675_v37, 5  ;;  %v5736_v37 = vrot.slane %v5734_v35, 5 }
 0x290   : > { %v9858_v50 = vpop.f32.mrb[35].mxu0  ;;  %8152 = vmatprep.mubr.bf16.mxu1 %v5602_v46  ;;  %v5699_v46 = vrot.slane %v5697_v60, 4 }
 0x291   : > { %v5678_v45 = vor.u32 %v5677_v11, %v5674_v44  ;;  %v5737_v58 = vor.u32 %v5736_v37, %v5733_v14  ;;  %v5750_v44 = vrot.slane %v5748_v34, 4  ;;  %v5753_v11 = vrot.slane %v5751_v25, 5 }
 0x292   : > { %v5703_v31 = vor.u32 %v5702_v43, %v5699_v46 }
 0x293   : > { %v5687_v59 = vsel %vm2014_vm11, %v5678_v45, %v5686_v15  ;;  %v5738_v61 = vsel %vm2014_vm11, %v5729_v20, %v5737_v58 }
 0x294   : > { %v5704_v55 = vsel %vm2014_vm11, %v5695_v22, %v5703_v31 }
 0x295   : > { %v9860_v30 = vpop.f32.mrb[36].mxu0 }
 0x296   : > { %v9863_v33 = vpop.f32.mrb[37].mxu0 }
 0x297   : > { %v9866_v19 = vpop.f32.mrb[38].mxu0  ;;  %8153 = vmatmul.mubr.bf16.gmra.mrb[12].mxu1 %v5619_v4 }
 0x298   : > { %v9868_v1 = vpop.f32.mrb[39].mxu0  ;;  %8156 = vmatprep.mubr.bf16.mxu1 %v5636_v16  ;;  %v5482_v16 = vld [vmem:[#allocation2 + $0x110] sm:$0xf0] }
 0x299   : > { %v5740_v8 = vshrl.u32 %v5482_v16, 16  ;;  %v5743_v48 = vshll.u32 %v5482_v16, 16 }
 0x29b   : > { %v5742_v52 = vrot.slane %v5740_v8, 4  ;;  %v5745_v27 = vrot.slane %v5743_v48, 5 }
 0x29d   : > { %v9870_v17 = vpop.f32.mrb[40].mxu0  ;;  %v5746_v39 = vor.u32 %v5745_v27, %v5742_v52 }
 0x29e   : > { %v9872_v42 = vpop.f32.mrb[41].mxu0 }
 0x29f   : > { %v9875_v12 = vpop.f32.mrb[42].mxu0  ;;  %8157 = vmatmul.mubr.bf16.gmra.mrb[16].mxu1 %v5653_v63 }
 0x2a0   : > { %v9878_v29 = vpop.f32.mrb[43].mxu0  ;;  %8160 = vmatprep.mubr.bf16.mxu1 %v5670_v38  ;;  %v5754_v38 = vor.u32 %v5753_v11, %v5750_v44  ;;  %v8701_v44 = vld [vmem:[%s10144_s7 + $0x8] sm:$0xff]  }
 0x2a2   : > { %v5755_v46 = vsel %vm2014_vm11, %v5746_v39, %v5754_v38 }
 0x2a5   : > { %v9880_v4 = vpop.f32.mrb[44].mxu0 }
 0x2a6   : > { %v9883_v2 = vpop.f32.mrb[45].mxu0 }
 0x2a7   : > { %v9885_v23 = vpop.f32.mrb[46].mxu0  ;;  %8161 = vmatmul.mubr.bf16.gmra.mrb[20].mxu1 %v5687_v59  ;;  %v9934_v59 = vld [vmem:[%s10141_s4] ss:$0 sm:$0xff] }
 0x2a8   : > { %v9888_v54 = vpop.f32.mrb[47].mxu0  ;;  %8164 = vmatprep.mubr.bf16.mxu1 %v5704_v55 }
 0x2ad   : > { %v9890_v60 = vpop.f32.mrb[48].mxu0 }
 0x2ae   : > { %v9892_v10 = vpop.f32.mrb[49].mxu0 }
 0x2af   : > { %v9895_v63 = vpop.f32.mrb[50].mxu0  ;;  %8165 = vmatmul.mubr.bf16.gmra.mrb[24].mxu1 %v5721_v57 }
 0x2b0   : > { %v9898_v36 = vpop.f32.mrb[51].mxu0  ;;  %8168 = vmatprep.mubr.bf16.mxu1 %v5738_v61 }
 0x2b5   : > { %v9901_v43 = vpop.f32.mrb[52].mxu0 }
 0x2b6   : > { %v9903_v5 = vpop.f32.mrb[53].mxu0 }
 0x2b7   : > { %v9905_v6 = vpop.f32.mrb[54].mxu0  ;;  %8169 = vmatmul.mubr.bf16.gmra.mrb[28].mxu1 %v5755_v46 }
 0x2b8   : > { %v9907_v45 = vpop.f32.mrb[55].mxu0 }
 0x2bd   : > { %v9909_v15 = vpop.f32.mrb[56].mxu0 }
 0x2be   : > { %v9911_v24 = vpop.f32.mrb[57].mxu0 }
 0x2bf   : > { %v9913_v51 = vpop.f32.mrb[58].mxu0 }
 0x2c0   : > { %v9915_v22 = vpop.f32.mrb[59].mxu0 }
 0x2c5   : > { %v9917_v62 = vpop.f32.mrb[60].mxu0 }
 0x2c6   : > { %v9919_v26 = vpop.f32.mrb[61].mxu0 }
 0x2c7   : > { %v9921_v13 = vpop.f32.mrb[62].mxu0 }
 0x2c8   : > { %v9923_v31 = vpop.f32.mrb[63].mxu0 }
 0x352   : > { %v8142_v35 = vpop.f32.mrb[0].mxu1 }
 0x353   : > { %v8268_v53 = vadd.f32 %v8142_v35, %v9851_v56  ;;  %v5871_v16 = vpop.f32.mrb[1].mxu1 }
 0x354   : > { %v8269_v28 = vadd.f32 %v5871_v16, %v9853_v9  ;;  %v8143_v3 = vpop.f32.mrb[2].mxu1 }
 0x355   : > { %v6135_v21 = vadd.f32 %v8268_v53, %v9934_v59  ;;  %v8270_v32 = vadd.f32 %v8143_v3, %v9855_v0  ;;  %v5874_v47 = vpop.f32.mrb[3].mxu1 }
 0x356   : > { %v6133_v55 = vadd.f32 %v8269_v28, %v9934_v59  ;;  %v8271_v18 = vadd.f32 %v5874_v47, %v9858_v50  ;;  %v8703_v47 = vld [vmem:[%s10144_s7 + $0x18] sm:$0xff]  }
 0x357   : > { %v6136_v14 = vadd.f32 %v8270_v32, %v9934_v59  ;;  %v6167_v8 = vmax.f32 %v6135_v21, 0.0 }
 0x358   : > { %v6134_v37 = vadd.f32 %v8271_v18, %v9934_v59  ;;  %v6165_v56 = vmax.f32 %v6133_v55, 0.0 }
 0x359   : > { %v6168_v48 = vmax.f32 %v6136_v14, 0.0 }
 0x35a   : > { %v6166_v34 = vmax.f32 %v6134_v37, 0.0  ;;  %v8146_v25 = vpop.f32.mrb[4].mxu1 }
 0x35b   : > { %v6198_v9 = vpack.c.bf16 %v6168_v48, %v6167_v8  ;;  %v8272_v41 = vadd.f32 %v8146_v25, %v9860_v30  ;;  %v5887_v49 = vpop.f32.mrb[5].mxu1 }
 0x35c   : > { %v8273_v0 = vadd.f32 %v5887_v49, %v9863_v33  ;;  %v8147_v20 = vpop.f32.mrb[6].mxu1  ;;  %v6197_v58 = vpack.c.bf16 %v6166_v34, %v6165_v56 }
 0x35d   : > { %v6139_v52 = vadd.f32 %v8272_v41, %v9934_v59  ;;  %v8274_v50 = vadd.f32 %v8147_v20, %v9866_v19  ;;  %v5890_v27 = vpop.f32.mrb[7].mxu1  ;;  %v8702_v19 = vld [vmem:[%s10144_s7 + $0x10] sm:$0xff]  }
 0x35e   : > { %v6137_v11 = vadd.f32 %v8273_v0, %v9934_v59  ;;  %v8275_v57 = vadd.f32 %v5890_v27, %v9868_v1  ;;  %8188 = vmatprep.mubr.bf16.mxu0 %v6197_v58 }
 0x35f   : > { %v6140_v30 = vadd.f32 %v8274_v50, %v9934_v59  ;;  %8189 = vmatmul.mubr.bf16.vlgmr.msra.gmra.mrb[64].mxu0 %v6198_v9  ;;  %v6171_v61 = vmax.f32 %v6139_v52, 0.0  ;;  %v8705_v52 = vld [vmem:[%s10144_s7 + $0x28] sm:$0xff]  }
 0x360   : > { %v6138_v33 = vadd.f32 %v8275_v57, %v9934_v59  ;;  %8221 = vmatpush3.bf16.msra.mxu0 %v8700_v40  ;;  %v6169_v38 = vmax.f32 %v6137_v11, 0.0 }
 0x361   : > { %v6172_v39 = vmax.f32 %v6140_v30, 0.0  ;;  %8222 = vmatprep.subr.bf16.mxu0 %v8701_v44 }
 0x362   : > { %v6170_v46 = vmax.f32 %v6138_v33, 0.0  ;;  %v8150_v7 = vpop.f32.mrb[8].mxu1 }
 0x363   : > { %v8276_v35 = vadd.f32 %v8150_v7, %v9870_v17  ;;  %v5903_v1 = vpop.f32.mrb[9].mxu1  ;;  %v6200_v53 = vpack.c.bf16 %v6172_v39, %v6171_v61 }
 0x364   : > { %v8277_v16 = vadd.f32 %v5903_v1, %v9872_v42  ;;  %v8151_v28 = vpop.f32.mrb[10].mxu1  ;;  %v6199_v3 = vpack.c.bf16 %v6170_v46, %v6169_v38  ;;  %8223 = vmatpush3.bf16.msra.mxu0 %v8701_v44 }
 0x365   : > { %v6143_v40 = vadd.f32 %v8276_v35, %v9934_v59  ;;  %v8278_v21 = vadd.f32 %v8151_v28, %v9875_v12  ;;  %v5906_v32 = vpop.f32.mrb[11].mxu1  ;;  %8224 = vmatprep.subr.bf16.mxu0 %v8702_v19  ;;  %v8704_v12 = vld [vmem:[%s10144_s7 + $0x20] sm:$0xff]  }
 0x366   : > { %v6141_v55 = vadd.f32 %v8277_v16, %v9934_v59  ;;  %v8279_v17 = vadd.f32 %v5906_v32, %v9878_v29  ;;  %8192 = vmatprep.mubr.bf16.mxu0 %v6199_v3 }
 0x367   : > { %v6144_v42 = vadd.f32 %v8278_v21, %v9934_v59  ;;  %8193 = vmatmul.mubr.bf16.gmra.mrb[68].mxu0 %v6200_v53  ;;  %v6175_v14 = vmax.f32 %v6143_v40, 0.0  ;;  %v8707_v53 = vld [vmem:[%s10144_s7 + $0x38] sm:$0xff]  }
 0x368   : > { %v6142_v18 = vadd.f32 %v8279_v17, %v9934_v59  ;;  %8225 = vmatpush3.bf16.msra.mxu0 %v8702_v19  ;;  %v6173_v8 = vmax.f32 %v6141_v55, 0.0 }
 0x369   : > { %v6176_v37 = vmax.f32 %v6144_v42, 0.0  ;;  %8226 = vmatprep.subr.bf16.mxu0 %v8703_v47 }
 0x36a   : > { %v6174_v48 = vmax.f32 %v6142_v18, 0.0  ;;  %v8154_v56 = vpop.f32.mrb[12].mxu1 }
 0x36b   : > { %v8280_v34 = vadd.f32 %v8154_v56, %v9880_v4  ;;  %v5919_v29 = vpop.f32.mrb[13].mxu1  ;;  %v6202_v25 = vpack.c.bf16 %v6176_v37, %v6175_v14 }
 0x36c   : > { %v8281_v9 = vadd.f32 %v5919_v29, %v9883_v2  ;;  %v8155_v41 = vpop.f32.mrb[14].mxu1  ;;  %v6201_v49 = vpack.c.bf16 %v6174_v48, %v6173_v8  ;;  %8227 = vmatpush3.bf16.msra.mxu0 %v8703_v47 }
 0x36d   : > { %v6147_v0 = vadd.f32 %v8280_v34, %v9934_v59  ;;  %v8282_v20 = vadd.f32 %v8155_v41, %v9885_v23  ;;  %v5922_v58 = vpop.f32.mrb[15].mxu1  ;;  %8228 = vmatprep.subr.bf16.mxu0 %v8704_v12  ;;  %v8706_v23 = vld [vmem:[%s10144_s7 + $0x30] sm:$0xff]  }
 0x36e   : > { %v6145_v50 = vadd.f32 %v8281_v9, %v9934_v59  ;;  %v8283_v4 = vadd.f32 %v5922_v58, %v9888_v54  ;;  %8196 = vmatprep.mubr.bf16.mxu0 %v6201_v49 }
 0x36f   : > { %v6148_v2 = vadd.f32 %v8282_v20, %v9934_v59  ;;  %8197 = vmatmul.mubr.bf16.gmra.mrb[72].mxu0 %v6202_v25  ;;  %v6179_v44 = vmax.f32 %v6147_v0, 0.0 }
 0x370   : > { %v6146_v27 = vadd.f32 %v8283_v4, %v9934_v59  ;;  %8229 = vmatpush3.bf16.msra.mxu0 %v8704_v12  ;;  %v6177_v57 = vmax.f32 %v6145_v50, 0.0 }
 0x371   : > { %v6180_v11 = vmax.f32 %v6148_v2, 0.0  ;;  %8230 = vmatprep.subr.bf16.mxu0 %v8705_v52 }
 0x372   : > { %v6178_v30 = vmax.f32 %v6146_v27, 0.0  ;;  %v8158_v33 = vpop.f32.mrb[16].mxu1 }
 0x373   : > { %v8284_v61 = vadd.f32 %v8158_v33, %v9890_v60  ;;  %v5935_v54 = vpop.f32.mrb[17].mxu1  ;;  %v6204_v39 = vpack.c.bf16 %v6180_v11, %v6179_v44 }
 0x374   : > { %v8285_v19 = vadd.f32 %v5935_v54, %v9892_v10  ;;  %v8159_v38 = vpop.f32.mrb[18].mxu1  ;;  %v6203_v46 = vpack.c.bf16 %v6178_v30, %v6177_v57  ;;  %8231 = vmatpush3.bf16.msra.mxu0 %v8705_v52 }
 0x375   : > { %v6151_v7 = vadd.f32 %v8284_v61, %v9934_v59  ;;  %v8286_v35 = vadd.f32 %v8159_v38, %v9895_v63  ;;  %v5938_v1 = vpop.f32.mrb[19].mxu1  ;;  %8232 = vmatprep.subr.bf16.mxu0 %v8706_v23 }
 0x376   : > { %v6149_v16 = vadd.f32 %v8285_v19, %v9934_v59  ;;  %v8287_v60 = vadd.f32 %v5938_v1, %v9898_v36  ;;  %8200 = vmatprep.mubr.bf16.mxu0 %v6203_v46 }
 0x377   : > { %v6152_v10 = vadd.f32 %v8286_v35, %v9934_v59  ;;  %8201 = vmatmul.mubr.bf16.gmra.mrb[76].mxu0 %v6204_v39  ;;  %v6183_v3 = vmax.f32 %v6151_v7, 0.0 }
 0x378   : > { %v6150_v28 = vadd.f32 %v8287_v60, %v9934_v59  ;;  %8233 = vmatpush3.bf16.msra.mxu0 %v8706_v23  ;;  %v6181_v63 = vmax.f32 %v6149_v16, 0.0 }
 0x379   : > { %v6184_v40 = vmax.f32 %v6152_v10, 0.0  ;;  %8234 = vmatprep.subr.bf16.mxu0 %v8707_v53  ;;  %v8709_v10 = vld [vmem:[%s8807_s20 + $0x8] sm:$0xff]  }
 0x37a   : > { %v6182_v21 = vmax.f32 %v6150_v28, 0.0  ;;  %v8162_v32 = vpop.f32.mrb[20].mxu1  ;;  %v8710_v28 = vld [vmem:[%s8807_s20 + $0x10] sm:$0xff]  }
 0x37b   : > { %v8288_v47 = vadd.f32 %v8162_v32, %v9901_v43  ;;  %v5951_v55 = vpop.f32.mrb[21].mxu1  ;;  %v6206_v17 = vpack.c.bf16 %v6184_v40, %v6183_v3  ;;  %v8712_v3 = vld [vmem:[%s8807_s20 + $0x20] sm:$0xff]   ;;  %v8713_v40 = vld [vmem:[%s8807_s20 + $0x28] sm:$0xff]  }
 0x37c   : > { %v8289_v42 = vadd.f32 %v5951_v55, %v9903_v5  ;;  %v8163_v36 = vpop.f32.mrb[22].mxu1  ;;  %v6205_v18 = vpack.c.bf16 %v6182_v21, %v6181_v63  ;;  %8235 = vmatpush3.bf16.msra.mxu0 %v8707_v53  ;;  %v8714_v63 = vld [vmem:[%s8807_s20 + $0x30] sm:$0xff]   ;;  %v8715_v21 = vld [vmem:[%s8807_s20 + $0x38] sm:$0xff]   ;;  %v8716_v32 = vld [vmem:[%s8807_s20 + $0x40] sm:$0xff]  }
 0x37d   : > { %v6155_v14 = vadd.f32 %v8288_v47, %v9934_v59  ;;  %v8290_v37 = vadd.f32 %v8163_v36, %v9905_v6  ;;  %v5954_v12 = vpop.f32.mrb[23].mxu1  ;;  %v8717_v47 = vld [vmem:[%s8807_s20 + $0x48] sm:$0xff]   ;;  %v8718_v55 = vld [vmem:[%s8807_s20 + $0x50] sm:$0xff]  }
 0x37e   : > { %v6153_v8 = vadd.f32 %v8289_v42, %v9934_v59  ;;  %v8291_v48 = vadd.f32 %v5954_v12, %v9907_v45  ;;  %8204 = vmatprep.mubr.bf16.mxu0 %v6205_v18  ;;  %v8720_v42 = vld [vmem:[%s8807_s20 + $0x60] sm:$0xff]   ;;  %v8721_v36 = vld [vmem:[%s8807_s20 + $0x68] sm:$0xff]   ;;  %v8722_v18 = vld [vmem:[%s8807_s20 + $0x70] sm:$0xff]  }
 0x37f   : > { %v6156_v56 = vadd.f32 %v8290_v37, %v9934_v59  ;;  %8205 = vmatmul.mubr.bf16.gmra.mrb[80].mxu0 %v6206_v17  ;;  %v6187_v34 = vmax.f32 %v6155_v14, 0.0  ;;  %v8719_v17 = vld [vmem:[%s8807_s20 + $0x58] sm:$0xff]   ;;  %v10040_v37 = vld [vmem:[%s10143_s6] ss:$0 sm:$0xff] }
 0x380   : > { %v6154_v43 = vadd.f32 %v8291_v48, %v9934_v59  ;;  %v6185_v29 = vmax.f32 %v6153_v8, 0.0  ;;  %v8723_v14 = vld [vmem:[%s8807_s20 + $0x78] sm:$0xff]   ;;  %v10045_v8 = vld [vmem:[%s10145_s8] ss:$0 sm:$0xff] }
 0x381   : > { %v6188_v5 = vmax.f32 %v6156_v56, 0.0 }
 0x382   : > { %v6186_v25 = vmax.f32 %v6154_v43, 0.0  ;;  %v8166_v9 = vpop.f32.mrb[24].mxu1 }
 0x383   : > { %v8292_v41 = vadd.f32 %v8166_v9, %v9909_v15  ;;  %v5967_v49 = vpop.f32.mrb[25].mxu1  ;;  %v6208_v6 = vpack.c.bf16 %v6188_v5, %v6187_v34 }
 0x384   : > { %v8293_v0 = vadd.f32 %v5967_v49, %v9911_v24  ;;  %v8167_v20 = vpop.f32.mrb[26].mxu1  ;;  %v6207_v58 = vpack.c.bf16 %v6186_v25, %v6185_v29 }
 0x385   : > { %v6159_v45 = vadd.f32 %v8292_v41, %v9934_v59  ;;  %v8294_v52 = vadd.f32 %v8167_v20, %v9913_v51  ;;  %v5970_v50 = vpop.f32.mrb[27].mxu1 }
 0x386   : > { %v6157_v4 = vadd.f32 %v8293_v0, %v9934_v59  ;;  %v8295_v2 = vadd.f32 %v5970_v50, %v9915_v22  ;;  %8208 = vmatprep.mubr.bf16.mxu0 %v6207_v58 }
 0x387   : > { %v6160_v27 = vadd.f32 %v8294_v52, %v9934_v59  ;;  %8209 = vmatmul.mubr.bf16.gmra.mrb[84].mxu0 %v6208_v6  ;;  %v6191_v44 = vmax.f32 %v6159_v45, 0.0 }
 0x388   : > { %v6158_v15 = vadd.f32 %v8295_v2, %v9934_v59  ;;  %v6189_v24 = vmax.f32 %v6157_v4, 0.0 }
 0x389   : > { %v6192_v11 = vmax.f32 %v6160_v27, 0.0 }
 0x38a   : > { %v6190_v23 = vmax.f32 %v6158_v15, 0.0  ;;  %v8170_v57 = vpop.f32.mrb[28].mxu1 }
 0x38b   : > { %v8296_v30 = vadd.f32 %v8170_v57, %v9917_v62  ;;  %v5983_v33 = vpop.f32.mrb[29].mxu1  ;;  %v6210_v51 = vpack.c.bf16 %v6192_v11, %v6191_v44 }
 0x38c   : > { %v8297_v61 = vadd.f32 %v5983_v33, %v9919_v26  ;;  %v8171_v54 = vpop.f32.mrb[30].mxu1  ;;  %v6209_v39 = vpack.c.bf16 %v6190_v23, %v6189_v24 }
 0x38d   : > { %v6163_v22 = vadd.f32 %v8296_v30, %v9934_v59  ;;  %v8298_v19 = vadd.f32 %v8171_v54, %v9921_v13  ;;  %v5986_v38 = vpop.f32.mrb[31].mxu1 }
 0x38e   : > { %v6161_v46 = vadd.f32 %v8297_v61, %v9934_v59  ;;  %v8299_v7 = vadd.f32 %v5986_v38, %v9923_v31  ;;  %8212 = vmatprep.mubr.bf16.mxu0 %v6209_v39  ;;  %v8708_v31 = vld [vmem:[%s8807_s20] sm:$0xff]  }
 0x38f   : > { %v6164_v62 = vadd.f32 %v8298_v19, %v9934_v59  ;;  %8213 = vmatmul.mubr.bf16.gmra.mrb[88].mxu0 %v6210_v51  ;;  %v6195_v35 = vmax.f32 %v6163_v22, 0.0 }
 0x390   : > { %v6162_v26 = vadd.f32 %v8299_v7, %v9934_v59  ;;  %v6193_v53 = vmax.f32 %v6161_v46, 0.0  ;;  %v8711_v59 = vld [vmem:[%s8807_s20 + $0x18] sm:$0xff]  }
 0x391   : > { %v6196_v1 = vmax.f32 %v6164_v62, 0.0 }
 0x392   : > { %v6194_v13 = vmax.f32 %v6162_v26, 0.0 }
 0x393   : > { %v6212_v16 = vpack.c.bf16 %v6196_v1, %v6195_v35 }
 0x394   : > { %v6211_v60 = vpack.c.bf16 %v6194_v13, %v6193_v53 }
 0x396   : > { %8216 = vmatprep.mubr.bf16.mxu0 %v6211_v60 }
 0x397   : > { %8217 = vmatmul.mubr.bf16.gmra.mrb[92].mxu0 %v6212_v16 }
 0x398   : > { %8236 = vmatprep.mubr.bf16.mxu0 %v8708_v31 }
 0x39f   : > { %8237 = vmatmul.mubr.bf16.vlgmr.msra.gmra.mrb[64].mxu0 %v8709_v10 }
 0x3a0   : > { %8240 = vmatprep.mubr.bf16.mxu0 %v8710_v28 }
 0x3a7   : > { %8241 = vmatmul.mubr.bf16.gmra.mrb[68].mxu0 %v8711_v59 }
 0x3a8   : > { %8244 = vmatprep.mubr.bf16.mxu0 %v8712_v3 }
 0x3af   : > { %8245 = vmatmul.mubr.bf16.gmra.mrb[72].mxu0 %v8713_v40 }
 0x3b0   : > { %8248 = vmatprep.mubr.bf16.mxu0 %v8714_v63 }
 0x3b7   : > { %8249 = vmatmul.mubr.bf16.gmra.mrb[76].mxu0 %v8715_v21 }
 0x3b8   : > { %8252 = vmatprep.mubr.bf16.mxu0 %v8716_v32 }
 0x3bf   : > { %8253 = vmatmul.mubr.bf16.gmra.mrb[80].mxu0 %v8717_v47 }
 0x3c0   : > { %8256 = vmatprep.mubr.bf16.mxu0 %v8718_v55 }
 0x3c7   : > { %8257 = vmatmul.mubr.bf16.gmra.mrb[84].mxu0 %v8719_v17 }
 0x3c8   : > { %8260 = vmatprep.mubr.bf16.mxu0 %v8720_v42 }
 0x3cf   : > { %8261 = vmatmul.mubr.bf16.gmra.mrb[88].mxu0 %v8721_v36 }
 0x3d0   : > { %8264 = vmatprep.mubr.bf16.mxu0 %v8722_v18 }
 0x3d7   : > { %8265 = vmatmul.mubr.bf16.gmra.mrb[92].mxu0 %v8723_v14 }
 0x472   : > { %v8238_v12 = vpop.f32.mrb[64].mxu0 }
 0x473   : > { %v8300_v48 = vadd.f32 %v8238_v12, %v10040_v37  ;;  %v6543_v56 = vpop.f32.mrb[65].mxu0 }
 0x474   : > { %v8301_v43 = vadd.f32 %v10040_v37, %v6543_v56  ;;  %v8239_v34 = vpop.f32.mrb[66].mxu0 }
 0x475   : > { %v6711_v5 = vadd.f32 %v8300_v48, %v10045_v8  ;;  %v8302_v29 = vadd.f32 %v8239_v34, %v10040_v37  ;;  %v6546_v25 = vpop.f32.mrb[67].mxu0 }
 0x476   : > { %v6709_v9 = vadd.f32 %v8301_v43, %v10045_v8  ;;  %v8303_v41 = vadd.f32 %v10040_v37, %v6546_v25 }
 0x477   : > { %v6712_v49 = vadd.f32 %v8302_v29, %v10045_v8  ;;  %v6743_v0 = vmax.f32 %v6711_v5, 0.0 }
 0x478   : > { %v6710_v6 = vadd.f32 %v8303_v41, %v10045_v8  ;;  %v6741_v58 = vmax.f32 %v6709_v9, 0.0 }
 0x479   : > { %v6744_v20 = vmax.f32 %v6712_v49, 0.0 }
 0x47a   : > { %v6742_v45 = vmax.f32 %v6710_v6, 0.0  ;;  %v8242_v52 = vpop.f32.mrb[68].mxu0 }
 0x47b   : > { %v7317_v50 = vpack.c.bf16 %v6744_v20, %v6743_v0  ;;  %v8304_v4 = vadd.f32 %v8242_v52, %v10040_v37  ;;  %v6559_v2 = vpop.f32.mrb[69].mxu0 }
 0x47c   : > { %v7312_v27 = vpack.c.bf16 %v6742_v45, %v6741_v58  ;;  %v8305_v15 = vadd.f32 %v10040_v37, %v6559_v2  ;;  %v8243_v44 = vpop.f32.mrb[70].mxu0 }
 0x47d   : > { %7389 = vst [vmem:[%s10060_s29 + $0x8] sm:$0xff] %v7317_v50   ;;  %v6715_v11 = vadd.f32 %v8304_v4, %v10045_v8  ;;  %v8306_v24 = vadd.f32 %v8243_v44, %v10040_v37  ;;  %v6562_v23 = vpop.f32.mrb[71].mxu0 }
 0x47e   : > { %7313 = vst [vmem:[%s10060_s29] sm:$0xff] %v7312_v27   ;;  %v6713_v57 = vadd.f32 %v8305_v15, %v10045_v8  ;;  %v8307_v30 = vadd.f32 %v10040_v37, %v6562_v23 }
 0x47f   : > { %v6716_v33 = vadd.f32 %v8306_v24, %v10045_v8  ;;  %v6747_v61 = vmax.f32 %v6715_v11, 0.0 }
 0x480   : > { %v6714_v51 = vadd.f32 %v8307_v30, %v10045_v8  ;;  %v6745_v39 = vmax.f32 %v6713_v57, 0.0 }
 0x481   : > { %v6748_v54 = vmax.f32 %v6716_v33, 0.0 }
 0x482   : > { %v6746_v22 = vmax.f32 %v6714_v51, 0.0  ;;  %v8246_v19 = vpop.f32.mrb[72].mxu0 }
 0x483   : > { %v7327_v38 = vpack.c.bf16 %v6748_v54, %v6747_v61  ;;  %v8308_v46 = vadd.f32 %v8246_v19, %v10040_v37  ;;  %v6575_v7 = vpop.f32.mrb[73].mxu0 }
 0x484   : > { %v7322_v62 = vpack.c.bf16 %v6746_v22, %v6745_v39  ;;  %v8309_v26 = vadd.f32 %v10040_v37, %v6575_v7  ;;  %v8247_v35 = vpop.f32.mrb[74].mxu0 }
 0x485   : > { %7391 = vst [vmem:[%s10060_s29 + $0x18] sm:$0xff] %v7327_v38   ;;  %v6719_v1 = vadd.f32 %v8308_v46, %v10045_v8  ;;  %v8310_v53 = vadd.f32 %v8247_v35, %v10040_v37  ;;  %v6578_v13 = vpop.f32.mrb[75].mxu0 }
 0x486   : > { %7390 = vst [vmem:[%s10060_s29 + $0x10] sm:$0xff] %v7322_v62   ;;  %v6717_v16 = vadd.f32 %v8309_v26, %v10045_v8  ;;  %v8311_v60 = vadd.f32 %v10040_v37, %v6578_v13 }
 0x487   : > { %v6720_v31 = vadd.f32 %v8310_v53, %v10045_v8  ;;  %v6751_v28 = vmax.f32 %v6719_v1, 0.0 }
 0x488   : > { %v6718_v10 = vadd.f32 %v8311_v60, %v10045_v8  ;;  %v6749_v3 = vmax.f32 %v6717_v16, 0.0 }
 0x489   : > { %v6752_v59 = vmax.f32 %v6720_v31, 0.0 }
 0x48a   : > { %v6750_v40 = vmax.f32 %v6718_v10, 0.0  ;;  %v8250_v63 = vpop.f32.mrb[76].mxu0 }
 0x48b   : > { %v7337_v21 = vpack.c.bf16 %v6752_v59, %v6751_v28  ;;  %v8312_v32 = vadd.f32 %v8250_v63, %v10040_v37  ;;  %v6591_v47 = vpop.f32.mrb[77].mxu0 }
 0x48c   : > { %v7332_v55 = vpack.c.bf16 %v6750_v40, %v6749_v3  ;;  %v8313_v17 = vadd.f32 %v10040_v37, %v6591_v47  ;;  %v8251_v42 = vpop.f32.mrb[78].mxu0 }
 0x48d   : > { %7393 = vst [vmem:[%s10060_s29 + $0x28] sm:$0xff] %v7337_v21   ;;  %v6723_v36 = vadd.f32 %v8312_v32, %v10045_v8  ;;  %v8314_v18 = vadd.f32 %v8251_v42, %v10040_v37  ;;  %v6594_v14 = vpop.f32.mrb[79].mxu0 }
 0x48e   : > { %7392 = vst [vmem:[%s10060_s29 + $0x20] sm:$0xff] %v7332_v55   ;;  %v6721_v12 = vadd.f32 %v8313_v17, %v10045_v8  ;;  %v8315_v48 = vadd.f32 %v10040_v37, %v6594_v14 }
 0x48f   : > { %v6724_v56 = vadd.f32 %v8314_v18, %v10045_v8  ;;  %v6755_v34 = vmax.f32 %v6723_v36, 0.0 }
 0x490   : > { %v6722_v43 = vadd.f32 %v8315_v48, %v10045_v8  ;;  %v6753_v29 = vmax.f32 %v6721_v12, 0.0 }
 0x491   : > { %v6756_v5 = vmax.f32 %v6724_v56, 0.0 }
 0x492   : > { %v6754_v25 = vmax.f32 %v6722_v43, 0.0  ;;  %v8254_v9 = vpop.f32.mrb[80].mxu0 }
 0x493   : > { %v7347_v41 = vpack.c.bf16 %v6756_v5, %v6755_v34  ;;  %v8316_v49 = vadd.f32 %v8254_v9, %v10040_v37  ;;  %v6607_v6 = vpop.f32.mrb[81].mxu0 }
 0x494   : > { %v7342_v0 = vpack.c.bf16 %v6754_v25, %v6753_v29  ;;  %v8317_v20 = vadd.f32 %v10040_v37, %v6607_v6  ;;  %v8255_v58 = vpop.f32.mrb[82].mxu0 }
 0x495   : > { %7395 = vst [vmem:[%s10060_s29 + $0x38] sm:$0xff] %v7347_v41   ;;  %v6727_v45 = vadd.f32 %v8316_v49, %v10045_v8  ;;  %v8318_v52 = vadd.f32 %v8255_v58, %v10040_v37  ;;  %v6610_v50 = vpop.f32.mrb[83].mxu0 }
 0x496   : > { %7394 = vst [vmem:[%s10060_s29 + $0x30] sm:$0xff] %v7342_v0   ;;  %v6725_v4 = vadd.f32 %v8317_v20, %v10045_v8  ;;  %v8319_v2 = vadd.f32 %v10040_v37, %v6610_v50 }
 0x497   : > { %v6728_v27 = vadd.f32 %v8318_v52, %v10045_v8  ;;  %v6759_v44 = vmax.f32 %v6727_v45, 0.0 }
 0x498   : > { %v6726_v15 = vadd.f32 %v8319_v2, %v10045_v8  ;;  %v6757_v24 = vmax.f32 %v6725_v4, 0.0 }
 0x499   : > { %v6760_v11 = vmax.f32 %v6728_v27, 0.0 }
 0x49a   : > { %v6758_v23 = vmax.f32 %v6726_v15, 0.0  ;;  %v8258_v57 = vpop.f32.mrb[84].mxu0 }
 0x49b   : > { %v7357_v30 = vpack.c.bf16 %v6760_v11, %v6759_v44  ;;  %v8320_v33 = vadd.f32 %v8258_v57, %v10040_v37  ;;  %v6623_v51 = vpop.f32.mrb[85].mxu0 }
 0x49c   : > { %v7352_v61 = vpack.c.bf16 %v6758_v23, %v6757_v24  ;;  %v8321_v54 = vadd.f32 %v10040_v37, %v6623_v51  ;;  %v8259_v39 = vpop.f32.mrb[86].mxu0 }
 0x49d   : > { %7397 = vst [vmem:[%s10060_s29 + $0x48] sm:$0xff] %v7357_v30   ;;  %v6731_v22 = vadd.f32 %v8320_v33, %v10045_v8  ;;  %v8322_v19 = vadd.f32 %v8259_v39, %v10040_v37  ;;  %v6626_v38 = vpop.f32.mrb[87].mxu0 }
 0x49e   : > { %7396 = vst [vmem:[%s10060_s29 + $0x40] sm:$0xff] %v7352_v61   ;;  %v6729_v46 = vadd.f32 %v8321_v54, %v10045_v8  ;;  %v8323_v7 = vadd.f32 %v10040_v37, %v6626_v38 }
 0x49f   : > { %v6732_v62 = vadd.f32 %v8322_v19, %v10045_v8  ;;  %v6763_v35 = vmax.f32 %v6731_v22, 0.0 }
 0x4a0   : > { %v6730_v26 = vadd.f32 %v8323_v7, %v10045_v8  ;;  %v6761_v53 = vmax.f32 %v6729_v46, 0.0 }
 0x4a1   : > { %v6764_v1 = vmax.f32 %v6732_v62, 0.0 }
 0x4a2   : > { %v6762_v13 = vmax.f32 %v6730_v26, 0.0  ;;  %v8262_v16 = vpop.f32.mrb[88].mxu0 }
 0x4a3   : > { %v7367_v60 = vpack.c.bf16 %v6764_v1, %v6763_v35  ;;  %v8324_v31 = vadd.f32 %v8262_v16, %v10040_v37  ;;  %v6639_v10 = vpop.f32.mrb[89].mxu0 }
 0x4a4   : > { %v7362_v28 = vpack.c.bf16 %v6762_v13, %v6761_v53  ;;  %v8325_v59 = vadd.f32 %v10040_v37, %v6639_v10  ;;  %v8263_v3 = vpop.f32.mrb[90].mxu0 }
 0x4a5   : > { %7399 = vst [vmem:[%s10060_s29 + $0x58] sm:$0xff] %v7367_v60   ;;  %v6735_v40 = vadd.f32 %v8324_v31, %v10045_v8  ;;  %v8326_v63 = vadd.f32 %v8263_v3, %v10040_v37  ;;  %v6642_v21 = vpop.f32.mrb[91].mxu0 }
 0x4a6   : > { %7398 = vst [vmem:[%s10060_s29 + $0x50] sm:$0xff] %v7362_v28   ;;  %v6733_v32 = vadd.f32 %v8325_v59, %v10045_v8  ;;  %v8327_v47 = vadd.f32 %v10040_v37, %v6642_v21 }
 0x4a7   : > { %v6736_v55 = vadd.f32 %v8326_v63, %v10045_v8  ;;  %v6767_v42 = vmax.f32 %v6735_v40, 0.0 }
 0x4a8   : > { %v6734_v17 = vadd.f32 %v8327_v47, %v10045_v8  ;;  %v6765_v18 = vmax.f32 %v6733_v32, 0.0 }
 0x4a9   : > { %v6768_v36 = vmax.f32 %v6736_v55, 0.0 }
 0x4aa   : > { %v6766_v14 = vmax.f32 %v6734_v17, 0.0  ;;  %v8266_v12 = vpop.f32.mrb[92].mxu0 }
 0x4ab   : > { %v7377_v48 = vpack.c.bf16 %v6768_v36, %v6767_v42  ;;  %v8328_v56 = vadd.f32 %v8266_v12, %v10040_v37  ;;  %v6655_v43 = vpop.f32.mrb[93].mxu0 }
 0x4ac   : > { %v7372_v34 = vpack.c.bf16 %v6766_v14, %v6765_v18  ;;  %v8329_v5 = vadd.f32 %v10040_v37, %v6655_v43  ;;  %v8267_v29 = vpop.f32.mrb[94].mxu0 }
 0x4ad   : > { %7401 = vst [vmem:[%s10060_s29 + $0x68] sm:$0xff] %v7377_v48   ;;  %v6739_v25 = vadd.f32 %v8328_v56, %v10045_v8  ;;  %v8330_v9 = vadd.f32 %v8267_v29, %v10040_v37  ;;  %v6658_v41 = vpop.f32.mrb[95].mxu0 }
 0x4ae   : > { %7400 = vst [vmem:[%s10060_s29 + $0x60] sm:$0xff] %v7372_v34   ;;  %v6737_v49 = vadd.f32 %v8329_v5, %v10045_v8  ;;  %v8331_v6 = vadd.f32 %v10040_v37, %v6658_v41 }
 0x4af   : > { %v6740_v0 = vadd.f32 %v8330_v9, %v10045_v8  ;;  %v6771_v58 = vmax.f32 %v6739_v25, 0.0 }
 0x4b0   : > { %v6738_v20 = vadd.f32 %v8331_v6, %v10045_v8  ;;  %v6769_v52 = vmax.f32 %v6737_v49, 0.0 }
 0x4b1   : > { %v6772_v45 = vmax.f32 %v6740_v0, 0.0 }
 0x4b2   : > { %v6770_v50 = vmax.f32 %v6738_v20, 0.0 }
 0x4b3   : > { %v7387_v4 = vpack.c.bf16 %v6772_v45, %v6771_v58 }
 0x4b4   : > { %v7382_v2 = vpack.c.bf16 %v6770_v50, %v6769_v52 }
 0x4b5   : > { %7403 = vst [vmem:[%s10060_s29 + $0x78] sm:$0xff] %v7387_v4  }
 0x4b6   : > { %7402 = vst [vmem:[%s10060_s29 + $0x70] sm:$0xff] %v7382_v2  }
 0x4b7 PF: > { %s19_s30 = sadd.s32 1, %s8730_s30  }
 0x4b8   : > { %p16_p4 = scmp.ge.s32.totalorder %s19_s30, 4  }
 0x4ba   :  { %18 = sbr.rel (!%p16_p4) target bundleno = 1 (0x1), region = 97 }

</bundles_post_ra>
